<compile_context>
chip_gen: v7x
topology: tpu7x:2x2x1
jax: 0.10.0
libtpu: 0.0.40
codegen_flags: <defaults>
</compile_context>

<pallas_src>
import math
import functools

import jax
import jax.numpy as jnp
from jax import lax
from jax.experimental import pallas as pl
from jax.experimental.pallas import tpu as pltpu

LN_EPS = 1e-5      # torch.nn.LayerNorm default
LANE = 128         # TPU vreg lane width


def _round_up(n, m):
    return ((n + m - 1) // m) * m


# ---------------------------------------------------------------------------
# in-kernel math helpers (f32: v5e has no bf16 VPU/EUP path)
# ---------------------------------------------------------------------------
def _layer_norm(x, gamma, beta):
    mu = jnp.mean(x, axis=-1, keepdims=True)
    var = jnp.mean((x - mu) ** 2, axis=-1, keepdims=True)
    return (x - mu) * lax.rsqrt(var + LN_EPS) * gamma + beta


def _gelu_exact(x):
    # F.gelu default (exact, erf-based)
    return 0.5 * x * (1.0 + lax.erf(x * (1.0 / math.sqrt(2.0))))


# ---------------------------------------------------------------------------
# fused Pallas kernel: entire depth-loop for `batch_block` batch elements
# ---------------------------------------------------------------------------
def transformer_kernel(x_ref,
                       lng_a_ref, lnb_a_ref, wqkv_ref, bqkv_ref, wo_ref, bo_ref,
                       lng_f_ref, lnb_f_ref, w1_ref, b1_ref, w2_ref, b2_ref,
                       o_ref,
                       *, depth, num_heads, head_dim, hidden, seq, batch_block):
    x = x_ref[...]                               # (batch_block*seq, D) f32, stays on-chip
    _, D = x.shape
    dh = head_dim
    hseg = _round_up(dh, LANE)                   # lane stride of one (q|k|v, head) segment
    fseg = _round_up(hidden, LANE)               # lane stride of each GEGLU half

    for l in range(depth):                       # static depth loop (depth=2: harmless)
        # ---------- PreNorm(MultiheadAttention)(x, x, x) + x  (self-attention) ----------
        xn = _layer_norm(x, lng_a_ref[l], lnb_a_ref[l])
        # Fused, lane-aligned QKV projection.  The 1/sqrt(dh) query scale is already
        # folded into wqkv/bqkv; every (kind, head) segment starts at a 128-lane boundary
        # so the slices below need no lane shuffles.
        qkv = jnp.dot(xn, wqkv_ref[l], preferred_element_type=jnp.float32) + bqkv_ref[l]

        attn_rows = []
        for b in range(batch_block):             # static batch loop; sublane-aligned rows
            r0 = b * seq
            acc = jnp.zeros((seq, D), jnp.float32)   # per-batch output-proj accumulator
            for h in range(num_heads):           # static head loop; vreg-aligned slices
                cq = (0 * num_heads + h) * hseg
                ck = (1 * num_heads + h) * hseg
                cv = (2 * num_heads + h) * hseg
                qh = qkv[r0:r0 + seq, cq:cq + dh]
                kh = qkv[r0:r0 + seq, ck:ck + dh]
                vh = qkv[r0:r0 + seq, cv:cv + dh]
                # scores = qh @ kh.T without an explicit transpose
                s = lax.dot_general(qh, kh, (((1,), (1,)), ((), ())),
                                    preferred_element_type=jnp.float32)     # (S, S)
                s = s - jnp.max(s, axis=-1, keepdims=True)
                p = jnp.exp(s)
                p = p / jnp.sum(p, axis=-1, keepdims=True)   # exact softmax (parity w/ ref)
                oh = jnp.dot(p, vh, preferred_element_type=jnp.float32)     # (S, dh)
                # per-head output projection accumulated in registers (no scratch store)
                acc = acc + jnp.dot(oh, wo_ref[l, h],
                                    preferred_element_type=jnp.float32)     # (S, D)
            attn_rows.append(acc)
        attn = attn_rows[0] if batch_block == 1 else jnp.concatenate(attn_rows, axis=0)
        x = attn + bo_ref[l] + x

        # ---------- PreNorm(FeedForward)(x) + x : LayerNorm -> Linear -> GEGLU -> Linear ----------
        xn = _layer_norm(x, lng_f_ref[l], lnb_f_ref[l])
        hcat = jnp.dot(xn, w1_ref[l], preferred_element_type=jnp.float32) + b1_ref[l]
        a = hcat[:, 0:hidden]                    # lane-aligned halves (padded to 128)
        g = hcat[:, fseg:fseg + hidden]
        z = a * _gelu_exact(g)                   # GEGLU
        x = jnp.dot(z, w2_ref[l], preferred_element_type=jnp.float32) + b2_ref[l] + x

    o_ref[...] = x.astype(o_ref.dtype)


# ---------------------------------------------------------------------------
# pallas_call wrapper
# ---------------------------------------------------------------------------
def transformer_forward(x, packed_params, num_heads, hidden, *, batch_block=None):
    """Fused equivalent of the PreNorm transformer stack forward (mask=None)."""
    B, S, D = x.shape
    depth = packed_params[0].shape[0]
    dh = D // num_heads
    assert num_heads * dh == D, "dim must be divisible by num_heads"
    if batch_block is None:
        batch_block = B          # whole batch per grid step (best for single-TC v5e/v6e)
    assert B % batch_block == 0
    rows = batch_block * S

    # lane-dense 2-D I/O slab: one DMA of (B*S, D) rows instead of per-batch 3-D tiles
    x2 = x.reshape(B * S, D)
    x_spec = pl.BlockSpec((rows, D), lambda i: (i, 0))

    def _full_spec(p):
        nd = p.ndim
        return pl.BlockSpec(p.shape, lambda i, _nd=nd: (0,) * _nd)

    hseg = _round_up(dh, LANE)
    fseg = _round_up(hidden, LANE)
    # advisory cost estimate so XLA can schedule/overlap around the custom call
    matmul_flops = (2 * S * D * 3 * num_heads * hseg     # lane-padded QKV projection
                    + num_heads * (2 * S * S * dh) * 2   # q@k.T and p@v per head
                    + num_heads * 2 * S * dh * D         # per-head output projection
                    + 2 * S * D * 2 * fseg               # FF up-projection (padded)
                    + 2 * S * hidden * D)                # FF down-projection
    flops = int(B * depth * matmul_flops)
    transcendentals = int(B * depth * (num_heads * S * S    # exp
                                       + S * hidden         # erf
                                       + 2 * S))            # rsqrt
    bytes_accessed = int(2 * x.size * 4 + sum(int(p.size) for p in packed_params) * 4)

    out = pl.pallas_call(
        functools.partial(transformer_kernel,
                          depth=depth, num_heads=num_heads, head_dim=dh,
                          hidden=hidden, seq=S, batch_block=batch_block),
        out_shape=jax.ShapeDtypeStruct((B * S, D), x.dtype),
        grid=(B // batch_block,),
        in_specs=[x_spec] + [_full_spec(p) for p in packed_params],
        out_specs=x_spec,
        compiler_params=pltpu.CompilerParams(dimension_semantics=("parallel",)),
        cost_estimate=pl.CostEstimate(flops=flops,
                                      transcendentals=transcendentals,
                                      bytes_accessed=bytes_accessed),
    )(x2, *packed_params)
    return out.reshape(B, S, D)


# ---------------------------------------------------------------------------
# deterministic parameter construction (synthetic; shapes follow the nn.Module)
# ---------------------------------------------------------------------------
def init_params(key, depth, dim, num_heads, mult=4):
    del num_heads
    hidden = dim * mult
    layers = []
    for i in range(depth):
        ks = jax.random.split(jax.random.fold_in(key, i), 16)
        s = 1.0 / math.sqrt(dim)
        # --- attention block params ---
        lng = 1.0 + 0.1 * jax.random.normal(ks[0], (1, dim), jnp.float32)
        lnb = 0.1 * jax.random.normal(ks[1], (1, dim), jnp.float32)
        wq = s * jax.random.normal(ks[2], (dim, dim), jnp.float32)
        wk = s * jax.random.normal(ks[3], (dim, dim), jnp.float32)
        wv = s * jax.random.normal(ks[4], (dim, dim), jnp.float32)
        bq = 0.1 * jax.random.normal(ks[5], (1, dim), jnp.float32)
        bk = 0.1 * jax.random.normal(ks[6], (1, dim), jnp.float32)
        bv = 0.1 * jax.random.normal(ks[7], (1, dim), jnp.float32)
        wo = s * jax.random.normal(ks[8], (dim, dim), jnp.float32)
        bo = 0.1 * jax.random.normal(ks[9], (1, dim), jnp.float32)
        attn_p = (lng, lnb, wq, wk, wv, bq, bk, bv, wo, bo)
        # --- feed-forward block params ---
        lng2 = 1.0 + 0.1 * jax.random.normal(ks[10], (1, dim), jnp.float32)
        lnb2 = 0.1 * jax.random.normal(ks[11], (1, dim), jnp.float32)
        w1 = s * jax.random.normal(ks[12], (dim, 2 * hidden), jnp.float32)
        b1 = 0.1 * jax.random.normal(ks[13], (1, 2 * hidden), jnp.float32)
        w2 = (1.0 / math.sqrt(hidden)) * jax.random.normal(ks[14], (hidden, dim), jnp.float32)
        b2 = 0.1 * jax.random.normal(ks[15], (1, dim), jnp.float32)
        ff_p = (lng2, lnb2, w1, b1, w2, b2)
        layers.append((attn_p, ff_p))
    return layers


def pack_params(layer_params, num_heads):
    """Host-side packing: depth-stack every parameter, fold the 1/sqrt(dh) query scale
    into the QKV weights+biases, and lay out QKV / GEGLU columns on 128-lane boundaries
    so all in-kernel slices are vreg-aligned."""
    a = [lp[0] for lp in layer_params]
    f = [lp[1] for lp in layer_params]
    L = len(layer_params)
    D = a[0][2].shape[0]
    dh = D // num_heads
    scale = 1.0 / math.sqrt(dh)
    hseg = _round_up(dh, LANE)
    hidden = f[0][4].shape[0]
    fseg = _round_up(hidden, LANE)

    lng_a = jnp.stack([p[0] for p in a])                                      # (L,1,D)
    lnb_a = jnp.stack([p[1] for p in a])                                      # (L,1,D)

    # lane-aligned fused QKV (q-scale + q-bias-scale folded in)
    wqkv = jnp.zeros((L, D, 3 * num_heads * hseg), jnp.float32)               # (L,D,3*H*128)
    bqkv = jnp.zeros((L, 1, 3 * num_heads * hseg), jnp.float32)
    for l, p in enumerate(a):
        ws = (p[2] * scale, p[3], p[4])      # wq*scale, wk, wv
        bs = (p[5] * scale, p[6], p[7])      # bq*scale, bk, bv
        for kind in range(3):
            for h in range(num_heads):
                c = (kind * num_heads + h) * hseg
                wqkv = wqkv.at[l, :, c:c + dh].set(ws[kind][:, h * dh:(h + 1) * dh])
                bqkv = bqkv.at[l, :, c:c + dh].set(bs[kind][:, h * dh:(h + 1) * dh])

    # output projection split per head: wo[h] = wo[h*dh:(h+1)*dh, :]
    wo = jnp.stack([p[8].reshape(num_heads, dh, D) for p in a])               # (L,H,dh,D)
    bo = jnp.stack([p[9] for p in a])                                         # (L,1,D)

    lng_f = jnp.stack([p[0] for p in f])                                      # (L,1,D)
    lnb_f = jnp.stack([p[1] for p in f])                                      # (L,1,D)
    # lane-aligned GEGLU halves
    w1 = jnp.zeros((L, D, 2 * fseg), jnp.float32)                             # (L,D,2*fseg)
    b1 = jnp.zeros((L, 1, 2 * fseg), jnp.float32)
    for l, p in enumerate(f):
        w1 = w1.at[l, :, 0:hidden].set(p[2][:, :hidden])
        w1 = w1.at[l, :, fseg:fseg + hidden].set(p[2][:, hidden:])
        b1 = b1.at[l, :, 0:hidden].set(p[3][:, :hidden])
        b1 = b1.at[l, :, fseg:fseg + hidden].set(p[3][:, hidden:])
    w2 = jnp.stack([p[4] for p in f])                                         # (L,H_ff,D)
    b2 = jnp.stack([p[5] for p in f])                                         # (L,1,D)
    return (lng_a, lnb_a, wqkv, bqkv, wo, bo, lng_f, lnb_f, w1, b1, w2, b2)


# ---------------------------------------------------------------------------
# pure-JAX reference (mirrors the PyTorch forward) for correctness checking
# ---------------------------------------------------------------------------
def ref_forward(x, layer_params, num_heads):
    B, S, D = x.shape
    dh = D // num_heads
    for attn_p, ff_p in layer_params:
        lng, lnb, wq, wk, wv, bq, bk, bv, wo, bo = attn_p
        xn = _layer_norm(x, lng, lnb)
        q = (xn @ wq + bq).reshape(B, S, num_heads, dh).transpose(0, 2, 1, 3)
        k = (xn @ wk + bk).reshape(B, S, num_heads, dh).transpose(0, 2, 1, 3)
        v = (xn @ wv + bv).reshape(B, S, num_heads, dh).transpose(0, 2, 1, 3)
        s = (q * (1.0 / math.sqrt(dh))) @ k.transpose(0, 1, 3, 2)
        p = jax.nn.softmax(s, axis=-1)
        o = (p @ v).transpose(0, 2, 1, 3).reshape(B, S, D)
        x = o @ wo + bo + x

        lng2, lnb2, w1, b1, w2, b2 = ff_p
        xn = _layer_norm(x, lng2, lnb2)
        h = xn @ w1 + b1
        hid = w2.shape[0]
        z = h[..., :hid] * _gelu_exact(h[..., hid:])
        x = z @ w2 + b2 + x
    return x


# ---------------------------------------------------------------------------
if __name__ == "__main__":
    B, S, D = 2, 8, 32          # batch, seq, latent_dim
    HEADS, DEPTH, MULT = 4, 2, 4
    HIDDEN = D * MULT

    key = jax.random.PRNGKey(0)
    kx, kp = jax.random.split(key)
    x = jax.random.normal(kx, (B, S, D), jnp.float32)
    layer_params = init_params(kp, DEPTH, D, HEADS, MULT)
    packed = pack_params(layer_params, HEADS)

    out = transformer_forward(x, packed, HEADS, HIDDEN)
    out = jax.block_until_ready(out)

    ref = jax.block_until_ready(ref_forward(x, layer_params, HEADS))
    assert out.shape == (B, S, D)
    err = float(jnp.max(jnp.abs(out - ref)))
    assert jnp.allclose(out, ref, atol=1e-3, rtol=1e-3), f"max abs diff {err}"

    print("KERNEL_OK")
</pallas_src>

<mosaic_0001>
module attributes {stable_mosaic.version = 11 : i64} {
  func.func @transformer_kernel(%arg0: i32, %arg1: memref<16x32xf32, #tpu.memory_space<vmem>>, %arg2: memref<2x1x32xf32, #tpu.memory_space<vmem>>, %arg3: memref<2x1x32xf32, #tpu.memory_space<vmem>>, %arg4: memref<2x32x1536xf32, #tpu.memory_space<vmem>>, %arg5: memref<2x1x1536xf32, #tpu.memory_space<vmem>>, %arg6: memref<2x4x8x32xf32, #tpu.memory_space<vmem>>, %arg7: memref<2x1x32xf32, #tpu.memory_space<vmem>>, %arg8: memref<2x1x32xf32, #tpu.memory_space<vmem>>, %arg9: memref<2x1x32xf32, #tpu.memory_space<vmem>>, %arg10: memref<2x32x256xf32, #tpu.memory_space<vmem>>, %arg11: memref<2x1x256xf32, #tpu.memory_space<vmem>>, %arg12: memref<2x128x32xf32, #tpu.memory_space<vmem>>, %arg13: memref<2x1x32xf32, #tpu.memory_space<vmem>>, %arg14: memref<16x32xf32, #tpu.memory_space<vmem>>) attributes {dimension_semantics = [#tpu.dimension_semantics<parallel>], iteration_bounds = array<i64: 1>, scalar_prefetch = 0 : i64, scratch_operands = 0 : i64, tpu.core_type = #tpu.core_type<tc>, window_params = [{transform_indices = @transform_0, window_bounds = array<i64: 16, 32>}, {pipeline_mode = #tpu.pipeline_mode<synchronous>, transform_indices = @transform_1, window_bounds = array<i64: 2, 1, 32>}, {pipeline_mode = #tpu.pipeline_mode<synchronous>, transform_indices = @transform_2, window_bounds = array<i64: 2, 1, 32>}, {pipeline_mode = #tpu.pipeline_mode<synchronous>, transform_indices = @transform_3, window_bounds = array<i64: 2, 32, 1536>}, {pipeline_mode = #tpu.pipeline_mode<synchronous>, transform_indices = @transform_4, window_bounds = array<i64: 2, 1, 1536>}, {pipeline_mode = #tpu.pipeline_mode<synchronous>, transform_indices = @transform_5, window_bounds = array<i64: 2, 4, 8, 32>}, {pipeline_mode = #tpu.pipeline_mode<synchronous>, transform_indices = @transform_6, window_bounds = array<i64: 2, 1, 32>}, {pipeline_mode = #tpu.pipeline_mode<synchronous>, transform_indices = @transform_7, window_bounds = array<i64: 2, 1, 32>}, {pipeline_mode = #tpu.pipeline_mode<synchronous>, transform_indices = @transform_8, window_bounds = array<i64: 2, 1, 32>}, {pipeline_mode = #tpu.pipeline_mode<synchronous>, transform_indices = @transform_9, window_bounds = array<i64: 2, 32, 256>}, {pipeline_mode = #tpu.pipeline_mode<synchronous>, transform_indices = @transform_10, window_bounds = array<i64: 2, 1, 256>}, {pipeline_mode = #tpu.pipeline_mode<synchronous>, transform_indices = @transform_11, window_bounds = array<i64: 2, 128, 32>}, {pipeline_mode = #tpu.pipeline_mode<synchronous>, transform_indices = @transform_12, window_bounds = array<i64: 2, 1, 32>}, {transform_indices = @transform_13, window_bounds = array<i64: 16, 32>}]} {
    %c0 = arith.constant 0 : index
    %c0_0 = arith.constant 0 : index
    %0 = vector.load %arg1[%c0, %c0_0] : memref<16x32xf32, #tpu.memory_space<vmem>>, vector<16x32xf32>
    %c0_1 = arith.constant 0 : index
    %c0_2 = arith.constant 0 : index
    %c0_3 = arith.constant 0 : index
    %1 = vector.load %arg2[%c0_1, %c0_2, %c0_3] : memref<2x1x32xf32, #tpu.memory_space<vmem>>, vector<1x1x32xf32>
    %2 = vector.shape_cast %1 : vector<1x1x32xf32> to vector<1x32xf32>
    %c0_4 = arith.constant 0 : index
    %c0_5 = arith.constant 0 : index
    %c0_6 = arith.constant 0 : index
    %3 = vector.load %arg3[%c0_4, %c0_5, %c0_6] : memref<2x1x32xf32, #tpu.memory_space<vmem>>, vector<1x1x32xf32>
    %4 = vector.shape_cast %3 : vector<1x1x32xf32> to vector<1x32xf32>
    %cst = arith.constant dense<0.000000e+00> : vector<16xf32>
    %5 = vector.multi_reduction <add>, %0, %cst [1] : vector<16x32xf32> to vector<16xf32>
    %6 = vector.shape_cast %5 : vector<16xf32> to vector<16x1xf32>
    %cst_7 = arith.constant 3.200000e+01 : f32
    %7 = vector.broadcast %cst_7 : f32 to vector<16x1xf32>
    %8 = arith.divf %6, %7 : vector<16x1xf32>
    %9 = vector.broadcast %8 : vector<16x1xf32> to vector<16x32xf32>
    %10 = arith.subf %0, %9 : vector<16x32xf32>
    %11 = arith.mulf %10, %10 : vector<16x32xf32>
    %cst_8 = arith.constant dense<0.000000e+00> : vector<16xf32>
    %12 = vector.multi_reduction <add>, %11, %cst_8 [1] : vector<16x32xf32> to vector<16xf32>
    %13 = vector.shape_cast %12 : vector<16xf32> to vector<16x1xf32>
    %cst_9 = arith.constant 3.200000e+01 : f32
    %14 = vector.broadcast %cst_9 : f32 to vector<16x1xf32>
    %15 = arith.divf %13, %14 : vector<16x1xf32>
    %16 = vector.broadcast %8 : vector<16x1xf32> to vector<16x32xf32>
    %17 = arith.subf %0, %16 : vector<16x32xf32>
    %cst_10 = arith.constant 9.99999974E-6 : f32
    %18 = vector.broadcast %cst_10 : f32 to vector<16x1xf32>
    %19 = arith.addf %15, %18 : vector<16x1xf32>
    %20 = math.rsqrt %19 : vector<16x1xf32>
    %21 = vector.broadcast %20 : vector<16x1xf32> to vector<16x32xf32>
    %22 = arith.mulf %17, %21 : vector<16x32xf32>
    %23 = vector.broadcast %2 : vector<1x32xf32> to vector<16x32xf32>
    %24 = arith.mulf %22, %23 : vector<16x32xf32>
    %25 = vector.broadcast %4 : vector<1x32xf32> to vector<16x32xf32>
    %26 = arith.addf %24, %25 : vector<16x32xf32>
    %c0_11 = arith.constant 0 : index
    %c0_12 = arith.constant 0 : index
    %c0_13 = arith.constant 0 : index
    %27 = vector.load %arg4[%c0_11, %c0_12, %c0_13] : memref<2x32x1536xf32, #tpu.memory_space<vmem>>, vector<1x32x1536xf32>
    %28 = vector.shape_cast %27 : vector<1x32x1536xf32> to vector<32x1536xf32>
    %cst_14 = arith.constant dense<0.000000e+00> : vector<16x1536xf32>
    %29 = tpu.matmul %26, %28, %cst_14 {dimension_numbers = #tpu.dot_dimension_numbers<[1], [0], [0], [1], [0, 0, 1, 1], [], []>} : vector<16x32xf32>, vector<32x1536xf32>, vector<16x1536xf32> -> vector<16x1536xf32>
    %c0_15 = arith.constant 0 : index
    %c0_16 = arith.constant 0 : index
    %c0_17 = arith.constant 0 : index
    %30 = vector.load %arg5[%c0_15, %c0_16, %c0_17] : memref<2x1x1536xf32, #tpu.memory_space<vmem>>, vector<1x1x1536xf32>
    %31 = vector.shape_cast %30 : vector<1x1x1536xf32> to vector<1x1536xf32>
    %32 = vector.broadcast %31 : vector<1x1536xf32> to vector<16x1536xf32>
    %33 = arith.addf %29, %32 : vector<16x1536xf32>
    %cst_18 = arith.constant 0.000000e+00 : f32
    %34 = vector.broadcast %cst_18 : f32 to vector<8x32xf32>
    %35 = vector.extract_strided_slice %33 {offsets = [0, 0], sizes = [8, 8], strides = [1, 1]} : vector<16x1536xf32> to vector<8x8xf32>
    %36 = vector.extract_strided_slice %33 {offsets = [0, 512], sizes = [8, 8], strides = [1, 1]} : vector<16x1536xf32> to vector<8x8xf32>
    %37 = vector.extract_strided_slice %33 {offsets = [0, 1024], sizes = [8, 8], strides = [1, 1]} : vector<16x1536xf32> to vector<8x8xf32>
    %cst_19 = arith.constant dense<0.000000e+00> : vector<8x8xf32>
    %38 = tpu.matmul %35, %36, %cst_19 {dimension_numbers = #tpu.dot_dimension_numbers<[1], [1], [0], [0], [0, 0, 1, 0], [], []>} : vector<8x8xf32>, vector<8x8xf32>, vector<8x8xf32> -> vector<8x8xf32>
    %cst_20 = arith.constant dense<0xFF800000> : vector<8xf32>
    %39 = vector.multi_reduction <maximumf>, %38, %cst_20 [1] : vector<8x8xf32> to vector<8xf32>
    %40 = vector.shape_cast %39 : vector<8xf32> to vector<8x1xf32>
    %41 = vector.broadcast %40 : vector<8x1xf32> to vector<8x8xf32>
    %42 = arith.subf %38, %41 : vector<8x8xf32>
    %43 = math.exp %42 : vector<8x8xf32>
    %cst_21 = arith.constant dense<0.000000e+00> : vector<8xf32>
    %44 = vector.multi_reduction <add>, %43, %cst_21 [1] : vector<8x8xf32> to vector<8xf32>
    %45 = vector.shape_cast %44 : vector<8xf32> to vector<8x1xf32>
    %46 = vector.broadcast %45 : vector<8x1xf32> to vector<8x8xf32>
    %47 = arith.divf %43, %46 : vector<8x8xf32>
    %cst_22 = arith.constant dense<0.000000e+00> : vector<8x8xf32>
    %48 = tpu.matmul %47, %37, %cst_22 {dimension_numbers = #tpu.dot_dimension_numbers<[1], [0], [0], [1], [0, 0, 1, 1], [], []>} : vector<8x8xf32>, vector<8x8xf32>, vector<8x8xf32> -> vector<8x8xf32>
    %c0_23 = arith.constant 0 : index
    %c0_24 = arith.constant 0 : index
    %c0_25 = arith.constant 0 : index
    %c0_26 = arith.constant 0 : index
    %49 = vector.load %arg6[%c0_23, %c0_24, %c0_25, %c0_26] : memref<2x4x8x32xf32, #tpu.memory_space<vmem>>, vector<1x1x8x32xf32>
    %50 = vector.shape_cast %49 : vector<1x1x8x32xf32> to vector<8x32xf32>
    %cst_27 = arith.constant dense<0.000000e+00> : vector<8x32xf32>
    %51 = tpu.matmul %48, %50, %cst_27 {dimension_numbers = #tpu.dot_dimension_numbers<[1], [0], [0], [1], [0, 0, 1, 1], [], []>} : vector<8x8xf32>, vector<8x32xf32>, vector<8x32xf32> -> vector<8x32xf32>
    %52 = arith.addf %34, %51 : vector<8x32xf32>
    %53 = vector.extract_strided_slice %33 {offsets = [0, 128], sizes = [8, 8], strides = [1, 1]} : vector<16x1536xf32> to vector<8x8xf32>
    %54 = vector.extract_strided_slice %33 {offsets = [0, 640], sizes = [8, 8], strides = [1, 1]} : vector<16x1536xf32> to vector<8x8xf32>
    %55 = vector.extract_strided_slice %33 {offsets = [0, 1152], sizes = [8, 8], strides = [1, 1]} : vector<16x1536xf32> to vector<8x8xf32>
    %cst_28 = arith.constant dense<0.000000e+00> : vector<8x8xf32>
    %56 = tpu.matmul %53, %54, %cst_28 {dimension_numbers = #tpu.dot_dimension_numbers<[1], [1], [0], [0], [0, 0, 1, 0], [], []>} : vector<8x8xf32>, vector<8x8xf32>, vector<8x8xf32> -> vector<8x8xf32>
    %cst_29 = arith.constant dense<0xFF800000> : vector<8xf32>
    %57 = vector.multi_reduction <maximumf>, %56, %cst_29 [1] : vector<8x8xf32> to vector<8xf32>
    %58 = vector.shape_cast %57 : vector<8xf32> to vector<8x1xf32>
    %59 = vector.broadcast %58 : vector<8x1xf32> to vector<8x8xf32>
    %60 = arith.subf %56, %59 : vector<8x8xf32>
    %61 = math.exp %60 : vector<8x8xf32>
    %cst_30 = arith.constant dense<0.000000e+00> : vector<8xf32>
    %62 = vector.multi_reduction <add>, %61, %cst_30 [1] : vector<8x8xf32> to vector<8xf32>
    %63 = vector.shape_cast %62 : vector<8xf32> to vector<8x1xf32>
    %64 = vector.broadcast %63 : vector<8x1xf32> to vector<8x8xf32>
    %65 = arith.divf %61, %64 : vector<8x8xf32>
    %cst_31 = arith.constant dense<0.000000e+00> : vector<8x8xf32>
    %66 = tpu.matmul %65, %55, %cst_31 {dimension_numbers = #tpu.dot_dimension_numbers<[1], [0], [0], [1], [0, 0, 1, 1], [], []>} : vector<8x8xf32>, vector<8x8xf32>, vector<8x8xf32> -> vector<8x8xf32>
    %c0_32 = arith.constant 0 : index
    %c1 = arith.constant 1 : index
    %c0_33 = arith.constant 0 : index
    %c0_34 = arith.constant 0 : index
    %67 = vector.load %arg6[%c0_32, %c1, %c0_33, %c0_34] : memref<2x4x8x32xf32, #tpu.memory_space<vmem>>, vector<1x1x8x32xf32>
    %68 = vector.shape_cast %67 : vector<1x1x8x32xf32> to vector<8x32xf32>
    %cst_35 = arith.constant dense<0.000000e+00> : vector<8x32xf32>
    %69 = tpu.matmul %66, %68, %cst_35 {dimension_numbers = #tpu.dot_dimension_numbers<[1], [0], [0], [1], [0, 0, 1, 1], [], []>} : vector<8x8xf32>, vector<8x32xf32>, vector<8x32xf32> -> vector<8x32xf32>
    %70 = arith.addf %52, %69 : vector<8x32xf32>
    %71 = vector.extract_strided_slice %33 {offsets = [0, 256], sizes = [8, 8], strides = [1, 1]} : vector<16x1536xf32> to vector<8x8xf32>
    %72 = vector.extract_strided_slice %33 {offsets = [0, 768], sizes = [8, 8], strides = [1, 1]} : vector<16x1536xf32> to vector<8x8xf32>
    %73 = vector.extract_strided_slice %33 {offsets = [0, 1280], sizes = [8, 8], strides = [1, 1]} : vector<16x1536xf32> to vector<8x8xf32>
    %cst_36 = arith.constant dense<0.000000e+00> : vector<8x8xf32>
    %74 = tpu.matmul %71, %72, %cst_36 {dimension_numbers = #tpu.dot_dimension_numbers<[1], [1], [0], [0], [0, 0, 1, 0], [], []>} : vector<8x8xf32>, vector<8x8xf32>, vector<8x8xf32> -> vector<8x8xf32>
    %cst_37 = arith.constant dense<0xFF800000> : vector<8xf32>
    %75 = vector.multi_reduction <maximumf>, %74, %cst_37 [1] : vector<8x8xf32> to vector<8xf32>
    %76 = vector.shape_cast %75 : vector<8xf32> to vector<8x1xf32>
    %77 = vector.broadcast %76 : vector<8x1xf32> to vector<8x8xf32>
    %78 = arith.subf %74, %77 : vector<8x8xf32>
    %79 = math.exp %78 : vector<8x8xf32>
    %cst_38 = arith.constant dense<0.000000e+00> : vector<8xf32>
    %80 = vector.multi_reduction <add>, %79, %cst_38 [1] : vector<8x8xf32> to vector<8xf32>
    %81 = vector.shape_cast %80 : vector<8xf32> to vector<8x1xf32>
    %82 = vector.broadcast %81 : vector<8x1xf32> to vector<8x8xf32>
    %83 = arith.divf %79, %82 : vector<8x8xf32>
    %cst_39 = arith.constant dense<0.000000e+00> : vector<8x8xf32>
    %84 = tpu.matmul %83, %73, %cst_39 {dimension_numbers = #tpu.dot_dimension_numbers<[1], [0], [0], [1], [0, 0, 1, 1], [], []>} : vector<8x8xf32>, vector<8x8xf32>, vector<8x8xf32> -> vector<8x8xf32>
    %c0_40 = arith.constant 0 : index
    %c2 = arith.constant 2 : index
    %c0_41 = arith.constant 0 : index
    %c0_42 = arith.constant 0 : index
    %85 = vector.load %arg6[%c0_40, %c2, %c0_41, %c0_42] : memref<2x4x8x32xf32, #tpu.memory_space<vmem>>, vector<1x1x8x32xf32>
    %86 = vector.shape_cast %85 : vector<1x1x8x32xf32> to vector<8x32xf32>
    %cst_43 = arith.constant dense<0.000000e+00> : vector<8x32xf32>
    %87 = tpu.matmul %84, %86, %cst_43 {dimension_numbers = #tpu.dot_dimension_numbers<[1], [0], [0], [1], [0, 0, 1, 1], [], []>} : vector<8x8xf32>, vector<8x32xf32>, vector<8x32xf32> -> vector<8x32xf32>
    %88 = arith.addf %70, %87 : vector<8x32xf32>
    %89 = vector.extract_strided_slice %33 {offsets = [0, 384], sizes = [8, 8], strides = [1, 1]} : vector<16x1536xf32> to vector<8x8xf32>
    %90 = vector.extract_strided_slice %33 {offsets = [0, 896], sizes = [8, 8], strides = [1, 1]} : vector<16x1536xf32> to vector<8x8xf32>
    %91 = vector.extract_strided_slice %33 {offsets = [0, 1408], sizes = [8, 8], strides = [1, 1]} : vector<16x1536xf32> to vector<8x8xf32>
    %cst_44 = arith.constant dense<0.000000e+00> : vector<8x8xf32>
    %92 = tpu.matmul %89, %90, %cst_44 {dimension_numbers = #tpu.dot_dimension_numbers<[1], [1], [0], [0], [0, 0, 1, 0], [], []>} : vector<8x8xf32>, vector<8x8xf32>, vector<8x8xf32> -> vector<8x8xf32>
    %cst_45 = arith.constant dense<0xFF800000> : vector<8xf32>
    %93 = vector.multi_reduction <maximumf>, %92, %cst_45 [1] : vector<8x8xf32> to vector<8xf32>
    %94 = vector.shape_cast %93 : vector<8xf32> to vector<8x1xf32>
    %95 = vector.broadcast %94 : vector<8x1xf32> to vector<8x8xf32>
    %96 = arith.subf %92, %95 : vector<8x8xf32>
    %97 = math.exp %96 : vector<8x8xf32>
    %cst_46 = arith.constant dense<0.000000e+00> : vector<8xf32>
    %98 = vector.multi_reduction <add>, %97, %cst_46 [1] : vector<8x8xf32> to vector<8xf32>
    %99 = vector.shape_cast %98 : vector<8xf32> to vector<8x1xf32>
    %100 = vector.broadcast %99 : vector<8x1xf32> to vector<8x8xf32>
    %101 = arith.divf %97, %100 : vector<8x8xf32>
    %cst_47 = arith.constant dense<0.000000e+00> : vector<8x8xf32>
    %102 = tpu.matmul %101, %91, %cst_47 {dimension_numbers = #tpu.dot_dimension_numbers<[1], [0], [0], [1], [0, 0, 1, 1], [], []>} : vector<8x8xf32>, vector<8x8xf32>, vector<8x8xf32> -> vector<8x8xf32>
    %c0_48 = arith.constant 0 : index
    %c3 = arith.constant 3 : index
    %c0_49 = arith.constant 0 : index
    %c0_50 = arith.constant 0 : index
    %103 = vector.load %arg6[%c0_48, %c3, %c0_49, %c0_50] : memref<2x4x8x32xf32, #tpu.memory_space<vmem>>, vector<1x1x8x32xf32>
    %104 = vector.shape_cast %103 : vector<1x1x8x32xf32> to vector<8x32xf32>
    %cst_51 = arith.constant dense<0.000000e+00> : vector<8x32xf32>
    %105 = tpu.matmul %102, %104, %cst_51 {dimension_numbers = #tpu.dot_dimension_numbers<[1], [0], [0], [1], [0, 0, 1, 1], [], []>} : vector<8x8xf32>, vector<8x32xf32>, vector<8x32xf32> -> vector<8x32xf32>
    %106 = arith.addf %88, %105 : vector<8x32xf32>
    %cst_52 = arith.constant 0.000000e+00 : f32
    %107 = vector.broadcast %cst_52 : f32 to vector<8x32xf32>
    %108 = vector.extract_strided_slice %33 {offsets = [8, 0], sizes = [8, 8], strides = [1, 1]} : vector<16x1536xf32> to vector<8x8xf32>
    %109 = vector.extract_strided_slice %33 {offsets = [8, 512], sizes = [8, 8], strides = [1, 1]} : vector<16x1536xf32> to vector<8x8xf32>
    %110 = vector.extract_strided_slice %33 {offsets = [8, 1024], sizes = [8, 8], strides = [1, 1]} : vector<16x1536xf32> to vector<8x8xf32>
    %cst_53 = arith.constant dense<0.000000e+00> : vector<8x8xf32>
    %111 = tpu.matmul %108, %109, %cst_53 {dimension_numbers = #tpu.dot_dimension_numbers<[1], [1], [0], [0], [0, 0, 1, 0], [], []>} : vector<8x8xf32>, vector<8x8xf32>, vector<8x8xf32> -> vector<8x8xf32>
    %cst_54 = arith.constant dense<0xFF800000> : vector<8xf32>
    %112 = vector.multi_reduction <maximumf>, %111, %cst_54 [1] : vector<8x8xf32> to vector<8xf32>
    %113 = vector.shape_cast %112 : vector<8xf32> to vector<8x1xf32>
    %114 = vector.broadcast %113 : vector<8x1xf32> to vector<8x8xf32>
    %115 = arith.subf %111, %114 : vector<8x8xf32>
    %116 = math.exp %115 : vector<8x8xf32>
    %cst_55 = arith.constant dense<0.000000e+00> : vector<8xf32>
    %117 = vector.multi_reduction <add>, %116, %cst_55 [1] : vector<8x8xf32> to vector<8xf32>
    %118 = vector.shape_cast %117 : vector<8xf32> to vector<8x1xf32>
    %119 = vector.broadcast %118 : vector<8x1xf32> to vector<8x8xf32>
    %120 = arith.divf %116, %119 : vector<8x8xf32>
    %cst_56 = arith.constant dense<0.000000e+00> : vector<8x8xf32>
    %121 = tpu.matmul %120, %110, %cst_56 {dimension_numbers = #tpu.dot_dimension_numbers<[1], [0], [0], [1], [0, 0, 1, 1], [], []>} : vector<8x8xf32>, vector<8x8xf32>, vector<8x8xf32> -> vector<8x8xf32>
    %c0_57 = arith.constant 0 : index
    %c0_58 = arith.constant 0 : index
    %c0_59 = arith.constant 0 : index
    %c0_60 = arith.constant 0 : index
    %122 = vector.load %arg6[%c0_57, %c0_58, %c0_59, %c0_60] : memref<2x4x8x32xf32, #tpu.memory_space<vmem>>, vector<1x1x8x32xf32>
    %123 = vector.shape_cast %122 : vector<1x1x8x32xf32> to vector<8x32xf32>
    %cst_61 = arith.constant dense<0.000000e+00> : vector<8x32xf32>
    %124 = tpu.matmul %121, %123, %cst_61 {dimension_numbers = #tpu.dot_dimension_numbers<[1], [0], [0], [1], [0, 0, 1, 1], [], []>} : vector<8x8xf32>, vector<8x32xf32>, vector<8x32xf32> -> vector<8x32xf32>
    %125 = arith.addf %107, %124 : vector<8x32xf32>
    %126 = vector.extract_strided_slice %33 {offsets = [8, 128], sizes = [8, 8], strides = [1, 1]} : vector<16x1536xf32> to vector<8x8xf32>
    %127 = vector.extract_strided_slice %33 {offsets = [8, 640], sizes = [8, 8], strides = [1, 1]} : vector<16x1536xf32> to vector<8x8xf32>
    %128 = vector.extract_strided_slice %33 {offsets = [8, 1152], sizes = [8, 8], strides = [1, 1]} : vector<16x1536xf32> to vector<8x8xf32>
    %cst_62 = arith.constant dense<0.000000e+00> : vector<8x8xf32>
    %129 = tpu.matmul %126, %127, %cst_62 {dimension_numbers = #tpu.dot_dimension_numbers<[1], [1], [0], [0], [0, 0, 1, 0], [], []>} : vector<8x8xf32>, vector<8x8xf32>, vector<8x8xf32> -> vector<8x8xf32>
    %cst_63 = arith.constant dense<0xFF800000> : vector<8xf32>
    %130 = vector.multi_reduction <maximumf>, %129, %cst_63 [1] : vector<8x8xf32> to vector<8xf32>
    %131 = vector.shape_cast %130 : vector<8xf32> to vector<8x1xf32>
    %132 = vector.broadcast %131 : vector<8x1xf32> to vector<8x8xf32>
    %133 = arith.subf %129, %132 : vector<8x8xf32>
    %134 = math.exp %133 : vector<8x8xf32>
    %cst_64 = arith.constant dense<0.000000e+00> : vector<8xf32>
    %135 = vector.multi_reduction <add>, %134, %cst_64 [1] : vector<8x8xf32> to vector<8xf32>
    %136 = vector.shape_cast %135 : vector<8xf32> to vector<8x1xf32>
    %137 = vector.broadcast %136 : vector<8x1xf32> to vector<8x8xf32>
    %138 = arith.divf %134, %137 : vector<8x8xf32>
    %cst_65 = arith.constant dense<0.000000e+00> : vector<8x8xf32>
    %139 = tpu.matmul %138, %128, %cst_65 {dimension_numbers = #tpu.dot_dimension_numbers<[1], [0], [0], [1], [0, 0, 1, 1], [], []>} : vector<8x8xf32>, vector<8x8xf32>, vector<8x8xf32> -> vector<8x8xf32>
    %c0_66 = arith.constant 0 : index
    %c1_67 = arith.constant 1 : index
    %c0_68 = arith.constant 0 : index
    %c0_69 = arith.constant 0 : index
    %140 = vector.load %arg6[%c0_66, %c1_67, %c0_68, %c0_69] : memref<2x4x8x32xf32, #tpu.memory_space<vmem>>, vector<1x1x8x32xf32>
    %141 = vector.shape_cast %140 : vector<1x1x8x32xf32> to vector<8x32xf32>
    %cst_70 = arith.constant dense<0.000000e+00> : vector<8x32xf32>
    %142 = tpu.matmul %139, %141, %cst_70 {dimension_numbers = #tpu.dot_dimension_numbers<[1], [0], [0], [1], [0, 0, 1, 1], [], []>} : vector<8x8xf32>, vector<8x32xf32>, vector<8x32xf32> -> vector<8x32xf32>
    %143 = arith.addf %125, %142 : vector<8x32xf32>
    %144 = vector.extract_strided_slice %33 {offsets = [8, 256], sizes = [8, 8], strides = [1, 1]} : vector<16x1536xf32> to vector<8x8xf32>
    %145 = vector.extract_strided_slice %33 {offsets = [8, 768], sizes = [8, 8], strides = [1, 1]} : vector<16x1536xf32> to vector<8x8xf32>
    %146 = vector.extract_strided_slice %33 {offsets = [8, 1280], sizes = [8, 8], strides = [1, 1]} : vector<16x1536xf32> to vector<8x8xf32>
    %cst_71 = arith.constant dense<0.000000e+00> : vector<8x8xf32>
    %147 = tpu.matmul %144, %145, %cst_71 {dimension_numbers = #tpu.dot_dimension_numbers<[1], [1], [0], [0], [0, 0, 1, 0], [], []>} : vector<8x8xf32>, vector<8x8xf32>, vector<8x8xf32> -> vector<8x8xf32>
    %cst_72 = arith.constant dense<0xFF800000> : vector<8xf32>
    %148 = vector.multi_reduction <maximumf>, %147, %cst_72 [1] : vector<8x8xf32> to vector<8xf32>
    %149 = vector.shape_cast %148 : vector<8xf32> to vector<8x1xf32>
    %150 = vector.broadcast %149 : vector<8x1xf32> to vector<8x8xf32>
    %151 = arith.subf %147, %150 : vector<8x8xf32>
    %152 = math.exp %151 : vector<8x8xf32>
    %cst_73 = arith.constant dense<0.000000e+00> : vector<8xf32>
    %153 = vector.multi_reduction <add>, %152, %cst_73 [1] : vector<8x8xf32> to vector<8xf32>
    %154 = vector.shape_cast %153 : vector<8xf32> to vector<8x1xf32>
    %155 = vector.broadcast %154 : vector<8x1xf32> to vector<8x8xf32>
    %156 = arith.divf %152, %155 : vector<8x8xf32>
    %cst_74 = arith.constant dense<0.000000e+00> : vector<8x8xf32>
    %157 = tpu.matmul %156, %146, %cst_74 {dimension_numbers = #tpu.dot_dimension_numbers<[1], [0], [0], [1], [0, 0, 1, 1], [], []>} : vector<8x8xf32>, vector<8x8xf32>, vector<8x8xf32> -> vector<8x8xf32>
    %c0_75 = arith.constant 0 : index
    %c2_76 = arith.constant 2 : index
    %c0_77 = arith.constant 0 : index
    %c0_78 = arith.constant 0 : index
    %158 = vector.load %arg6[%c0_75, %c2_76, %c0_77, %c0_78] : memref<2x4x8x32xf32, #tpu.memory_space<vmem>>, vector<1x1x8x32xf32>
    %159 = vector.shape_cast %158 : vector<1x1x8x32xf32> to vector<8x32xf32>
    %cst_79 = arith.constant dense<0.000000e+00> : vector<8x32xf32>
    %160 = tpu.matmul %157, %159, %cst_79 {dimension_numbers = #tpu.dot_dimension_numbers<[1], [0], [0], [1], [0, 0, 1, 1], [], []>} : vector<8x8xf32>, vector<8x32xf32>, vector<8x32xf32> -> vector<8x32xf32>
    %161 = arith.addf %143, %160 : vector<8x32xf32>
    %162 = vector.extract_strided_slice %33 {offsets = [8, 384], sizes = [8, 8], strides = [1, 1]} : vector<16x1536xf32> to vector<8x8xf32>
    %163 = vector.extract_strided_slice %33 {offsets = [8, 896], sizes = [8, 8], strides = [1, 1]} : vector<16x1536xf32> to vector<8x8xf32>
    %164 = vector.extract_strided_slice %33 {offsets = [8, 1408], sizes = [8, 8], strides = [1, 1]} : vector<16x1536xf32> to vector<8x8xf32>
    %cst_80 = arith.constant dense<0.000000e+00> : vector<8x8xf32>
    %165 = tpu.matmul %162, %163, %cst_80 {dimension_numbers = #tpu.dot_dimension_numbers<[1], [1], [0], [0], [0, 0, 1, 0], [], []>} : vector<8x8xf32>, vector<8x8xf32>, vector<8x8xf32> -> vector<8x8xf32>
    %cst_81 = arith.constant dense<0xFF800000> : vector<8xf32>
    %166 = vector.multi_reduction <maximumf>, %165, %cst_81 [1] : vector<8x8xf32> to vector<8xf32>
    %167 = vector.shape_cast %166 : vector<8xf32> to vector<8x1xf32>
    %168 = vector.broadcast %167 : vector<8x1xf32> to vector<8x8xf32>
    %169 = arith.subf %165, %168 : vector<8x8xf32>
    %170 = math.exp %169 : vector<8x8xf32>
    %cst_82 = arith.constant dense<0.000000e+00> : vector<8xf32>
    %171 = vector.multi_reduction <add>, %170, %cst_82 [1] : vector<8x8xf32> to vector<8xf32>
    %172 = vector.shape_cast %171 : vector<8xf32> to vector<8x1xf32>
    %173 = vector.broadcast %172 : vector<8x1xf32> to vector<8x8xf32>
    %174 = arith.divf %170, %173 : vector<8x8xf32>
    %cst_83 = arith.constant dense<0.000000e+00> : vector<8x8xf32>
    %175 = tpu.matmul %174, %164, %cst_83 {dimension_numbers = #tpu.dot_dimension_numbers<[1], [0], [0], [1], [0, 0, 1, 1], [], []>} : vector<8x8xf32>, vector<8x8xf32>, vector<8x8xf32> -> vector<8x8xf32>
    %c0_84 = arith.constant 0 : index
    %c3_85 = arith.constant 3 : index
    %c0_86 = arith.constant 0 : index
    %c0_87 = arith.constant 0 : index
    %176 = vector.load %arg6[%c0_84, %c3_85, %c0_86, %c0_87] : memref<2x4x8x32xf32, #tpu.memory_space<vmem>>, vector<1x1x8x32xf32>
    %177 = vector.shape_cast %176 : vector<1x1x8x32xf32> to vector<8x32xf32>
    %cst_88 = arith.constant dense<0.000000e+00> : vector<8x32xf32>
    %178 = tpu.matmul %175, %177, %cst_88 {dimension_numbers = #tpu.dot_dimension_numbers<[1], [0], [0], [1], [0, 0, 1, 1], [], []>} : vector<8x8xf32>, vector<8x32xf32>, vector<8x32xf32> -> vector<8x32xf32>
    %179 = arith.addf %161, %178 : vector<8x32xf32>
    %180 = tpu.concatenate %106, %179 in 0 : vector<8x32xf32>, vector<8x32xf32> -> vector<16x32xf32>
    %c0_89 = arith.constant 0 : index
    %c0_90 = arith.constant 0 : index
    %c0_91 = arith.constant 0 : index
    %181 = vector.load %arg7[%c0_89, %c0_90, %c0_91] : memref<2x1x32xf32, #tpu.memory_space<vmem>>, vector<1x1x32xf32>
    %182 = vector.shape_cast %181 : vector<1x1x32xf32> to vector<1x32xf32>
    %183 = vector.broadcast %182 : vector<1x32xf32> to vector<16x32xf32>
    %184 = arith.addf %180, %183 : vector<16x32xf32>
    %185 = arith.addf %184, %0 : vector<16x32xf32>
    %c0_92 = arith.constant 0 : index
    %c0_93 = arith.constant 0 : index
    %c0_94 = arith.constant 0 : index
    %186 = vector.load %arg8[%c0_92, %c0_93, %c0_94] : memref<2x1x32xf32, #tpu.memory_space<vmem>>, vector<1x1x32xf32>
    %187 = vector.shape_cast %186 : vector<1x1x32xf32> to vector<1x32xf32>
    %c0_95 = arith.constant 0 : index
    %c0_96 = arith.constant 0 : index
    %c0_97 = arith.constant 0 : index
    %188 = vector.load %arg9[%c0_95, %c0_96, %c0_97] : memref<2x1x32xf32, #tpu.memory_space<vmem>>, vector<1x1x32xf32>
    %189 = vector.shape_cast %188 : vector<1x1x32xf32> to vector<1x32xf32>
    %cst_98 = arith.constant dense<0.000000e+00> : vector<16xf32>
    %190 = vector.multi_reduction <add>, %185, %cst_98 [1] : vector<16x32xf32> to vector<16xf32>
    %191 = vector.shape_cast %190 : vector<16xf32> to vector<16x1xf32>
    %cst_99 = arith.constant 3.200000e+01 : f32
    %192 = vector.broadcast %cst_99 : f32 to vector<16x1xf32>
    %193 = arith.divf %191, %192 : vector<16x1xf32>
    %194 = vector.broadcast %193 : vector<16x1xf32> to vector<16x32xf32>
    %195 = arith.subf %185, %194 : vector<16x32xf32>
    %196 = arith.mulf %195, %195 : vector<16x32xf32>
    %cst_100 = arith.constant dense<0.000000e+00> : vector<16xf32>
    %197 = vector.multi_reduction <add>, %196, %cst_100 [1] : vector<16x32xf32> to vector<16xf32>
    %198 = vector.shape_cast %197 : vector<16xf32> to vector<16x1xf32>
    %cst_101 = arith.constant 3.200000e+01 : f32
    %199 = vector.broadcast %cst_101 : f32 to vector<16x1xf32>
    %200 = arith.divf %198, %199 : vector<16x1xf32>
    %201 = vector.broadcast %193 : vector<16x1xf32> to vector<16x32xf32>
    %202 = arith.subf %185, %201 : vector<16x32xf32>
    %cst_102 = arith.constant 9.99999974E-6 : f32
    %203 = vector.broadcast %cst_102 : f32 to vector<16x1xf32>
    %204 = arith.addf %200, %203 : vector<16x1xf32>
    %205 = math.rsqrt %204 : vector<16x1xf32>
    %206 = vector.broadcast %205 : vector<16x1xf32> to vector<16x32xf32>
    %207 = arith.mulf %202, %206 : vector<16x32xf32>
    %208 = vector.broadcast %187 : vector<1x32xf32> to vector<16x32xf32>
    %209 = arith.mulf %207, %208 : vector<16x32xf32>
    %210 = vector.broadcast %189 : vector<1x32xf32> to vector<16x32xf32>
    %211 = arith.addf %209, %210 : vector<16x32xf32>
    %c0_103 = arith.constant 0 : index
    %c0_104 = arith.constant 0 : index
    %c0_105 = arith.constant 0 : index
    %212 = vector.load %arg10[%c0_103, %c0_104, %c0_105] : memref<2x32x256xf32, #tpu.memory_space<vmem>>, vector<1x32x256xf32>
    %213 = vector.shape_cast %212 : vector<1x32x256xf32> to vector<32x256xf32>
    %cst_106 = arith.constant dense<0.000000e+00> : vector<16x256xf32>
    %214 = tpu.matmul %211, %213, %cst_106 {dimension_numbers = #tpu.dot_dimension_numbers<[1], [0], [0], [1], [0, 0, 1, 1], [], []>} : vector<16x32xf32>, vector<32x256xf32>, vector<16x256xf32> -> vector<16x256xf32>
    %c0_107 = arith.constant 0 : index
    %c0_108 = arith.constant 0 : index
    %c0_109 = arith.constant 0 : index
    %215 = vector.load %arg11[%c0_107, %c0_108, %c0_109] : memref<2x1x256xf32, #tpu.memory_space<vmem>>, vector<1x1x256xf32>
    %216 = vector.shape_cast %215 : vector<1x1x256xf32> to vector<1x256xf32>
    %217 = vector.broadcast %216 : vector<1x256xf32> to vector<16x256xf32>
    %218 = arith.addf %214, %217 : vector<16x256xf32>
    %219 = vector.extract_strided_slice %218 {offsets = [0, 0], sizes = [16, 128], strides = [1, 1]} : vector<16x256xf32> to vector<16x128xf32>
    %220 = vector.extract_strided_slice %218 {offsets = [0, 128], sizes = [16, 128], strides = [1, 1]} : vector<16x256xf32> to vector<16x128xf32>
    %cst_110 = arith.constant 5.000000e-01 : f32
    %221 = vector.broadcast %cst_110 : f32 to vector<16x128xf32>
    %222 = arith.mulf %221, %220 : vector<16x128xf32>
    %cst_111 = arith.constant 0.707106769 : f32
    %223 = vector.broadcast %cst_111 : f32 to vector<16x128xf32>
    %224 = arith.mulf %220, %223 : vector<16x128xf32>
    %225 = math.erf %224 : vector<16x128xf32>
    %cst_112 = arith.constant 1.000000e+00 : f32
    %226 = vector.broadcast %cst_112 : f32 to vector<16x128xf32>
    %227 = arith.addf %226, %225 : vector<16x128xf32>
    %228 = arith.mulf %222, %227 : vector<16x128xf32>
    %229 = arith.mulf %219, %228 : vector<16x128xf32>
    %c0_113 = arith.constant 0 : index
    %c0_114 = arith.constant 0 : index
    %c0_115 = arith.constant 0 : index
    %230 = vector.load %arg12[%c0_113, %c0_114, %c0_115] : memref<2x128x32xf32, #tpu.memory_space<vmem>>, vector<1x128x32xf32>
    %231 = vector.shape_cast %230 : vector<1x128x32xf32> to vector<128x32xf32>
    %cst_116 = arith.constant dense<0.000000e+00> : vector<16x32xf32>
    %232 = tpu.matmul %229, %231, %cst_116 {dimension_numbers = #tpu.dot_dimension_numbers<[1], [0], [0], [1], [0, 0, 1, 1], [], []>} : vector<16x128xf32>, vector<128x32xf32>, vector<16x32xf32> -> vector<16x32xf32>
    %c0_117 = arith.constant 0 : index
    %c0_118 = arith.constant 0 : index
    %c0_119 = arith.constant 0 : index
    %233 = vector.load %arg13[%c0_117, %c0_118, %c0_119] : memref<2x1x32xf32, #tpu.memory_space<vmem>>, vector<1x1x32xf32>
    %234 = vector.shape_cast %233 : vector<1x1x32xf32> to vector<1x32xf32>
    %235 = vector.broadcast %234 : vector<1x32xf32> to vector<16x32xf32>
    %236 = arith.addf %232, %235 : vector<16x32xf32>
    %237 = arith.addf %236, %185 : vector<16x32xf32>
    %c1_120 = arith.constant 1 : index
    %c0_121 = arith.constant 0 : index
    %c0_122 = arith.constant 0 : index
    %238 = vector.load %arg2[%c1_120, %c0_121, %c0_122] : memref<2x1x32xf32, #tpu.memory_space<vmem>>, vector<1x1x32xf32>
    %239 = vector.shape_cast %238 : vector<1x1x32xf32> to vector<1x32xf32>
    %c1_123 = arith.constant 1 : index
    %c0_124 = arith.constant 0 : index
    %c0_125 = arith.constant 0 : index
    %240 = vector.load %arg3[%c1_123, %c0_124, %c0_125] : memref<2x1x32xf32, #tpu.memory_space<vmem>>, vector<1x1x32xf32>
    %241 = vector.shape_cast %240 : vector<1x1x32xf32> to vector<1x32xf32>
    %cst_126 = arith.constant dense<0.000000e+00> : vector<16xf32>
    %242 = vector.multi_reduction <add>, %237, %cst_126 [1] : vector<16x32xf32> to vector<16xf32>
    %243 = vector.shape_cast %242 : vector<16xf32> to vector<16x1xf32>
    %cst_127 = arith.constant 3.200000e+01 : f32
    %244 = vector.broadcast %cst_127 : f32 to vector<16x1xf32>
    %245 = arith.divf %243, %244 : vector<16x1xf32>
    %246 = vector.broadcast %245 : vector<16x1xf32> to vector<16x32xf32>
    %247 = arith.subf %237, %246 : vector<16x32xf32>
    %248 = arith.mulf %247, %247 : vector<16x32xf32>
    %cst_128 = arith.constant dense<0.000000e+00> : vector<16xf32>
    %249 = vector.multi_reduction <add>, %248, %cst_128 [1] : vector<16x32xf32> to vector<16xf32>
    %250 = vector.shape_cast %249 : vector<16xf32> to vector<16x1xf32>
    %cst_129 = arith.constant 3.200000e+01 : f32
    %251 = vector.broadcast %cst_129 : f32 to vector<16x1xf32>
    %252 = arith.divf %250, %251 : vector<16x1xf32>
    %253 = vector.broadcast %245 : vector<16x1xf32> to vector<16x32xf32>
    %254 = arith.subf %237, %253 : vector<16x32xf32>
    %cst_130 = arith.constant 9.99999974E-6 : f32
    %255 = vector.broadcast %cst_130 : f32 to vector<16x1xf32>
    %256 = arith.addf %252, %255 : vector<16x1xf32>
    %257 = math.rsqrt %256 : vector<16x1xf32>
    %258 = vector.broadcast %257 : vector<16x1xf32> to vector<16x32xf32>
    %259 = arith.mulf %254, %258 : vector<16x32xf32>
    %260 = vector.broadcast %239 : vector<1x32xf32> to vector<16x32xf32>
    %261 = arith.mulf %259, %260 : vector<16x32xf32>
    %262 = vector.broadcast %241 : vector<1x32xf32> to vector<16x32xf32>
    %263 = arith.addf %261, %262 : vector<16x32xf32>
    %c1_131 = arith.constant 1 : index
    %c0_132 = arith.constant 0 : index
    %c0_133 = arith.constant 0 : index
    %264 = vector.load %arg4[%c1_131, %c0_132, %c0_133] : memref<2x32x1536xf32, #tpu.memory_space<vmem>>, vector<1x32x1536xf32>
    %265 = vector.shape_cast %264 : vector<1x32x1536xf32> to vector<32x1536xf32>
    %cst_134 = arith.constant dense<0.000000e+00> : vector<16x1536xf32>
    %266 = tpu.matmul %263, %265, %cst_134 {dimension_numbers = #tpu.dot_dimension_numbers<[1], [0], [0], [1], [0, 0, 1, 1], [], []>} : vector<16x32xf32>, vector<32x1536xf32>, vector<16x1536xf32> -> vector<16x1536xf32>
    %c1_135 = arith.constant 1 : index
    %c0_136 = arith.constant 0 : index
    %c0_137 = arith.constant 0 : index
    %267 = vector.load %arg5[%c1_135, %c0_136, %c0_137] : memref<2x1x1536xf32, #tpu.memory_space<vmem>>, vector<1x1x1536xf32>
    %268 = vector.shape_cast %267 : vector<1x1x1536xf32> to vector<1x1536xf32>
    %269 = vector.broadcast %268 : vector<1x1536xf32> to vector<16x1536xf32>
    %270 = arith.addf %266, %269 : vector<16x1536xf32>
    %cst_138 = arith.constant 0.000000e+00 : f32
    %271 = vector.broadcast %cst_138 : f32 to vector<8x32xf32>
    %272 = vector.extract_strided_slice %270 {offsets = [0, 0], sizes = [8, 8], strides = [1, 1]} : vector<16x1536xf32> to vector<8x8xf32>
    %273 = vector.extract_strided_slice %270 {offsets = [0, 512], sizes = [8, 8], strides = [1, 1]} : vector<16x1536xf32> to vector<8x8xf32>
    %274 = vector.extract_strided_slice %270 {offsets = [0, 1024], sizes = [8, 8], strides = [1, 1]} : vector<16x1536xf32> to vector<8x8xf32>
    %cst_139 = arith.constant dense<0.000000e+00> : vector<8x8xf32>
    %275 = tpu.matmul %272, %273, %cst_139 {dimension_numbers = #tpu.dot_dimension_numbers<[1], [1], [0], [0], [0, 0, 1, 0], [], []>} : vector<8x8xf32>, vector<8x8xf32>, vector<8x8xf32> -> vector<8x8xf32>
    %cst_140 = arith.constant dense<0xFF800000> : vector<8xf32>
    %276 = vector.multi_reduction <maximumf>, %275, %cst_140 [1] : vector<8x8xf32> to vector<8xf32>
    %277 = vector.shape_cast %276 : vector<8xf32> to vector<8x1xf32>
    %278 = vector.broadcast %277 : vector<8x1xf32> to vector<8x8xf32>
    %279 = arith.subf %275, %278 : vector<8x8xf32>
    %280 = math.exp %279 : vector<8x8xf32>
    %cst_141 = arith.constant dense<0.000000e+00> : vector<8xf32>
    %281 = vector.multi_reduction <add>, %280, %cst_141 [1] : vector<8x8xf32> to vector<8xf32>
    %282 = vector.shape_cast %281 : vector<8xf32> to vector<8x1xf32>
    %283 = vector.broadcast %282 : vector<8x1xf32> to vector<8x8xf32>
    %284 = arith.divf %280, %283 : vector<8x8xf32>
    %cst_142 = arith.constant dense<0.000000e+00> : vector<8x8xf32>
    %285 = tpu.matmul %284, %274, %cst_142 {dimension_numbers = #tpu.dot_dimension_numbers<[1], [0], [0], [1], [0, 0, 1, 1], [], []>} : vector<8x8xf32>, vector<8x8xf32>, vector<8x8xf32> -> vector<8x8xf32>
    %c1_143 = arith.constant 1 : index
    %c0_144 = arith.constant 0 : index
    %c0_145 = arith.constant 0 : index
    %c0_146 = arith.constant 0 : index
    %286 = vector.load %arg6[%c1_143, %c0_144, %c0_145, %c0_146] : memref<2x4x8x32xf32, #tpu.memory_space<vmem>>, vector<1x1x8x32xf32>
    %287 = vector.shape_cast %286 : vector<1x1x8x32xf32> to vector<8x32xf32>
    %cst_147 = arith.constant dense<0.000000e+00> : vector<8x32xf32>
    %288 = tpu.matmul %285, %287, %cst_147 {dimension_numbers = #tpu.dot_dimension_numbers<[1], [0], [0], [1], [0, 0, 1, 1], [], []>} : vector<8x8xf32>, vector<8x32xf32>, vector<8x32xf32> -> vector<8x32xf32>
    %289 = arith.addf %271, %288 : vector<8x32xf32>
    %290 = vector.extract_strided_slice %270 {offsets = [0, 128], sizes = [8, 8], strides = [1, 1]} : vector<16x1536xf32> to vector<8x8xf32>
    %291 = vector.extract_strided_slice %270 {offsets = [0, 640], sizes = [8, 8], strides = [1, 1]} : vector<16x1536xf32> to vector<8x8xf32>
    %292 = vector.extract_strided_slice %270 {offsets = [0, 1152], sizes = [8, 8], strides = [1, 1]} : vector<16x1536xf32> to vector<8x8xf32>
    %cst_148 = arith.constant dense<0.000000e+00> : vector<8x8xf32>
    %293 = tpu.matmul %290, %291, %cst_148 {dimension_numbers = #tpu.dot_dimension_numbers<[1], [1], [0], [0], [0, 0, 1, 0], [], []>} : vector<8x8xf32>, vector<8x8xf32>, vector<8x8xf32> -> vector<8x8xf32>
    %cst_149 = arith.constant dense<0xFF800000> : vector<8xf32>
    %294 = vector.multi_reduction <maximumf>, %293, %cst_149 [1] : vector<8x8xf32> to vector<8xf32>
    %295 = vector.shape_cast %294 : vector<8xf32> to vector<8x1xf32>
    %296 = vector.broadcast %295 : vector<8x1xf32> to vector<8x8xf32>
    %297 = arith.subf %293, %296 : vector<8x8xf32>
    %298 = math.exp %297 : vector<8x8xf32>
    %cst_150 = arith.constant dense<0.000000e+00> : vector<8xf32>
    %299 = vector.multi_reduction <add>, %298, %cst_150 [1] : vector<8x8xf32> to vector<8xf32>
    %300 = vector.shape_cast %299 : vector<8xf32> to vector<8x1xf32>
    %301 = vector.broadcast %300 : vector<8x1xf32> to vector<8x8xf32>
    %302 = arith.divf %298, %301 : vector<8x8xf32>
    %cst_151 = arith.constant dense<0.000000e+00> : vector<8x8xf32>
    %303 = tpu.matmul %302, %292, %cst_151 {dimension_numbers = #tpu.dot_dimension_numbers<[1], [0], [0], [1], [0, 0, 1, 1], [], []>} : vector<8x8xf32>, vector<8x8xf32>, vector<8x8xf32> -> vector<8x8xf32>
    %c1_152 = arith.constant 1 : index
    %c1_153 = arith.constant 1 : index
    %c0_154 = arith.constant 0 : index
    %c0_155 = arith.constant 0 : index
    %304 = vector.load %arg6[%c1_152, %c1_153, %c0_154, %c0_155] : memref<2x4x8x32xf32, #tpu.memory_space<vmem>>, vector<1x1x8x32xf32>
    %305 = vector.shape_cast %304 : vector<1x1x8x32xf32> to vector<8x32xf32>
    %cst_156 = arith.constant dense<0.000000e+00> : vector<8x32xf32>
    %306 = tpu.matmul %303, %305, %cst_156 {dimension_numbers = #tpu.dot_dimension_numbers<[1], [0], [0], [1], [0, 0, 1, 1], [], []>} : vector<8x8xf32>, vector<8x32xf32>, vector<8x32xf32> -> vector<8x32xf32>
    %307 = arith.addf %289, %306 : vector<8x32xf32>
    %308 = vector.extract_strided_slice %270 {offsets = [0, 256], sizes = [8, 8], strides = [1, 1]} : vector<16x1536xf32> to vector<8x8xf32>
    %309 = vector.extract_strided_slice %270 {offsets = [0, 768], sizes = [8, 8], strides = [1, 1]} : vector<16x1536xf32> to vector<8x8xf32>
    %310 = vector.extract_strided_slice %270 {offsets = [0, 1280], sizes = [8, 8], strides = [1, 1]} : vector<16x1536xf32> to vector<8x8xf32>
    %cst_157 = arith.constant dense<0.000000e+00> : vector<8x8xf32>
    %311 = tpu.matmul %308, %309, %cst_157 {dimension_numbers = #tpu.dot_dimension_numbers<[1], [1], [0], [0], [0, 0, 1, 0], [], []>} : vector<8x8xf32>, vector<8x8xf32>, vector<8x8xf32> -> vector<8x8xf32>
    %cst_158 = arith.constant dense<0xFF800000> : vector<8xf32>
    %312 = vector.multi_reduction <maximumf>, %311, %cst_158 [1] : vector<8x8xf32> to vector<8xf32>
    %313 = vector.shape_cast %312 : vector<8xf32> to vector<8x1xf32>
    %314 = vector.broadcast %313 : vector<8x1xf32> to vector<8x8xf32>
    %315 = arith.subf %311, %314 : vector<8x8xf32>
    %316 = math.exp %315 : vector<8x8xf32>
    %cst_159 = arith.constant dense<0.000000e+00> : vector<8xf32>
    %317 = vector.multi_reduction <add>, %316, %cst_159 [1] : vector<8x8xf32> to vector<8xf32>
    %318 = vector.shape_cast %317 : vector<8xf32> to vector<8x1xf32>
    %319 = vector.broadcast %318 : vector<8x1xf32> to vector<8x8xf32>
    %320 = arith.divf %316, %319 : vector<8x8xf32>
    %cst_160 = arith.constant dense<0.000000e+00> : vector<8x8xf32>
    %321 = tpu.matmul %320, %310, %cst_160 {dimension_numbers = #tpu.dot_dimension_numbers<[1], [0], [0], [1], [0, 0, 1, 1], [], []>} : vector<8x8xf32>, vector<8x8xf32>, vector<8x8xf32> -> vector<8x8xf32>
    %c1_161 = arith.constant 1 : index
    %c2_162 = arith.constant 2 : index
    %c0_163 = arith.constant 0 : index
    %c0_164 = arith.constant 0 : index
    %322 = vector.load %arg6[%c1_161, %c2_162, %c0_163, %c0_164] : memref<2x4x8x32xf32, #tpu.memory_space<vmem>>, vector<1x1x8x32xf32>
    %323 = vector.shape_cast %322 : vector<1x1x8x32xf32> to vector<8x32xf32>
    %cst_165 = arith.constant dense<0.000000e+00> : vector<8x32xf32>
    %324 = tpu.matmul %321, %323, %cst_165 {dimension_numbers = #tpu.dot_dimension_numbers<[1], [0], [0], [1], [0, 0, 1, 1], [], []>} : vector<8x8xf32>, vector<8x32xf32>, vector<8x32xf32> -> vector<8x32xf32>
    %325 = arith.addf %307, %324 : vector<8x32xf32>
    %326 = vector.extract_strided_slice %270 {offsets = [0, 384], sizes = [8, 8], strides = [1, 1]} : vector<16x1536xf32> to vector<8x8xf32>
    %327 = vector.extract_strided_slice %270 {offsets = [0, 896], sizes = [8, 8], strides = [1, 1]} : vector<16x1536xf32> to vector<8x8xf32>
    %328 = vector.extract_strided_slice %270 {offsets = [0, 1408], sizes = [8, 8], strides = [1, 1]} : vector<16x1536xf32> to vector<8x8xf32>
    %cst_166 = arith.constant dense<0.000000e+00> : vector<8x8xf32>
    %329 = tpu.matmul %326, %327, %cst_166 {dimension_numbers = #tpu.dot_dimension_numbers<[1], [1], [0], [0], [0, 0, 1, 0], [], []>} : vector<8x8xf32>, vector<8x8xf32>, vector<8x8xf32> -> vector<8x8xf32>
    %cst_167 = arith.constant dense<0xFF800000> : vector<8xf32>
    %330 = vector.multi_reduction <maximumf>, %329, %cst_167 [1] : vector<8x8xf32> to vector<8xf32>
    %331 = vector.shape_cast %330 : vector<8xf32> to vector<8x1xf32>
    %332 = vector.broadcast %331 : vector<8x1xf32> to vector<8x8xf32>
    %333 = arith.subf %329, %332 : vector<8x8xf32>
    %334 = math.exp %333 : vector<8x8xf32>
    %cst_168 = arith.constant dense<0.000000e+00> : vector<8xf32>
    %335 = vector.multi_reduction <add>, %334, %cst_168 [1] : vector<8x8xf32> to vector<8xf32>
    %336 = vector.shape_cast %335 : vector<8xf32> to vector<8x1xf32>
    %337 = vector.broadcast %336 : vector<8x1xf32> to vector<8x8xf32>
    %338 = arith.divf %334, %337 : vector<8x8xf32>
    %cst_169 = arith.constant dense<0.000000e+00> : vector<8x8xf32>
    %339 = tpu.matmul %338, %328, %cst_169 {dimension_numbers = #tpu.dot_dimension_numbers<[1], [0], [0], [1], [0, 0, 1, 1], [], []>} : vector<8x8xf32>, vector<8x8xf32>, vector<8x8xf32> -> vector<8x8xf32>
    %c1_170 = arith.constant 1 : index
    %c3_171 = arith.constant 3 : index
    %c0_172 = arith.constant 0 : index
    %c0_173 = arith.constant 0 : index
    %340 = vector.load %arg6[%c1_170, %c3_171, %c0_172, %c0_173] : memref<2x4x8x32xf32, #tpu.memory_space<vmem>>, vector<1x1x8x32xf32>
    %341 = vector.shape_cast %340 : vector<1x1x8x32xf32> to vector<8x32xf32>
    %cst_174 = arith.constant dense<0.000000e+00> : vector<8x32xf32>
    %342 = tpu.matmul %339, %341, %cst_174 {dimension_numbers = #tpu.dot_dimension_numbers<[1], [0], [0], [1], [0, 0, 1, 1], [], []>} : vector<8x8xf32>, vector<8x32xf32>, vector<8x32xf32> -> vector<8x32xf32>
    %343 = arith.addf %325, %342 : vector<8x32xf32>
    %cst_175 = arith.constant 0.000000e+00 : f32
    %344 = vector.broadcast %cst_175 : f32 to vector<8x32xf32>
    %345 = vector.extract_strided_slice %270 {offsets = [8, 0], sizes = [8, 8], strides = [1, 1]} : vector<16x1536xf32> to vector<8x8xf32>
    %346 = vector.extract_strided_slice %270 {offsets = [8, 512], sizes = [8, 8], strides = [1, 1]} : vector<16x1536xf32> to vector<8x8xf32>
    %347 = vector.extract_strided_slice %270 {offsets = [8, 1024], sizes = [8, 8], strides = [1, 1]} : vector<16x1536xf32> to vector<8x8xf32>
    %cst_176 = arith.constant dense<0.000000e+00> : vector<8x8xf32>
    %348 = tpu.matmul %345, %346, %cst_176 {dimension_numbers = #tpu.dot_dimension_numbers<[1], [1], [0], [0], [0, 0, 1, 0], [], []>} : vector<8x8xf32>, vector<8x8xf32>, vector<8x8xf32> -> vector<8x8xf32>
    %cst_177 = arith.constant dense<0xFF800000> : vector<8xf32>
    %349 = vector.multi_reduction <maximumf>, %348, %cst_177 [1] : vector<8x8xf32> to vector<8xf32>
    %350 = vector.shape_cast %349 : vector<8xf32> to vector<8x1xf32>
    %351 = vector.broadcast %350 : vector<8x1xf32> to vector<8x8xf32>
    %352 = arith.subf %348, %351 : vector<8x8xf32>
    %353 = math.exp %352 : vector<8x8xf32>
    %cst_178 = arith.constant dense<0.000000e+00> : vector<8xf32>
    %354 = vector.multi_reduction <add>, %353, %cst_178 [1] : vector<8x8xf32> to vector<8xf32>
    %355 = vector.shape_cast %354 : vector<8xf32> to vector<8x1xf32>
    %356 = vector.broadcast %355 : vector<8x1xf32> to vector<8x8xf32>
    %357 = arith.divf %353, %356 : vector<8x8xf32>
    %cst_179 = arith.constant dense<0.000000e+00> : vector<8x8xf32>
    %358 = tpu.matmul %357, %347, %cst_179 {dimension_numbers = #tpu.dot_dimension_numbers<[1], [0], [0], [1], [0, 0, 1, 1], [], []>} : vector<8x8xf32>, vector<8x8xf32>, vector<8x8xf32> -> vector<8x8xf32>
    %c1_180 = arith.constant 1 : index
    %c0_181 = arith.constant 0 : index
    %c0_182 = arith.constant 0 : index
    %c0_183 = arith.constant 0 : index
    %359 = vector.load %arg6[%c1_180, %c0_181, %c0_182, %c0_183] : memref<2x4x8x32xf32, #tpu.memory_space<vmem>>, vector<1x1x8x32xf32>
    %360 = vector.shape_cast %359 : vector<1x1x8x32xf32> to vector<8x32xf32>
    %cst_184 = arith.constant dense<0.000000e+00> : vector<8x32xf32>
    %361 = tpu.matmul %358, %360, %cst_184 {dimension_numbers = #tpu.dot_dimension_numbers<[1], [0], [0], [1], [0, 0, 1, 1], [], []>} : vector<8x8xf32>, vector<8x32xf32>, vector<8x32xf32> -> vector<8x32xf32>
    %362 = arith.addf %344, %361 : vector<8x32xf32>
    %363 = vector.extract_strided_slice %270 {offsets = [8, 128], sizes = [8, 8], strides = [1, 1]} : vector<16x1536xf32> to vector<8x8xf32>
    %364 = vector.extract_strided_slice %270 {offsets = [8, 640], sizes = [8, 8], strides = [1, 1]} : vector<16x1536xf32> to vector<8x8xf32>
    %365 = vector.extract_strided_slice %270 {offsets = [8, 1152], sizes = [8, 8], strides = [1, 1]} : vector<16x1536xf32> to vector<8x8xf32>
    %cst_185 = arith.constant dense<0.000000e+00> : vector<8x8xf32>
    %366 = tpu.matmul %363, %364, %cst_185 {dimension_numbers = #tpu.dot_dimension_numbers<[1], [1], [0], [0], [0, 0, 1, 0], [], []>} : vector<8x8xf32>, vector<8x8xf32>, vector<8x8xf32> -> vector<8x8xf32>
    %cst_186 = arith.constant dense<0xFF800000> : vector<8xf32>
    %367 = vector.multi_reduction <maximumf>, %366, %cst_186 [1] : vector<8x8xf32> to vector<8xf32>
    %368 = vector.shape_cast %367 : vector<8xf32> to vector<8x1xf32>
    %369 = vector.broadcast %368 : vector<8x1xf32> to vector<8x8xf32>
    %370 = arith.subf %366, %369 : vector<8x8xf32>
    %371 = math.exp %370 : vector<8x8xf32>
    %cst_187 = arith.constant dense<0.000000e+00> : vector<8xf32>
    %372 = vector.multi_reduction <add>, %371, %cst_187 [1] : vector<8x8xf32> to vector<8xf32>
    %373 = vector.shape_cast %372 : vector<8xf32> to vector<8x1xf32>
    %374 = vector.broadcast %373 : vector<8x1xf32> to vector<8x8xf32>
    %375 = arith.divf %371, %374 : vector<8x8xf32>
    %cst_188 = arith.constant dense<0.000000e+00> : vector<8x8xf32>
    %376 = tpu.matmul %375, %365, %cst_188 {dimension_numbers = #tpu.dot_dimension_numbers<[1], [0], [0], [1], [0, 0, 1, 1], [], []>} : vector<8x8xf32>, vector<8x8xf32>, vector<8x8xf32> -> vector<8x8xf32>
    %c1_189 = arith.constant 1 : index
    %c1_190 = arith.constant 1 : index
    %c0_191 = arith.constant 0 : index
    %c0_192 = arith.constant 0 : index
    %377 = vector.load %arg6[%c1_189, %c1_190, %c0_191, %c0_192] : memref<2x4x8x32xf32, #tpu.memory_space<vmem>>, vector<1x1x8x32xf32>
    %378 = vector.shape_cast %377 : vector<1x1x8x32xf32> to vector<8x32xf32>
    %cst_193 = arith.constant dense<0.000000e+00> : vector<8x32xf32>
    %379 = tpu.matmul %376, %378, %cst_193 {dimension_numbers = #tpu.dot_dimension_numbers<[1], [0], [0], [1], [0, 0, 1, 1], [], []>} : vector<8x8xf32>, vector<8x32xf32>, vector<8x32xf32> -> vector<8x32xf32>
    %380 = arith.addf %362, %379 : vector<8x32xf32>
    %381 = vector.extract_strided_slice %270 {offsets = [8, 256], sizes = [8, 8], strides = [1, 1]} : vector<16x1536xf32> to vector<8x8xf32>
    %382 = vector.extract_strided_slice %270 {offsets = [8, 768], sizes = [8, 8], strides = [1, 1]} : vector<16x1536xf32> to vector<8x8xf32>
    %383 = vector.extract_strided_slice %270 {offsets = [8, 1280], sizes = [8, 8], strides = [1, 1]} : vector<16x1536xf32> to vector<8x8xf32>
    %cst_194 = arith.constant dense<0.000000e+00> : vector<8x8xf32>
    %384 = tpu.matmul %381, %382, %cst_194 {dimension_numbers = #tpu.dot_dimension_numbers<[1], [1], [0], [0], [0, 0, 1, 0], [], []>} : vector<8x8xf32>, vector<8x8xf32>, vector<8x8xf32> -> vector<8x8xf32>
    %cst_195 = arith.constant dense<0xFF800000> : vector<8xf32>
    %385 = vector.multi_reduction <maximumf>, %384, %cst_195 [1] : vector<8x8xf32> to vector<8xf32>
    %386 = vector.shape_cast %385 : vector<8xf32> to vector<8x1xf32>
    %387 = vector.broadcast %386 : vector<8x1xf32> to vector<8x8xf32>
    %388 = arith.subf %384, %387 : vector<8x8xf32>
    %389 = math.exp %388 : vector<8x8xf32>
    %cst_196 = arith.constant dense<0.000000e+00> : vector<8xf32>
    %390 = vector.multi_reduction <add>, %389, %cst_196 [1] : vector<8x8xf32> to vector<8xf32>
    %391 = vector.shape_cast %390 : vector<8xf32> to vector<8x1xf32>
    %392 = vector.broadcast %391 : vector<8x1xf32> to vector<8x8xf32>
    %393 = arith.divf %389, %392 : vector<8x8xf32>
    %cst_197 = arith.constant dense<0.000000e+00> : vector<8x8xf32>
    %394 = tpu.matmul %393, %383, %cst_197 {dimension_numbers = #tpu.dot_dimension_numbers<[1], [0], [0], [1], [0, 0, 1, 1], [], []>} : vector<8x8xf32>, vector<8x8xf32>, vector<8x8xf32> -> vector<8x8xf32>
    %c1_198 = arith.constant 1 : index
    %c2_199 = arith.constant 2 : index
    %c0_200 = arith.constant 0 : index
    %c0_201 = arith.constant 0 : index
    %395 = vector.load %arg6[%c1_198, %c2_199, %c0_200, %c0_201] : memref<2x4x8x32xf32, #tpu.memory_space<vmem>>, vector<1x1x8x32xf32>
    %396 = vector.shape_cast %395 : vector<1x1x8x32xf32> to vector<8x32xf32>
    %cst_202 = arith.constant dense<0.000000e+00> : vector<8x32xf32>
    %397 = tpu.matmul %394, %396, %cst_202 {dimension_numbers = #tpu.dot_dimension_numbers<[1], [0], [0], [1], [0, 0, 1, 1], [], []>} : vector<8x8xf32>, vector<8x32xf32>, vector<8x32xf32> -> vector<8x32xf32>
    %398 = arith.addf %380, %397 : vector<8x32xf32>
    %399 = vector.extract_strided_slice %270 {offsets = [8, 384], sizes = [8, 8], strides = [1, 1]} : vector<16x1536xf32> to vector<8x8xf32>
    %400 = vector.extract_strided_slice %270 {offsets = [8, 896], sizes = [8, 8], strides = [1, 1]} : vector<16x1536xf32> to vector<8x8xf32>
    %401 = vector.extract_strided_slice %270 {offsets = [8, 1408], sizes = [8, 8], strides = [1, 1]} : vector<16x1536xf32> to vector<8x8xf32>
    %cst_203 = arith.constant dense<0.000000e+00> : vector<8x8xf32>
    %402 = tpu.matmul %399, %400, %cst_203 {dimension_numbers = #tpu.dot_dimension_numbers<[1], [1], [0], [0], [0, 0, 1, 0], [], []>} : vector<8x8xf32>, vector<8x8xf32>, vector<8x8xf32> -> vector<8x8xf32>
    %cst_204 = arith.constant dense<0xFF800000> : vector<8xf32>
    %403 = vector.multi_reduction <maximumf>, %402, %cst_204 [1] : vector<8x8xf32> to vector<8xf32>
    %404 = vector.shape_cast %403 : vector<8xf32> to vector<8x1xf32>
    %405 = vector.broadcast %404 : vector<8x1xf32> to vector<8x8xf32>
    %406 = arith.subf %402, %405 : vector<8x8xf32>
    %407 = math.exp %406 : vector<8x8xf32>
    %cst_205 = arith.constant dense<0.000000e+00> : vector<8xf32>
    %408 = vector.multi_reduction <add>, %407, %cst_205 [1] : vector<8x8xf32> to vector<8xf32>
    %409 = vector.shape_cast %408 : vector<8xf32> to vector<8x1xf32>
    %410 = vector.broadcast %409 : vector<8x1xf32> to vector<8x8xf32>
    %411 = arith.divf %407, %410 : vector<8x8xf32>
    %cst_206 = arith.constant dense<0.000000e+00> : vector<8x8xf32>
    %412 = tpu.matmul %411, %401, %cst_206 {dimension_numbers = #tpu.dot_dimension_numbers<[1], [0], [0], [1], [0, 0, 1, 1], [], []>} : vector<8x8xf32>, vector<8x8xf32>, vector<8x8xf32> -> vector<8x8xf32>
    %c1_207 = arith.constant 1 : index
    %c3_208 = arith.constant 3 : index
    %c0_209 = arith.constant 0 : index
    %c0_210 = arith.constant 0 : index
    %413 = vector.load %arg6[%c1_207, %c3_208, %c0_209, %c0_210] : memref<2x4x8x32xf32, #tpu.memory_space<vmem>>, vector<1x1x8x32xf32>
    %414 = vector.shape_cast %413 : vector<1x1x8x32xf32> to vector<8x32xf32>
    %cst_211 = arith.constant dense<0.000000e+00> : vector<8x32xf32>
    %415 = tpu.matmul %412, %414, %cst_211 {dimension_numbers = #tpu.dot_dimension_numbers<[1], [0], [0], [1], [0, 0, 1, 1], [], []>} : vector<8x8xf32>, vector<8x32xf32>, vector<8x32xf32> -> vector<8x32xf32>
    %416 = arith.addf %398, %415 : vector<8x32xf32>
    %417 = tpu.concatenate %343, %416 in 0 : vector<8x32xf32>, vector<8x32xf32> -> vector<16x32xf32>
    %c1_212 = arith.constant 1 : index
    %c0_213 = arith.constant 0 : index
    %c0_214 = arith.constant 0 : index
    %418 = vector.load %arg7[%c1_212, %c0_213, %c0_214] : memref<2x1x32xf32, #tpu.memory_space<vmem>>, vector<1x1x32xf32>
    %419 = vector.shape_cast %418 : vector<1x1x32xf32> to vector<1x32xf32>
    %420 = vector.broadcast %419 : vector<1x32xf32> to vector<16x32xf32>
    %421 = arith.addf %417, %420 : vector<16x32xf32>
    %422 = arith.addf %421, %237 : vector<16x32xf32>
    %c1_215 = arith.constant 1 : index
    %c0_216 = arith.constant 0 : index
    %c0_217 = arith.constant 0 : index
    %423 = vector.load %arg8[%c1_215, %c0_216, %c0_217] : memref<2x1x32xf32, #tpu.memory_space<vmem>>, vector<1x1x32xf32>
    %424 = vector.shape_cast %423 : vector<1x1x32xf32> to vector<1x32xf32>
    %c1_218 = arith.constant 1 : index
    %c0_219 = arith.constant 0 : index
    %c0_220 = arith.constant 0 : index
    %425 = vector.load %arg9[%c1_218, %c0_219, %c0_220] : memref<2x1x32xf32, #tpu.memory_space<vmem>>, vector<1x1x32xf32>
    %426 = vector.shape_cast %425 : vector<1x1x32xf32> to vector<1x32xf32>
    %cst_221 = arith.constant dense<0.000000e+00> : vector<16xf32>
    %427 = vector.multi_reduction <add>, %422, %cst_221 [1] : vector<16x32xf32> to vector<16xf32>
    %428 = vector.shape_cast %427 : vector<16xf32> to vector<16x1xf32>
    %cst_222 = arith.constant 3.200000e+01 : f32
    %429 = vector.broadcast %cst_222 : f32 to vector<16x1xf32>
    %430 = arith.divf %428, %429 : vector<16x1xf32>
    %431 = vector.broadcast %430 : vector<16x1xf32> to vector<16x32xf32>
    %432 = arith.subf %422, %431 : vector<16x32xf32>
    %433 = arith.mulf %432, %432 : vector<16x32xf32>
    %cst_223 = arith.constant dense<0.000000e+00> : vector<16xf32>
    %434 = vector.multi_reduction <add>, %433, %cst_223 [1] : vector<16x32xf32> to vector<16xf32>
    %435 = vector.shape_cast %434 : vector<16xf32> to vector<16x1xf32>
    %cst_224 = arith.constant 3.200000e+01 : f32
    %436 = vector.broadcast %cst_224 : f32 to vector<16x1xf32>
    %437 = arith.divf %435, %436 : vector<16x1xf32>
    %438 = vector.broadcast %430 : vector<16x1xf32> to vector<16x32xf32>
    %439 = arith.subf %422, %438 : vector<16x32xf32>
    %cst_225 = arith.constant 9.99999974E-6 : f32
    %440 = vector.broadcast %cst_225 : f32 to vector<16x1xf32>
    %441 = arith.addf %437, %440 : vector<16x1xf32>
    %442 = math.rsqrt %441 : vector<16x1xf32>
    %443 = vector.broadcast %442 : vector<16x1xf32> to vector<16x32xf32>
    %444 = arith.mulf %439, %443 : vector<16x32xf32>
    %445 = vector.broadcast %424 : vector<1x32xf32> to vector<16x32xf32>
    %446 = arith.mulf %444, %445 : vector<16x32xf32>
    %447 = vector.broadcast %426 : vector<1x32xf32> to vector<16x32xf32>
    %448 = arith.addf %446, %447 : vector<16x32xf32>
    %c1_226 = arith.constant 1 : index
    %c0_227 = arith.constant 0 : index
    %c0_228 = arith.constant 0 : index
    %449 = vector.load %arg10[%c1_226, %c0_227, %c0_228] : memref<2x32x256xf32, #tpu.memory_space<vmem>>, vector<1x32x256xf32>
    %450 = vector.shape_cast %449 : vector<1x32x256xf32> to vector<32x256xf32>
    %cst_229 = arith.constant dense<0.000000e+00> : vector<16x256xf32>
    %451 = tpu.matmul %448, %450, %cst_229 {dimension_numbers = #tpu.dot_dimension_numbers<[1], [0], [0], [1], [0, 0, 1, 1], [], []>} : vector<16x32xf32>, vector<32x256xf32>, vector<16x256xf32> -> vector<16x256xf32>
    %c1_230 = arith.constant 1 : index
    %c0_231 = arith.constant 0 : index
    %c0_232 = arith.constant 0 : index
    %452 = vector.load %arg11[%c1_230, %c0_231, %c0_232] : memref<2x1x256xf32, #tpu.memory_space<vmem>>, vector<1x1x256xf32>
    %453 = vector.shape_cast %452 : vector<1x1x256xf32> to vector<1x256xf32>
    %454 = vector.broadcast %453 : vector<1x256xf32> to vector<16x256xf32>
    %455 = arith.addf %451, %454 : vector<16x256xf32>
    %456 = vector.extract_strided_slice %455 {offsets = [0, 0], sizes = [16, 128], strides = [1, 1]} : vector<16x256xf32> to vector<16x128xf32>
    %457 = vector.extract_strided_slice %455 {offsets = [0, 128], sizes = [16, 128], strides = [1, 1]} : vector<16x256xf32> to vector<16x128xf32>
    %cst_233 = arith.constant 5.000000e-01 : f32
    %458 = vector.broadcast %cst_233 : f32 to vector<16x128xf32>
    %459 = arith.mulf %458, %457 : vector<16x128xf32>
    %cst_234 = arith.constant 0.707106769 : f32
    %460 = vector.broadcast %cst_234 : f32 to vector<16x128xf32>
    %461 = arith.mulf %457, %460 : vector<16x128xf32>
    %462 = math.erf %461 : vector<16x128xf32>
    %cst_235 = arith.constant 1.000000e+00 : f32
    %463 = vector.broadcast %cst_235 : f32 to vector<16x128xf32>
    %464 = arith.addf %463, %462 : vector<16x128xf32>
    %465 = arith.mulf %459, %464 : vector<16x128xf32>
    %466 = arith.mulf %456, %465 : vector<16x128xf32>
    %c1_236 = arith.constant 1 : index
    %c0_237 = arith.constant 0 : index
    %c0_238 = arith.constant 0 : index
    %467 = vector.load %arg12[%c1_236, %c0_237, %c0_238] : memref<2x128x32xf32, #tpu.memory_space<vmem>>, vector<1x128x32xf32>
    %468 = vector.shape_cast %467 : vector<1x128x32xf32> to vector<128x32xf32>
    %cst_239 = arith.constant dense<0.000000e+00> : vector<16x32xf32>
    %469 = tpu.matmul %466, %468, %cst_239 {dimension_numbers = #tpu.dot_dimension_numbers<[1], [0], [0], [1], [0, 0, 1, 1], [], []>} : vector<16x128xf32>, vector<128x32xf32>, vector<16x32xf32> -> vector<16x32xf32>
    %c1_240 = arith.constant 1 : index
    %c0_241 = arith.constant 0 : index
    %c0_242 = arith.constant 0 : index
    %470 = vector.load %arg13[%c1_240, %c0_241, %c0_242] : memref<2x1x32xf32, #tpu.memory_space<vmem>>, vector<1x1x32xf32>
    %471 = vector.shape_cast %470 : vector<1x1x32xf32> to vector<1x32xf32>
    %472 = vector.broadcast %471 : vector<1x32xf32> to vector<16x32xf32>
    %473 = arith.addf %469, %472 : vector<16x32xf32>
    %474 = arith.addf %473, %422 : vector<16x32xf32>
    %c0_243 = arith.constant 0 : index
    %c0_244 = arith.constant 0 : index
    %475 = vector.load %arg14[%c0_243, %c0_244] : memref<16x32xf32, #tpu.memory_space<vmem>>, vector<16x32xf32>
    tpu.vector_store %arg14[%c0_243, %c0_244], %474 {strides = array<i32>} : memref<16x32xf32, #tpu.memory_space<vmem>>, vector<16x32xf32>,
    return
  }
  func.func @transform_0(%arg0: i32) -> (i32, i32) {
    %c0_i32 = arith.constant 0 : i32
    %c0_i32_0 = arith.constant 0 : i32
    return %arg0, %c0_i32 : i32, i32
  }
  func.func @transform_1(%arg0: i32) -> (i32, i32, i32) {
    %c0_i32 = arith.constant 0 : i32
    %c0_i32_0 = arith.constant 0 : i32
    %c0_i32_1 = arith.constant 0 : i32
    %c0_i32_2 = arith.constant 0 : i32
    return %c0_i32, %c0_i32_0, %c0_i32_1 : i32, i32, i32
  }
  func.func @transform_2(%arg0: i32) -> (i32, i32, i32) {
    %c0_i32 = arith.constant 0 : i32
    %c0_i32_0 = arith.constant 0 : i32
    %c0_i32_1 = arith.constant 0 : i32
    %c0_i32_2 = arith.constant 0 : i32
    return %c0_i32, %c0_i32_0, %c0_i32_1 : i32, i32, i32
  }
  func.func @transform_3(%arg0: i32) -> (i32, i32, i32) {
    %c0_i32 = arith.constant 0 : i32
    %c0_i32_0 = arith.constant 0 : i32
    %c0_i32_1 = arith.constant 0 : i32
    %c0_i32_2 = arith.constant 0 : i32
    return %c0_i32, %c0_i32_0, %c0_i32_1 : i32, i32, i32
  }
  func.func @transform_4(%arg0: i32) -> (i32, i32, i32) {
    %c0_i32 = arith.constant 0 : i32
    %c0_i32_0 = arith.constant 0 : i32
    %c0_i32_1 = arith.constant 0 : i32
    %c0_i32_2 = arith.constant 0 : i32
    return %c0_i32, %c0_i32_0, %c0_i32_1 : i32, i32, i32
  }
  func.func @transform_5(%arg0: i32) -> (i32, i32, i32, i32) {
    %c0_i32 = arith.constant 0 : i32
    %c0_i32_0 = arith.constant 0 : i32
    %c0_i32_1 = arith.constant 0 : i32
    %c0_i32_2 = arith.constant 0 : i32
    %c0_i32_3 = arith.constant 0 : i32
    return %c0_i32, %c0_i32_0, %c0_i32_1, %c0_i32_2 : i32, i32, i32, i32
  }
  func.func @transform_6(%arg0: i32) -> (i32, i32, i32) {
    %c0_i32 = arith.constant 0 : i32
    %c0_i32_0 = arith.constant 0 : i32
    %c0_i32_1 = arith.constant 0 : i32
    %c0_i32_2 = arith.constant 0 : i32
    return %c0_i32, %c0_i32_0, %c0_i32_1 : i32, i32, i32
  }
  func.func @transform_7(%arg0: i32) -> (i32, i32, i32) {
    %c0_i32 = arith.constant 0 : i32
    %c0_i32_0 = arith.constant 0 : i32
    %c0_i32_1 = arith.constant 0 : i32
    %c0_i32_2 = arith.constant 0 : i32
    return %c0_i32, %c0_i32_0, %c0_i32_1 : i32, i32, i32
  }
  func.func @transform_8(%arg0: i32) -> (i32, i32, i32) {
    %c0_i32 = arith.constant 0 : i32
    %c0_i32_0 = arith.constant 0 : i32
    %c0_i32_1 = arith.constant 0 : i32
    %c0_i32_2 = arith.constant 0 : i32
    return %c0_i32, %c0_i32_0, %c0_i32_1 : i32, i32, i32
  }
  func.func @transform_9(%arg0: i32) -> (i32, i32, i32) {
    %c0_i32 = arith.constant 0 : i32
    %c0_i32_0 = arith.constant 0 : i32
    %c0_i32_1 = arith.constant 0 : i32
    %c0_i32_2 = arith.constant 0 : i32
    return %c0_i32, %c0_i32_0, %c0_i32_1 : i32, i32, i32
  }
  func.func @transform_10(%arg0: i32) -> (i32, i32, i32) {
    %c0_i32 = arith.constant 0 : i32
    %c0_i32_0 = arith.constant 0 : i32
    %c0_i32_1 = arith.constant 0 : i32
    %c0_i32_2 = arith.constant 0 : i32
    return %c0_i32, %c0_i32_0, %c0_i32_1 : i32, i32, i32
  }
  func.func @transform_11(%arg0: i32) -> (i32, i32, i32) {
    %c0_i32 = arith.constant 0 : i32
    %c0_i32_0 = arith.constant 0 : i32
    %c0_i32_1 = arith.constant 0 : i32
    %c0_i32_2 = arith.constant 0 : i32
    return %c0_i32, %c0_i32_0, %c0_i32_1 : i32, i32, i32
  }
  func.func @transform_12(%arg0: i32) -> (i32, i32, i32) {
    %c0_i32 = arith.constant 0 : i32
    %c0_i32_0 = arith.constant 0 : i32
    %c0_i32_1 = arith.constant 0 : i32
    %c0_i32_2 = arith.constant 0 : i32
    return %c0_i32, %c0_i32_0, %c0_i32_1 : i32, i32, i32
  }
  func.func @transform_13(%arg0: i32) -> (i32, i32) {
    %c0_i32 = arith.constant 0 : i32
    %c0_i32_0 = arith.constant 0 : i32
    return %arg0, %c0_i32 : i32, i32
  }
}

</mosaic_0001>

<bundles_post_ra>
// kernel: tpu_custom_call.1
= control target key start
LH: loop header
LB: loop body
LE: loop exit
PB: predicated region body
PF: predicated region fallthrough
CT: control target
= control target key end

     0   :  { %18 = vsyncpa [#allocation3], 0  ;;  %s7514_s0 = inlined_call_operand.vmem [shape: f32[16,32], index: 0, kind: input, shape index: {}]   ;;  %s7515_s1 = inlined_call_operand.vmem [shape: f32[2,1,32], index: 1, kind: input, shape index: {}]   ;;  %s7516_s2 = inlined_call_operand.vmem [shape: f32[2,1,32], index: 2, kind: input, shape index: {}]   ;;  %s7517_s3 = inlined_call_operand.hbm [shape: f32[2,32,1536], index: 3, kind: input, shape index: {}]   ;;  %s7518_s4 = inlined_call_operand.vmem [shape: f32[2,1,1536], index: 4, kind: input, shape index: {}]   ;;  %s7519_s5 = inlined_call_operand.vmem [shape: f32[2,4,8,32], index: 5, kind: input, shape index: {}]   ;;  %s7520_s6 = inlined_call_operand.vmem [shape: f32[2,1,32], index: 6, kind: input, shape index: {}]   ;;  %s7521_s7 = inlined_call_operand.vmem [shape: f32[2,1,32], index: 7, kind: input, shape index: {}]   ;;  %s7522_s8 = inlined_call_operand.vmem [shape: f32[2,1,32], index: 8, kind: input, shape index: {}]   ;;  %s7523_s9 = inlined_call_operand.vmem [shape: f32[2,32,256], index: 9, kind: input, shape index: {}]   ;;  %s7524_s10 = inlined_call_operand.vmem [shape: f32[2,1,256], index: 10, kind: input, shape index: {}]   ;;  %s7525_s11 = inlined_call_operand.vmem [shape: f32[2,128,32], index: 11, kind: input, shape index: {}]   ;;  %s7526_s12 = inlined_call_operand.vmem [shape: f32[2,1,32], index: 12, kind: input, shape index: {}]   ;;  %s7527_s13 = inlined_call_operand.hbm [shape: f32[16,32], index: 13, kind: output, shape index: {}]  }
   0x1   :  { %19 = vsyncpa [#allocation4], 0  ;;  %s6540_s25 = smov [#allocation2]   ;;  %s6492_s29 = scalar_lea.hbm %s7517_s3, 12288 }
   0x2   :  { %s31_s26 = sshll.u32 %s6540_s25, 4  ;;  %p6493_p0 = scmp.ne.s32.totalorder %s7517_s3, %s6492_s29  ;;  %s32_s26 = int_to_ptr.vmem [resolvable:$true] %s31_s26 }
   0x3   :  { %p6496_p1 = scmp.lt.u32.totalorder %s6492_s29, %s7517_s3 }
   0x5   :  { %p6498_p2 = pnand %p6496_p1, %p6493_p0 }
   0x7   :  { %6501 = shalt.err (!%p6498_p2)
}
   0x8   :  { %s6502_s17 = scalar_lea.vmem %s32_s26, 12288  ;;  %p6507_p4 = scmp.lt.s32.totalorder %s32_s26, %s32_s26 }
   0x9   :  { %p6503_p3 = scmp.ne.s32.totalorder %s32_s26, %s6502_s17  ;;  %p6508_p5 = scmp.lt.s32.totalorder %s6502_s17, %s6502_s17 }
   0xb   :  { %p6509_p6 = por %p6508_p5, %p6507_p4 }
   0xd   :  { %p6510_p7 = pnand %p6509_p6, %p6503_p3 }
   0xf   :  { %6513 = shalt.err (!%p6510_p7)
}
  0x10   :  { %s6541_s18 = smov 1536   ;;  %s6542_s19 = smov 96  }
  0x11   :  { %37 = dma.hbm_to_vmem [thread:$0]  %s7517_s3, 12288, %s32_s26, [#allocation3], %s6541_s18, %s6541_s18, %s6542_s19  }
  0x12   :  { %6536 = dma.done.wait [#allocation3], 12288  }
  0x13   :  { %6537 = vsyncadd [#allocation3], 4294955008  ;;  %vm63_vm0 = vcmask 261120   ;;  %v6633_v0 = vld [vmem:[%s7514_s0] sm:$0xff]  ;;  %v60_v1 = vld [vmem:[%s7514_s0 + $0x8] sm:$0xff]  ;;  %v6543_v43 = vmov 0.0  }
  0x14   :  { %v64_v2 = vsel %vm63_vm0, %v6633_v0, 0.0  ;;  %v67_v3 = vsel %vm63_vm0, %v60_v1, 0.0  ;;  %v108_v14 = vld [vmem:[#allocation2 + $0x8] sm:$0xff]  ;;  %v110_v16 = vld [vmem:[#allocation2 + $0x18] sm:$0xff]  ;;  %v107_v19 = vld [vmem:[#allocation2] sm:$0xff]  ;;  %289 = vmatprep.mubr.f32.mxu0 %v6543_v43  ;;  %366 = vmatprep.mubr.f32.mxu1 %v6543_v43  ;;  %vm6544_vm1 = vmmov 0  }
  0x15   :  { %65 = vadd.xlane.f32.xlu0 %v64_v2  ;;  %v120_v15 = vld [vmem:[#allocation2 + $0x68] sm:$0xff]  ;;  %v122_v18 = vld [vmem:[#allocation2 + $0x78] sm:$0xff]  ;;  %v119_v20 = vld [vmem:[#allocation2 + $0x60] sm:$0xff]  ;;  %vm687_vm2 = vcmask 64512  }
  0x16   :  { %v6219_v17 = vpack.c.bf16 %v120_v15, %v108_v14  ;;  %v6227_v21 = vpack.c.bf16 %v122_v18, %v110_v16  ;;  %v6221_v22 = vpack.c.bf16 %v119_v20, %v107_v19  ;;  %v109_v23 = vld [vmem:[#allocation2 + $0x10] sm:$0xff]  ;;  %v132_v26 = vld [vmem:[#allocation2 + $0xc8] sm:$0xff]  ;;  %v134_v28 = vld [vmem:[#allocation2 + $0xd8] sm:$0xff] }
  0x17   :  { %v121_v24 = vld [vmem:[#allocation2 + $0x70] sm:$0xff]  ;;  %v144_v27 = vld [vmem:[#allocation2 + $0x128] sm:$0xff]  ;;  %v146_v30 = vld [vmem:[#allocation2 + $0x138] sm:$0xff] }
  0x18   :  { %6220 = vmatprep.subr.bf16.mxu0 %v6219_v17  ;;  %v6229_v25 = vpack.c.bf16 %v121_v24, %v109_v23  ;;  %6228 = vmatprep.subr.bf16.mxu1 %v6227_v21  ;;  %v6223_v29 = vpack.c.bf16 %v144_v27, %v132_v26  ;;  %v131_v31 = vld [vmem:[#allocation2 + $0xc0] sm:$0xff]  ;;  %v6231_v33 = vpack.c.bf16 %v146_v30, %v134_v28  ;;  %v133_v35 = vld [vmem:[#allocation2 + $0xd0] sm:$0xff]  ;;  %v112_v38 = vld [vmem:[#allocation2 + $0x28] sm:$0xff] }
  0x19   :  { %68 = vadd.xlane.f32.xlu0 %v67_v3  ;;  %6222 = vmatpush1.bf16.msra.mxu0 %v6221_v22  ;;  %v143_v32 = vld [vmem:[#allocation2 + $0x120] sm:$0xff]  ;;  %v145_v36 = vld [vmem:[#allocation2 + $0x130] sm:$0xff]  ;;  %v124_v39 = vld [vmem:[#allocation2 + $0x88] sm:$0xff] }
  0x1a   :  { %6230 = vmatpush1.bf16.msra.mxu1 %v6229_v25  ;;  %v6225_v34 = vpack.c.bf16 %v143_v32, %v131_v31  ;;  %6224 = vmatprep.subr.bf16.mxu0 %v6223_v29  ;;  %v6233_v37 = vpack.c.bf16 %v145_v36, %v133_v35  ;;  %v114_v40 = vld [vmem:[#allocation2 + $0x38] sm:$0xff]  ;;  %v6235_v41 = vpack.c.bf16 %v124_v39, %v112_v38  ;;  %v5633_v52 = vld [vmem:[%s7515_s1] ss:$0 sm:$0xff]  ;;  %v113_v56 = vld [vmem:[#allocation2 + $0x30] sm:$0xff] }
  0x1b   :  { %6232 = vmatprep.subr.bf16.mxu1 %v6231_v33  ;;  %v126_v42 = vld [vmem:[#allocation2 + $0x98] sm:$0xff]  ;;  %v111_v53 = vld [vmem:[#allocation2 + $0x20] sm:$0xff]  ;;  %v125_v57 = vld [vmem:[#allocation2 + $0x90] sm:$0xff] }
  0x1c   :  { %v6243_v44 = vpack.c.bf16 %v126_v42, %v114_v40  ;;  %v123_v55 = vld [vmem:[#allocation2 + $0x80] sm:$0xff]  ;;  %v136_v59 = vld [vmem:[#allocation2 + $0xe8] sm:$0xff]  ;;  %v138_v62 = vld [vmem:[#allocation2 + $0xf8] sm:$0xff]  ;;  %v6245_v3 = vpack.c.bf16 %v125_v57, %v113_v56  ;;  %v159_v40 = vlaneseq }
  0x1d   :  { %6226 = vmatpush1.bf16.msra.mxu0 %v6225_v34  ;;  %v5634_v58 = vld [vmem:[%s7516_s2] ss:$0 sm:$0xff]  ;;  %v148_v61 = vld [vmem:[#allocation2 + $0x148] sm:$0xff]  ;;  %v150_v63 = vld [vmem:[#allocation2 + $0x158] sm:$0xff]  ;;  %v6237_v2 = vpack.c.bf16 %v123_v55, %v111_v53 }
  0x1e   :  { %6234 = vmatpush1.bf16.msra.mxu1 %v6233_v37  ;;  %6236 = vmatprep.subr.bf16.mxu0 %v6235_v41  ;;  %v128_v15 = vld [vmem:[#allocation2 + $0xa8] sm:$0xff]  ;;  %v118_v16 = vld [vmem:[#allocation2 + $0x58] sm:$0xff]  ;;  %v115_v19 = vld [vmem:[#allocation2 + $0x40] sm:$0xff]  ;;  %v6698_v41 = vshrl.u32 %v159_v40, 7 }
  0x1f   :  { %6244 = vmatprep.subr.bf16.mxu1 %v6243_v44  ;;  %v130_v17 = vld [vmem:[#allocation2 + $0xb8] sm:$0xff]  ;;  %v127_v21 = vld [vmem:[#allocation2 + $0xa0] sm:$0xff]  ;;  %v117_v22 = vld [vmem:[#allocation2 + $0x50] sm:$0xff] }
  0x20   :  { %v129_v23 = vld [vmem:[#allocation2 + $0xb0] sm:$0xff]  ;;  %v6259_v25 = vpack.c.bf16 %v130_v17, %v118_v16  ;;  %v140_v26 = vld [vmem:[#allocation2 + $0x108] sm:$0xff]  ;;  %v142_v28 = vld [vmem:[#allocation2 + $0x118] sm:$0xff]  ;;  %v6253_v30 = vpack.c.bf16 %v127_v21, %v115_v19  ;;  %v6701_v42 = vsub.s32 0, %v6698_v41  ;;  %v6704_v44 = vsub.s32 2, %v6698_v41 }
  0x21   :  { %v152_v27 = vld [vmem:[#allocation2 + $0x168] sm:$0xff]  ;;  %v154_v29 = vld [vmem:[#allocation2 + $0x178] sm:$0xff]  ;;  %v6261_v31 = vpack.c.bf16 %v129_v23, %v117_v22  ;;  %v139_v32 = vld [vmem:[#allocation2 + $0x100] sm:$0xff] }
  0x22   :  { %v151_v33 = vld [vmem:[#allocation2 + $0x160] sm:$0xff]  ;;  %v141_v34 = vld [vmem:[#allocation2 + $0x110] sm:$0xff]  ;;  %v6255_v36 = vpack.c.bf16 %v152_v27, %v140_v26  ;;  %v6263_v37 = vpack.c.bf16 %v154_v29, %v142_v28 }
  0x23   :  { %v153_v35 = vld [vmem:[#allocation2 + $0x170] sm:$0xff]  ;;  %v6257_v38 = vpack.c.bf16 %v151_v33, %v139_v32 }
  0x24   :  { %v6265_v39 = vpack.c.bf16 %v153_v35, %v141_v34 }
  0xa2   :  { %v66_v4 = vpop.xlane.xlu0 %65 }
  0xa3   :  { %v71_v5 = vmul.f32 0.03125, %v66_v4  ;;  %v135_v4 = vld [vmem:[#allocation2 + $0xe0] sm:$0xff] }
  0xa5   :  { %v6642_v6 = vsub.f32 %v6633_v0, %v71_v5 }
  0xa6   :  { %v69_v7 = vpop.xlane.xlu0 %68 }
  0xa7   :  { %v72_v8 = vmul.f32 0.03125, %v69_v7  ;;  %v75_v9 = vmul.f32 %v6642_v6, %v6642_v6  ;;  %v147_v7 = vld [vmem:[#allocation2 + $0x140] sm:$0xff] }
  0xa8   :  { %v6241_v18 = vpack.c.bf16 %v147_v7, %v135_v4  ;;  %v185_v4 = vsub.s32 6, %v6698_v41  ;;  %v189_v7 = vsub.s32 7, %v6698_v41 }
  0xa9   :  { %v6646_v10 = vsub.f32 %v60_v1, %v72_v8  ;;  %v77_v11 = vsel %vm63_vm0, %v75_v9, 0.0  ;;  %v137_v8 = vld [vmem:[#allocation2 + $0xf0] sm:$0xff] }
  0xaa   :  { %78 = vadd.xlane.f32.xlu1 %v77_v11  ;;  %v149_v9 = vld [vmem:[#allocation2 + $0x150] sm:$0xff]  ;;  %v6239_v11 = vpack.c.bf16 %v148_v61, %v136_v59 }
  0xab   :  { %v76_v12 = vmul.f32 %v6646_v10, %v6646_v10 }
  0xad   :  { %v80_v13 = vsel %vm63_vm0, %v76_v12, 0.0  ;;  %v6247_v12 = vpack.c.bf16 %v150_v63, %v138_v62 }
  0xae   :  { %81 = vadd.xlane.f32.xlu1 %v80_v13  ;;  %v116_v13 = vld [vmem:[#allocation2 + $0x48] sm:$0xff] }
  0xaf   :  { %v6251_v24 = vpack.c.bf16 %v128_v15, %v116_v13  ;;  %v156_v13 = vld [vmem:[%s7518_s4 + $0x8] sm:$0xf] }
 0x137   :  { %v79_v45 = vpop.xlane.xlu1 %78 }
 0x138   :  { %v83_v46 = vmul.f32 0.03125, %v79_v45  ;;  %v155_v45 = vld [vmem:[%s7518_s4] sm:$0xff] }
 0x139   :  { %v162_v53 = vrot.slane %v155_v45, %v6701_v42  ;;  %v6759_v16 = vrot.slane %v155_v45, %v189_v7 }
 0x13a   :  { %v85_v47 = vadd.f32 1e-05, %v83_v46 }
 0x13b   :  { %v82_v48 = vpop.xlane.xlu1 %81 }
 0x13c   :  { %6403 = vrsqrt.f32 %v85_v47  ;;  %v84_v49 = vmul.f32 0.03125, %v82_v48  ;;  %v6712_v48 = vsub.s32 1, %v6698_v41 }
 0x13e   :  { %v86_v50 = vadd.f32 1e-05, %v84_v49  ;;  %v6715_v49 = vsub.s32 3, %v6698_v41  ;;  %v166_v55 = vrot.slane %v155_v45, %v6712_v48  ;;  %v198_v27 = vrot.slane %v156_v13, %v6712_v48 }
 0x140   :  { %6405 = vrsqrt.f32 %v86_v50  ;;  %v6726_v56 = vrot.slane %v155_v45, %v6715_v49  ;;  %v206_v28 = vrot.slane %v156_v13, %v6715_v49 }
 0x146   :  { %v6404_v51 = vpop.eup %6403 }
 0x147   :  { %v89_v54 = vmul.f32 %v6404_v51, %v6642_v6 }
 0x149   :  { %v97_v60 = vmul.f32 %v5633_v52, %v89_v54  ;;  %v6722_v54 = vrot.slane %v155_v45, %v6704_v44 }
 0x14a   :  { %v6406_v1 = vpop.eup %6405 }
 0x14b   :  { %v6661_v5 = vadd.f32 %v5634_v58, %v97_v60  ;;  %v90_v6 = vmul.f32 %v6406_v1, %v6646_v10  ;;  %v6249_v10 = vpack.c.bf16 %v149_v9, %v137_v8  ;;  %v181_v1 = vsub.s32 5, %v6698_v41 }
 0x14d   :  { %v98_v14 = vmul.f32 %v5633_v52, %v90_v6  ;;  %5635 = vmatmul.mubr.msk.f32.vlgmr.msra.gmra.mrb[0].mxu0 %vm63_vm0, %v6661_v5  ;;  %5637 = vmatmul.mubr.msk.f32.vlgmr.msra.gmra.mrb[0].mxu1 %vm63_vm0, %v6661_v5  ;;  %v177_v52 = vsub.s32 4, %v6698_v41  ;;  %v182_v9 = vrot.slane %v155_v45, %v181_v1 }
 0x14e   :  { %6238 = vmatpush1.bf16.msra.mxu0 %v6237_v2  ;;  %6246 = vmatpush1.bf16.msra.mxu1 %v6245_v3 }
 0x14f   :  { %v106_v20 = vadd.f32 %v5634_v58, %v98_v14  ;;  %295 = vmatprep.mubr.f32.mxu0 %v6543_v43  ;;  %372 = vmatprep.mubr.f32.mxu1 %v6543_v43  ;;  %v178_v63 = vrot.slane %v155_v45, %v177_v52  ;;  %v6754_v14 = vrot.slane %v155_v45, %v185_v4 }
 0x150   :  { %6240 = vmatprep.subr.bf16.mxu0 %v6239_v11  ;;  %6248 = vmatprep.subr.bf16.mxu1 %v6247_v12 }
 0x151   :  { %5636 = vmatmul.mubr.msk.f32.gmra.mrb[2].mxu0 %vm63_vm0, %v106_v20  ;;  %5638 = vmatmul.mubr.msk.f32.gmra.mrb[2].mxu1 %vm63_vm0, %v106_v20 }
 0x152   :  { %6242 = vmatpush1.bf16.msra.mxu0 %v6241_v18  ;;  %6250 = vmatpush1.bf16.msra.mxu1 %v6249_v10  ;;  %v194_v10 = vrot.slane %v156_v13, %v6701_v42 }
 0x153   :  { %443 = vmatprep.mubr.f32.mxu0 %v6543_v43  ;;  %520 = vmatprep.mubr.f32.mxu1 %v6543_v43 }
 0x154   :  { %6252 = vmatprep.subr.bf16.mxu0 %v6251_v24  ;;  %6260 = vmatprep.subr.bf16.mxu1 %v6259_v25  ;;  %v202_v24 = vrot.slane %v156_v13, %v6704_v44 }
 0x155   :  { %5639 = vmatmul.mubr.msk.f32.vlgmr.msra.gmra.mrb[4].mxu0 %vm63_vm0, %v6661_v5  ;;  %5641 = vmatmul.mubr.msk.f32.vlgmr.msra.gmra.mrb[4].mxu1 %vm63_vm0, %v6661_v5 }
 0x156   :  { %6254 = vmatpush1.bf16.msra.mxu0 %v6253_v30  ;;  %6262 = vmatpush1.bf16.msra.mxu1 %v6261_v31 }
 0x157   :  { %449 = vmatprep.mubr.f32.mxu0 %v6543_v43  ;;  %526 = vmatprep.mubr.f32.mxu1 %v6543_v43 }
 0x158   :  { %6256 = vmatprep.subr.bf16.mxu0 %v6255_v36  ;;  %6264 = vmatprep.subr.bf16.mxu1 %v6263_v37 }
 0x159   :  { %5640 = vmatmul.mubr.msk.f32.gmra.mrb[6].mxu0 %vm63_vm0, %v106_v20  ;;  %5642 = vmatmul.mubr.msk.f32.gmra.mrb[6].mxu1 %vm63_vm0, %v106_v20 }
 0x15a   :  { %6258 = vmatpush1.bf16.msra.mxu0 %v6257_v38  ;;  %6266 = vmatpush1.bf16.msra.mxu1 %v6265_v39 }
 0x15b   :  { %597 = vmatprep.mubr.f32.mxu0 %v6543_v43  ;;  %674 = vmatprep.mubr.f32.mxu1 %v6543_v43 }
 0x15c   :  { %5909 = vmatprep.subr.mxu0 %v6543_v43  ;;  %5914 = vmatprep.subr.mxu1 %v6543_v43 }
 0x15d   :  { %5643 = vmatmul.mubr.msk.f32.vlgmr.msra.gmra.mrb[8].mxu0 %vm63_vm0, %v6661_v5  ;;  %5645 = vmatmul.mubr.msk.f32.vlgmr.msra.gmra.mrb[8].mxu1 %vm63_vm0, %v6661_v5 }
 0x15e   :  { %603 = vmatprep.mubr.f32.mxu0 %v6543_v43  ;;  %680 = vmatprep.mubr.f32.mxu1 %v6543_v43 }
 0x161   :  { %5644 = vmatmul.mubr.msk.f32.gmra.mrb[10].mxu0 %vm63_vm0, %v106_v20  ;;  %5646 = vmatmul.mubr.msk.f32.gmra.mrb[10].mxu1 %vm63_vm0, %v106_v20 }
 0x162   :  { %5911 = vmatprep.mubr.msk.f32.mxu0 %vm6544_vm1, %v6543_v43  ;;  %5916 = vmatprep.mubr.msk.f32.mxu1 %vm6544_vm1, %v6543_v43 }
 0x220   :  { %v291_v46 = vpop.f32.mrb[0].mxu0  ;;  %v6709_v47 = vpop.f32.mrb[0].mxu1 }
 0x221   :  { %v293_v50 = vpop.f32.mrb[1].mxu0  ;;  %v6717_v51 = vpop.f32.mrb[1].mxu1  ;;  %v292_v15 = vadd.f32 %v291_v46, %v162_v53 }
 0x222   :  { %v294_v29 = vadd.f32 %v293_v50, %v166_v55 }
 0x224   :  { %v297_v57 = vpop.f32.mrb[2].mxu0  ;;  %v374_v58 = vpop.f32.mrb[2].mxu1 }
 0x225   :  { %v6728_v59 = vadd.f32 %v297_v57, %v162_v53  ;;  %v6731_v60 = vadd.f32 %v374_v58, %v6722_v54  ;;  %v299_v61 = vpop.f32.mrb[3].mxu0  ;;  %v376_v62 = vpop.f32.mrb[3].mxu1 }
 0x226   :  { %v6736_v2 = vadd.f32 %v299_v61, %v166_v55  ;;  %v6739_v3 = vadd.f32 %v376_v62, %v6726_v56 }
 0x228   :  { %v445_v5 = vpop.f32.mrb[4].mxu0  ;;  %v6742_v6 = vpop.f32.mrb[4].mxu1 }
 0x229   :  { %v446_v8 = vadd.f32 %v445_v5, %v178_v63  ;;  %v447_v11 = vpop.f32.mrb[5].mxu0  ;;  %v6747_v12 = vpop.f32.mrb[5].mxu1 }
 0x22a   :  { %v448_v19 = vadd.f32 %v447_v11, %v182_v9 }
 0x22b   :  { %5910 = vmatpush3.xpose.msk.msra.mxu0 %vm687_vm2, %v446_v8 }
 0x22c   :  { %v451_v17 = vpop.f32.mrb[6].mxu0  ;;  %v528_v18 = vpop.f32.mrb[6].mxu1  ;;  %5919 = vmatprep.subr.mxu0 %v6543_v43 }
 0x22d   :  { %v6763_v20 = vadd.f32 %v451_v17, %v178_v63  ;;  %v6766_v21 = vadd.f32 %v528_v18, %v6754_v14  ;;  %v453_v22 = vpop.f32.mrb[7].mxu0  ;;  %v530_v23 = vpop.f32.mrb[7].mxu1 }
 0x22e   :  { %v6769_v25 = vadd.f32 %v453_v22, %v182_v9  ;;  %v6772_v26 = vadd.f32 %v530_v23, %v6759_v16  ;;  %5912 = vmatmul.mubr.msk.f32.vlgmr.msra.gmra.mrb[12].mxu0 %vm687_vm2, %v292_v15  ;;  %v6802_v23 = vld [vmem:[%s7519_s5 + $0x8] sm:$0xff] }
 0x22f   :  { %5920 = vmatpush3.xpose.msk.msra.mxu0 %vm687_vm2, %v448_v19  ;;  %5921 = vmatprep.mubr.msk.f32.mxu0 %vm6544_vm1, %v6543_v43 }
 0x230   :  { %v599_v30 = vpop.f32.mrb[8].mxu0  ;;  %v676_v31 = vpop.f32.mrb[8].mxu1  ;;  %5929 = vmatprep.subr.mxu0 %v6543_v43 }
 0x231   :  { %v600_v32 = vadd.f32 %v599_v30, %v194_v10  ;;  %v677_v33 = vadd.f32 %v676_v31, %v202_v24  ;;  %v601_v34 = vpop.f32.mrb[9].mxu0  ;;  %v678_v35 = vpop.f32.mrb[9].mxu1 }
 0x232   :  { %v602_v36 = vadd.f32 %v601_v34, %v198_v27  ;;  %v6781_v37 = vadd.f32 %v678_v35, %v206_v28  ;;  %5922 = vmatmul.mubr.msk.f32.vlgmr.msra.gmra.mrb[14].mxu0 %vm687_vm2, %v294_v29 }
 0x233   :  { %5915 = vmatpush3.msra.mxu1 %v600_v32  ;;  %5931 = vmatprep.mubr.msk.f32.mxu0 %vm6544_vm1, %v6543_v43  ;;  %v6813_v32 = vld [vmem:[%s7519_s5] sm:$0xff] }
 0x234   :  { %v605_v38 = vpop.f32.mrb[10].mxu0  ;;  %v682_v39 = vpop.f32.mrb[10].mxu1  ;;  %5924 = vmatprep.subr.mxu1 %v6543_v43  ;;  %5930 = vmatpush3.msra.mxu0 %v6802_v23 }
 0x235   :  { %v6787_v40 = vadd.f32 %v605_v38, %v194_v10  ;;  %v6789_v45 = vadd.f32 %v682_v39, %v202_v24  ;;  %v607_v46 = vpop.f32.mrb[11].mxu0  ;;  %v684_v50 = vpop.f32.mrb[11].mxu1  ;;  %5939 = vmatprep.subr.mxu0 %v6543_v43 }
 0x236   :  { %v6791_v53 = vadd.f32 %v607_v46, %v198_v27  ;;  %v6793_v55 = vadd.f32 %v684_v50, %v206_v28 }
 0x301   :  { %v760_v57 = vpop.f32.mrb[12].mxu0 }
 0x302   :  { %v5913_v58 = vpop.f32.mrb[13].mxu0  ;;  %v764_v61 = vsel %vm687_vm2, %v760_v57, -inf }
 0x303   :  { %765 = vmax.xlane.f32.xlu0 %v764_v61 }
 0x305   :  { %v921_v62 = vpop.f32.mrb[14].mxu0 }
 0x306   :  { %v5923_v63 = vpop.f32.mrb[15].mxu0  ;;  %v925_v5 = vsel %vm687_vm2, %v921_v62, -inf }
 0x307   :  { %926 = vmax.xlane.f32.xlu1 %v925_v5 }
 0x390   :  { %v766_v8 = vpop.xlane.xlu0 %765 }
 0x391   :  { %v767_v9 = vsub.f32 %v760_v57, %v766_v8 }
 0x393   :  { %v768_v11 = vmul.f32 1.442695, %v767_v9  ;;  %v6841_v9 = vld [vmem:[%s7519_s5 + $0x10] sm:$0xff] }
 0x394   :  { %v927_v13 = vpop.xlane.xlu1 %926 }
 0x395   :  { %6407 = vpow2.f32 %v768_v11  ;;  %v928_v15 = vsub.f32 %v921_v62, %v927_v13 }
 0x397   :  { %v929_v17 = vmul.f32 1.442695, %v928_v15 }
 0x399   :  { %6409 = vpow2.f32 %v929_v17  ;;  %v525_v17 = vadd.f32 %v6747_v12, %v6759_v16 }
 0x39f   :  { %v6408_v18 = vpop.eup %6407 }
 0x3a0   :  { %v770_v10 = vsel %vm687_vm2, %v6408_v18, 0.0 }
 0x3a1   :  { %771 = vadd.xlane.f32.xlu0 %v770_v10 }
 0x3a3   :  { %v6410_v19 = vpop.eup %6409 }
 0x3a4   :  { %v931_v22 = vsel %vm687_vm2, %v6410_v19, 0.0 }
 0x3a5   :  { %932 = vadd.xlane.f32.xlu1 %v931_v22 }
 0x42e   :  { %v772_v24 = vpop.xlane.xlu0 %771 }
 0x42f   :  { %6411 = vrcp.f32 %v772_v24 }
 0x432   :  { %v933_v27 = vpop.xlane.xlu1 %932 }
 0x433   :  { %6413 = vrcp.f32 %v933_v27 }
 0x439   :  { %v6412_v28 = vpop.eup %6411 }
 0x43a   :  { %v774_v29 = vmul.f32 %v6412_v28, %v6408_v18  ;;  %v371_v18 = vadd.f32 %v6717_v51, %v6726_v56 }
 0x43c   :  { %5917 = vmatmul.mubr.msk.f32.vlgmr.msra.gmra.mrb[12].mxu1 %vm687_vm2, %v774_v29 }
 0x43d   :  { %v6414_v30 = vpop.eup %6413  ;;  %5925 = vmatpush3.msra.mxu1 %v602_v36  ;;  %5926 = vmatprep.mubr.msk.f32.mxu1 %vm6544_vm1, %v6543_v43  ;;  %v523_v36 = vadd.f32 %v6742_v6, %v6754_v14 }
 0x43e   :  { %v935_v31 = vmul.f32 %v6414_v30, %v6410_v19  ;;  %5934 = vmatprep.subr.mxu1 %v6543_v43 }
 0x440   :  { %5927 = vmatmul.mubr.msk.f32.vlgmr.msra.gmra.mrb[14].mxu1 %vm687_vm2, %v935_v31 }
 0x441   :  { %5935 = vmatpush3.msra.mxu1 %v6813_v32  ;;  %5936 = vmatprep.mubr.msk.f32.mxu1 %vm6544_vm1, %v6543_v43 }
 0x442   :  { %5944 = vmatprep.subr.mxu1 %v6543_v43 }
 0x50f   :  { %v844_v34 = vpop.f32.mrb[12].mxu1 }
 0x510   :  { %v5918_v35 = vpop.f32.mrb[13].mxu1  ;;  %5937 = vmatmul.mubr.msk.f32.vlgmr.msra.gmra.mrb[16].mxu1 %vm687_vm2, %v844_v34 }
 0x511   :  { %5945 = vmatpush3.msra.mxu1 %v677_v33  ;;  %5946 = vmatprep.mubr.msk.f32.mxu1 %vm6544_vm1, %v6543_v43  ;;  %v369_v33 = vadd.f32 %v6709_v47, %v6722_v54 }
 0x512   :  { %5954 = vmatprep.subr.mxu1 %v6543_v43 }
 0x513   :  { %v1005_v38 = vpop.f32.mrb[14].mxu1 }
 0x514   :  { %v5928_v39 = vpop.f32.mrb[15].mxu1  ;;  %5932 = vmatmul.mubr.msk.f32.vlgmr.msra.gmra.mrb[16].mxu0 %vm687_vm2, %v1005_v38 }
 0x515   :  { %5940 = vmatpush3.xpose.msk.msra.mxu0 %vm687_vm2, %v523_v36  ;;  %5941 = vmatprep.mubr.msk.f32.mxu0 %vm6544_vm1, %v6543_v43 }
 0x516   :  { %5949 = vmatprep.subr.mxu0 %v6543_v43 }
 0x518   :  { %5942 = vmatmul.mubr.msk.f32.vlgmr.msra.gmra.mrb[18].mxu0 %vm687_vm2, %v369_v33 }
 0x519   :  { %5951 = vmatprep.mubr.msk.f32.mxu0 %vm6544_vm1, %v6543_v43  ;;  %5950 = vmatpush3.msra.mxu0 %v6841_v9 }
 0x51a   :  { %5959 = vmatprep.subr.mxu0 %v6543_v43 }
 0x5e3   :  { %v1153_v6 = vpop.f32.mrb[16].mxu1 }
 0x5e4   :  { %v5938_v14 = vpop.f32.mrb[17].mxu1 }
 0x5e7   :  { %v1080_v46 = vpop.f32.mrb[16].mxu0 }
 0x5e8   :  { %v1154_v50 = vadd.f32 %v1153_v6, %v1080_v46  ;;  %v5933_v57 = vpop.f32.mrb[17].mxu0 }
 0x5eb   :  { %v1229_v58 = vpop.f32.mrb[18].mxu0 }
 0x5ec   :  { %v5943_v61 = vpop.f32.mrb[19].mxu0  ;;  %v1233_v62 = vsel %vm687_vm2, %v1229_v58, -inf }
 0x5ed   :  { %1234 = vmax.xlane.f32.xlu0 %v1233_v62 }
 0x67a   :  { %v1235_v63 = vpop.xlane.xlu0 %1234 }
 0x67b   :  { %v1236_v5 = vsub.f32 %v1229_v58, %v1235_v63 }
 0x67d   :  { %v1237_v47 = vmul.f32 1.442695, %v1236_v5 }
 0x67f   :  { %6415 = vpow2.f32 %v1237_v47 }
 0x689   :  { %v6416_v54 = vpop.eup %6415 }
 0x68a   :  { %v1239_v8 = vsel %vm687_vm2, %v6416_v54, 0.0 }
 0x68b   :  { %1240 = vadd.xlane.f32.xlu1 %v1239_v8 }
 0x718   :  { %v1241_v11 = vpop.xlane.xlu1 %1240 }
 0x719   :  { %6417 = vrcp.f32 %v1241_v11 }
 0x723   :  { %v6418_v13 = vpop.eup %6417 }
 0x724   :  { %v1243_v15 = vmul.f32 %v6418_v13, %v6416_v54 }
 0x726   :  { %5947 = vmatmul.mubr.msk.f32.vlgmr.msra.gmra.mrb[18].mxu1 %vm687_vm2, %v1243_v15 }
 0x727   :  { %5955 = vmatpush3.xpose.msk.msra.mxu1 %vm687_vm2, %v525_v17  ;;  %5956 = vmatprep.mubr.msk.f32.mxu1 %vm6544_vm1, %v6543_v43 }
 0x728   :  { %5964 = vmatprep.subr.mxu1 %v6543_v43 }
 0x72a   :  { %5957 = vmatmul.mubr.msk.f32.vlgmr.msra.gmra.mrb[20].mxu1 %vm687_vm2, %v371_v18 }
 0x72b   :  { %5966 = vmatprep.mubr.msk.f32.mxu1 %vm6544_vm1, %v6543_v43 }
 0x7f9   :  { %v1313_v10 = vpop.f32.mrb[18].mxu1 }
 0x7fa   :  { %v5948_v19 = vpop.f32.mrb[19].mxu1  ;;  %5952 = vmatmul.mubr.msk.f32.vlgmr.msra.gmra.mrb[20].mxu0 %vm687_vm2, %v1313_v10 }
 0x7fb   :  { %5960 = vmatpush3.msra.mxu0 %v6781_v37  ;;  %5961 = vmatprep.mubr.msk.f32.mxu0 %vm6544_vm1, %v6543_v43  ;;  %v6867_v37 = vld [vmem:[%s7519_s5 + $0x18] sm:$0xff] }
 0x7fc   :  { %5969 = vmatprep.subr.mxu0 %v6543_v43  ;;  %5965 = vmatpush3.msra.mxu1 %v6867_v37 }
 0x7fd   :  { %v1465_v12 = vpop.f32.mrb[20].mxu1  ;;  %5974 = vmatprep.subr.mxu1 %v6543_v43 }
 0x7fe   :  { %v5958_v51 = vpop.f32.mrb[21].mxu1  ;;  %v1469_v56 = vsel %vm687_vm2, %v1465_v12, -inf }
 0x7ff   :  { %1470 = vmax.xlane.f32.xlu0 %v1469_v56 }
 0x88c   :  { %v1471_v16 = vpop.xlane.xlu0 %1470 }
 0x88d   :  { %v1472_v22 = vsub.f32 %v1465_v12, %v1471_v16 }
 0x88f   :  { %v1473_v24 = vmul.f32 1.442695, %v1472_v22 }
 0x891   :  { %6419 = vpow2.f32 %v1473_v24 }
 0x89b   :  { %v6420_v27 = vpop.eup %6419 }
 0x89c   :  { %v1475_v28 = vsel %vm687_vm2, %v6420_v27, 0.0 }
 0x89d   :  { %1476 = vadd.xlane.f32.xlu1 %v1475_v28 }
 0x8cd   :  { %v1388_v29 = vpop.f32.mrb[20].mxu0 }
 0x8ce   :  { %v1392_v30 = vadd.f32 %v1388_v29, %v1154_v50  ;;  %v5953_v31 = vpop.f32.mrb[21].mxu0 }
 0x92a   :  { %v1477_v34 = vpop.xlane.xlu1 %1476 }
 0x92b   :  { %6421 = vrcp.f32 %v1477_v34 }
 0x935   :  { %v6422_v35 = vpop.eup %6421 }
 0x936   :  { %v1479_v36 = vmul.f32 %v6422_v35, %v6420_v27  ;;  %v6944_v35 = vld [vmem:[%s7520_s6] ss:$0 sm:$0xff] }
 0x938   :  { %5962 = vmatmul.mubr.msk.f32.vlgmr.msra.gmra.mrb[22].mxu0 %vm687_vm2, %v1479_v36 }
 0x939   :  { %5970 = vmatpush3.xpose.msk.msra.mxu0 %vm687_vm2, %v6763_v20  ;;  %5971 = vmatprep.mubr.msk.f32.mxu0 %vm6544_vm1, %v6543_v43 }
 0x93a   :  { %5979 = vmatprep.subr.mxu0 %v6543_v43 }
 0x93c   :  { %5972 = vmatmul.mubr.msk.f32.vlgmr.msra.gmra.mrb[24].mxu0 %vm687_vm2, %v6728_v59 }
 0x93d   :  { %5980 = vmatpush3.xpose.msk.msra.mxu0 %vm687_vm2, %v6769_v25  ;;  %5981 = vmatprep.mubr.msk.f32.mxu0 %vm6544_vm1, %v6543_v43 }
 0x93e   :  { %5989 = vmatprep.subr.mxu0 %v6543_v43 }
 0x940   :  { %5982 = vmatmul.mubr.msk.f32.vlgmr.msra.gmra.mrb[26].mxu0 %vm687_vm2, %v6736_v2 }
 0x941   :  { %5990 = vmatpush3.msra.mxu0 %v6802_v23  ;;  %5991 = vmatprep.mubr.msk.f32.mxu0 %vm6544_vm1, %v6543_v43 }
 0x942   :  { %5999 = vmatprep.subr.mxu0 %v6543_v43 }
 0xa0b   :  { %v1549_v20 = vpop.f32.mrb[22].mxu0 }
 0xa0c   :  { %v5963_v59 = vpop.f32.mrb[23].mxu0  ;;  %5967 = vmatmul.mubr.msk.f32.vlgmr.msra.gmra.mrb[22].mxu1 %vm687_vm2, %v1549_v20 }
 0xa0d   :  { %5975 = vmatpush3.msra.mxu1 %v6787_v40  ;;  %5976 = vmatprep.mubr.msk.f32.mxu1 %vm6544_vm1, %v6543_v43 }
 0xa0e   :  { %5984 = vmatprep.subr.mxu1 %v6543_v43 }
 0xa0f   :  { %v1701_v25 = vpop.f32.mrb[24].mxu0 }
 0xa10   :  { %v5973_v2 = vpop.f32.mrb[25].mxu0  ;;  %v1705_v23 = vsel %vm687_vm2, %v1701_v25, -inf }
 0xa11   :  { %1706 = vmax.xlane.f32.xlu0 %v1705_v23 }
 0xa13   :  { %v1861_v38 = vpop.f32.mrb[26].mxu0 }
 0xa14   :  { %v5983_v39 = vpop.f32.mrb[27].mxu0  ;;  %v1865_v33 = vsel %vm687_vm2, %v1861_v38, -inf }
 0xa15   :  { %1866 = vmax.xlane.f32.xlu1 %v1865_v33 }
 0xa9e   :  { %v1707_v6 = vpop.xlane.xlu0 %1706 }
 0xa9f   :  { %v1708_v14 = vsub.f32 %v1701_v25, %v1707_v6 }
 0xaa1   :  { %v1709_v46 = vmul.f32 1.442695, %v1708_v14 }
 0xaa2   :  { %v1867_v50 = vpop.xlane.xlu1 %1866 }
 0xaa3   :  { %6423 = vpow2.f32 %v1709_v46  ;;  %v1868_v40 = vsub.f32 %v1861_v38, %v1867_v50 }
 0xaa5   :  { %v1869_v57 = vmul.f32 1.442695, %v1868_v40  ;;  %v2619_v40 = vld [vmem:[%s7523_s9 + $0x8] sm:$0xff] }
 0xaa7   :  { %6425 = vpow2.f32 %v1869_v57  ;;  %v2621_v57 = vld [vmem:[%s7523_s9 + $0x18] sm:$0xff] }
 0xaad   :  { %v6424_v58 = vpop.eup %6423 }
 0xaae   :  { %v1711_v61 = vsel %vm687_vm2, %v6424_v58, 0.0 }
 0xaaf   :  { %1712 = vadd.xlane.f32.xlu0 %v1711_v61 }
 0xab1   :  { %v6426_v62 = vpop.eup %6425 }
 0xab2   :  { %v1871_v63 = vsel %vm687_vm2, %v6426_v62, 0.0 }
 0xab3   :  { %1872 = vadd.xlane.f32.xlu1 %v1871_v63 }
 0xadf   :  { %v1624_v5 = vpop.f32.mrb[22].mxu1 }
 0xae0   :  { %v6899_v47 = vadd.f32 %v1624_v5, %v1392_v30  ;;  %v5968_v54 = vpop.f32.mrb[23].mxu1 }
 0xb3c   :  { %v1713_v8 = vpop.xlane.xlu0 %1712 }
 0xb3d   :  { %6427 = vrcp.f32 %v1713_v8 }
 0xb40   :  { %v1873_v11 = vpop.xlane.xlu1 %1872 }
 0xb41   :  { %6429 = vrcp.f32 %v1873_v11  ;;  %v2618_v11 = vld [vmem:[%s7523_s9] sm:$0xff] }
 0xb47   :  { %v6428_v13 = vpop.eup %6427 }
 0xb48   :  { %v1715_v15 = vmul.f32 %v6428_v13, %v6424_v58  ;;  %v6267_v58 = vpack.c.bf16 %v2621_v57, %v2619_v40  ;;  %v2620_v13 = vld [vmem:[%s7523_s9 + $0x10] sm:$0xff] }
 0xb4a   :  { %5977 = vmatmul.mubr.msk.f32.vlgmr.msra.gmra.mrb[24].mxu1 %vm687_vm2, %v1715_v15  ;;  %v2623_v15 = vld [vmem:[%s7523_s9 + $0x28] sm:$0xff] }
 0xb4b   :  { %v6430_v17 = vpop.eup %6429  ;;  %5985 = vmatpush3.msra.mxu1 %v6791_v53  ;;  %5986 = vmatprep.mubr.msk.f32.mxu1 %vm6544_vm1, %v6543_v43 }
 0xb4c   :  { %v1875_v18 = vmul.f32 %v6430_v17, %v6426_v62  ;;  %5994 = vmatprep.subr.mxu1 %v6543_v43  ;;  %v2625_v17 = vld [vmem:[%s7523_s9 + $0x38] sm:$0xff] }
 0xb4e   :  { %5987 = vmatmul.mubr.msk.f32.vlgmr.msra.gmra.mrb[26].mxu1 %vm687_vm2, %v1875_v18 }
 0xb4f   :  { %5995 = vmatpush3.msra.mxu1 %v6813_v32  ;;  %5996 = vmatprep.mubr.msk.f32.mxu1 %vm6544_vm1, %v6543_v43 }
 0xb50   :  { %6004 = vmatprep.subr.mxu1 %v6543_v43 }
 0xc1d   :  { %v1785_v10 = vpop.f32.mrb[24].mxu1 }
 0xc1e   :  { %v5978_v19 = vpop.f32.mrb[25].mxu1  ;;  %5997 = vmatmul.mubr.msk.f32.vlgmr.msra.gmra.mrb[28].mxu1 %vm687_vm2, %v1785_v10 }
 0xc1f   :  { %6005 = vmatpush3.msra.mxu1 %v6789_v45  ;;  %6006 = vmatprep.mubr.msk.f32.mxu1 %vm6544_vm1, %v6543_v43  ;;  %v6269_v19 = vpack.c.bf16 %v2620_v13, %v2618_v11 }
 0xc20   :  { %6014 = vmatprep.subr.mxu1 %v6543_v43 }
 0xc21   :  { %v1945_v53 = vpop.f32.mrb[26].mxu1 }
 0xc22   :  { %v5988_v12 = vpop.f32.mrb[27].mxu1  ;;  %5992 = vmatmul.mubr.msk.f32.vlgmr.msra.gmra.mrb[28].mxu0 %vm687_vm2, %v1945_v53 }
 0xc23   :  { %6000 = vmatpush3.xpose.msk.msra.mxu0 %vm687_vm2, %v6766_v21  ;;  %6001 = vmatprep.mubr.msk.f32.mxu0 %vm6544_vm1, %v6543_v43 }
 0xc24   :  { %6009 = vmatprep.subr.mxu0 %v6543_v43 }
 0xc26   :  { %6002 = vmatmul.mubr.msk.f32.vlgmr.msra.gmra.mrb[30].mxu0 %vm687_vm2, %v6731_v60 }
 0xc27   :  { %6010 = vmatpush3.msra.mxu0 %v6841_v9  ;;  %6011 = vmatprep.mubr.msk.f32.mxu0 %vm6544_vm1, %v6543_v43 }
 0xc28   :  { %6019 = vmatprep.subr.mxu0 %v6543_v43 }
 0xcf1   :  { %v2091_v45 = vpop.f32.mrb[28].mxu1 }
 0xcf2   :  { %v5998_v32 = vpop.f32.mrb[29].mxu1 }
 0xcf3   :  { %v2622_v32 = vld [vmem:[%s7523_s9 + $0x20] sm:$0xff] }
 0xcf5   :  { %v2018_v51 = vpop.f32.mrb[28].mxu0 }
 0xcf6   :  { %v2092_v56 = vadd.f32 %v2091_v45, %v2018_v51  ;;  %v5993_v21 = vpop.f32.mrb[29].mxu0  ;;  %v6271_v45 = vpack.c.bf16 %v2625_v17, %v2623_v15  ;;  %v2624_v51 = vld [vmem:[%s7523_s9 + $0x30] sm:$0xff] }
 0xcf7   :  { %v6273_v21 = vpack.c.bf16 %v2624_v51, %v2622_v32  ;;  %v2741_v32 = vld [vmem:[%s7525_s11 + $0x40] sm:$0xff]  ;;  %v2742_v51 = vld [vmem:[%s7525_s11 + $0x48] sm:$0xff] }
 0xcf9   :  { %v2167_v16 = vpop.f32.mrb[30].mxu0 }
 0xcfa   :  { %v6003_v22 = vpop.f32.mrb[31].mxu0  ;;  %v2171_v24 = vsel %vm687_vm2, %v2167_v16, -inf }
 0xcfb   :  { %2172 = vmax.xlane.f32.xlu0 %v2171_v24  ;;  %v5684_v22 = vld [vmem:[%s7522_s8] ss:$0 sm:$0xff] }
 0xd88   :  { %v2173_v27 = vpop.xlane.xlu0 %2172 }
 0xd89   :  { %v2174_v28 = vsub.f32 %v2167_v16, %v2173_v27 }
 0xd8b   :  { %v2175_v60 = vmul.f32 1.442695, %v2174_v28 }
 0xd8d   :  { %6431 = vpow2.f32 %v2175_v60  ;;  %v2626_v60 = vld [vmem:[%s7524_s10] sm:$0x3] }
 0xd97   :  { %v6432_v9 = vpop.eup %6431 }
 0xd98   :  { %v2177_v29 = vsel %vm687_vm2, %v6432_v9, 0.0 }
 0xd99   :  { %2178 = vadd.xlane.f32.xlu1 %v2177_v29 }
 0xe26   :  { %v2179_v30 = vpop.xlane.xlu1 %2178 }
 0xe27   :  { %6433 = vrcp.f32 %v2179_v30 }
 0xe31   :  { %v6434_v31 = vpop.eup %6433 }
 0xe32   :  { %v2181_v34 = vmul.f32 %v6434_v31, %v6432_v9  ;;  %v7003_v9 = vrot.slane %v2626_v60, %v6712_v48 }
 0xe34   :  { %6007 = vmatmul.mubr.msk.f32.vlgmr.msra.gmra.mrb[30].mxu1 %vm687_vm2, %v2181_v34 }
 0xe35   :  { %6015 = vmatpush3.xpose.msk.msra.mxu1 %vm687_vm2, %v6772_v26  ;;  %6016 = vmatprep.mubr.msk.f32.mxu1 %vm6544_vm1, %v6543_v43  ;;  %v2570_v26 = vadd.f32 %v6944_v35, %v6899_v47 }
 0xe36   :  { %6024 = vmatprep.subr.mxu1 %v6543_v43 }
 0xe38   :  { %6017 = vmatmul.mubr.msk.f32.vlgmr.msra.gmra.mrb[32].mxu1 %vm687_vm2, %v6739_v3 }
 0xe39   :  { %6025 = vmatpush3.msra.mxu1 %v6867_v37  ;;  %6026 = vmatprep.mubr.msk.f32.mxu1 %vm6544_vm1, %v6543_v43  ;;  %v6953_v37 = vadd.f32 %v2570_v26, %v6633_v0 }
 0xe3b   :  { %v2576_v2 = vsel %vm63_vm0, %v6953_v37, 0.0 }
 0xf07   :  { %v2251_v36 = vpop.f32.mrb[30].mxu1 }
 0xf08   :  { %v6008_v20 = vpop.f32.mrb[31].mxu1  ;;  %6012 = vmatmul.mubr.msk.f32.vlgmr.msra.gmra.mrb[32].mxu0 %vm687_vm2, %v2251_v36  ;;  %v7007_v36 = vrot.slane %v2626_v60, %v6701_v42  ;;  %v2747_v60 = vld [vmem:[%s7525_s11 + $0x70] sm:$0xff] }
 0xf09   :  { %6020 = vmatpush3.msra.mxu0 %v6793_v55  ;;  %6021 = vmatprep.mubr.msk.f32.mxu0 %vm6544_vm1, %v6543_v43 }
 0xf0a   :  { %6268 = vmatprep.subr.bf16.mxu0 %v6267_v58  ;;  %v2734_v58 = vld [vmem:[%s7525_s11 + $0x8] sm:$0xff] }
 0xf0b   :  { %v2401_v3 = vpop.f32.mrb[32].mxu1 }
 0xf0c   :  { %v6018_v59 = vpop.f32.mrb[33].mxu1  ;;  %v2405_v25 = vsel %vm687_vm2, %v2401_v3, -inf }
 0xf0d   :  { %2406 = vmax.xlane.f32.xlu0 %v2405_v25 }
 0xf11   :  { %2577 = vadd.xlane.f32.xlu0 %v2576_v2 }
 0xf9a   :  { %v2407_v23 = vpop.xlane.xlu0 %2406 }
 0xf9b   :  { %v2408_v38 = vsub.f32 %v2401_v3, %v2407_v23 }
 0xf9d   :  { %v2409_v39 = vmul.f32 1.442695, %v2408_v38 }
 0xf9e   :  { %v2578_v33 = vpop.xlane.xlu0 %2577 }
 0xf9f   :  { %6435 = vpow2.f32 %v2409_v39  ;;  %v2582_v55 = vmul.f32 0.03125, %v2578_v33 }
 0xfa1   :  { %v2584_v6 = vsub.f32 %v6953_v37, %v2582_v55  ;;  %v6491_v55 = vld [vmem:[%s7514_s0 + $0x8] sm:$0xff] }
 0xfa3   :  { %v2586_v14 = vmul.f32 %v2584_v6, %v2584_v6 }
 0xfa5   :  { %v2588_v0 = vsel %vm63_vm0, %v2586_v14, 0.0 }
 0xfa6   :  { %2589 = vadd.xlane.f32.xlu0 %v2588_v0 }
 0xfa9   :  { %v6436_v46 = vpop.eup %6435 }
 0xfaa   :  { %v2411_v50 = vsel %vm687_vm2, %v6436_v46, 0.0 }
 0xfab   :  { %2412 = vadd.xlane.f32.xlu1 %v2411_v50 }
 0xfdb   :  { %v2324_v61 = vpop.f32.mrb[32].mxu0 }
 0xfdc   :  { %v2328_v62 = vadd.f32 %v2324_v61, %v2092_v56  ;;  %v6013_v63 = vpop.f32.mrb[33].mxu0  ;;  %v6988_v56 = vld [vmem:[%s7521_s7] ss:$0 sm:$0xff]  ;;  %v2735_v61 = vld [vmem:[%s7525_s11 + $0x10] sm:$0xff] }
 0xfdd   :  { %v2736_v63 = vld [vmem:[%s7525_s11 + $0x18] sm:$0xff] }
0x1033   :  { %v2590_v5 = vpop.xlane.xlu0 %2589 }
0x1034   :  { %v2594_v47 = vmul.f32 0.03125, %v2590_v5  ;;  %v6279_v5 = vpack.c.bf16 %v2736_v63, %v2735_v61 }
0x1036   :  { %v2596_v54 = vadd.f32 1e-05, %v2594_v47  ;;  %v2737_v47 = vld [vmem:[%s7525_s11 + $0x20] sm:$0xff] }
0x1038   :  { %6437 = vrsqrt.f32 %v2596_v54  ;;  %v2413_v8 = vpop.xlane.xlu1 %2412  ;;  %v2738_v54 = vld [vmem:[%s7525_s11 + $0x28] sm:$0xff] }
0x1039   :  { %6439 = vrcp.f32 %v2413_v8  ;;  %v6283_v8 = vpack.c.bf16 %v2738_v54, %v2737_v47  ;;  %v2881_v47 = vld [vmem:[#allocation2 + $0x188] sm:$0xff] }
0x103a   :  { %v2893_v54 = vld [vmem:[#allocation2 + $0x1e8] sm:$0xff] }
0x1042   :  { %v6438_v18 = vpop.eup %6437 }
0x1043   :  { %v6440_v10 = vpop.eup %6439  ;;  %v2600_v53 = vmul.f32 %v6438_v18, %v2584_v6 }
0x1044   :  { %v2415_v12 = vmul.f32 %v6440_v10, %v6436_v46 }
0x1045   :  { %v2608_v16 = vmul.f32 %v6988_v56, %v2600_v53  ;;  %v2739_v53 = vld [vmem:[%s7525_s11 + $0x30] sm:$0xff] }
0x1046   :  { %6022 = vmatmul.mubr.msk.f32.vlgmr.msra.gmra.mrb[34].mxu0 %vm687_vm2, %v2415_v12  ;;  %v2740_v12 = vld [vmem:[%s7525_s11 + $0x38] sm:$0xff] }
0x1047   :  { %6270 = vmatpush1.bf16.msra.mxu0 %v6269_v19  ;;  %2708 = vmatprep.mubr.f32.mxu0 %v6543_v43  ;;  %v2616_v24 = vadd.f32 %v5684_v22, %v2608_v16  ;;  %v2744_v16 = vld [vmem:[%s7525_s11 + $0x58] sm:$0xff] }
0x1048   :  { %6272 = vmatprep.subr.bf16.mxu0 %v6271_v45  ;;  %v6287_v45 = vpack.c.bf16 %v2740_v12, %v2739_v53  ;;  %v2916_v53 = vld [vmem:[#allocation2 + $0x2a0] sm:$0xff] }
0x104b   :  { %6274 = vmatpush1.bf16.msra.mxu0 %v6273_v21  ;;  %v2743_v21 = vld [vmem:[%s7525_s11 + $0x50] sm:$0xff] }
0x104e   :  { %5685 = vmatmul.mubr.msk.f32.vlgmr.msra.gmra.mrb[36].mxu0 %vm63_vm0, %v2616_v24  ;;  %v2745_v24 = vld [vmem:[%s7525_s11 + $0x60] sm:$0xff] }
0x104f   :  { %2714 = vmatprep.mubr.f32.mxu0 %v6543_v43 }
0x1119   :  { %v2485_v27 = vpop.f32.mrb[34].mxu0 }
0x111a   :  { %v6023_v28 = vpop.f32.mrb[35].mxu0  ;;  %6027 = vmatmul.mubr.msk.f32.vlgmr.msra.gmra.mrb[34].mxu1 %vm687_vm2, %v2485_v27  ;;  %v2746_v27 = vld [vmem:[%s7525_s11 + $0x68] sm:$0xff] }
0x111b   :  { %v6299_v28 = vpack.c.bf16 %v2746_v27, %v2745_v24 }
0x1121   :  { %v2710_v29 = vpop.f32.mrb[36].mxu0 }
0x1122   :  { %v2712_v30 = vpop.f32.mrb[37].mxu0  ;;  %v2711_v59 = vadd.f32 %v2710_v29, %v7007_v36  ;;  %v2748_v29 = vld [vmem:[%s7525_s11 + $0x78] sm:$0xff] }
0x1123   :  { %v2713_v31 = vadd.f32 %v2712_v30, %v7003_v9  ;;  %v6303_v30 = vpack.c.bf16 %v2748_v29, %v2747_v60  ;;  %v5690_v29 = vld [vmem:[%s7515_s1 + $0x1] ss:$0 sm:$0xff] }
0x1125   :  { %v2723_v34 = vmul.f32 0.70710677, %v2713_v31  ;;  %v2721_v20 = vmul.f32 0.5, %v2713_v31 }
0x1127   :  { %6441 = verf.f32 %v2723_v34 }
0x1131   :  { %v6442_v26 = vpop.eup %6441 }
0x1132   :  { %v2727_v3 = vadd.f32 1.0, %v6442_v26 }
0x1134   :  { %v2729_v25 = vmul.f32 %v2727_v3, %v2721_v20 }
0x1136   :  { %v2731_v2 = vmul.f32 %v2729_v25, %v2711_v59 }
0x1138   :  { %6061 = vmatprep.mubr.f32.mxu1 %v2731_v2 }
0x11ed   :  { %v2558_v23 = vpop.f32.mrb[34].mxu1 }
0x11ee   :  { %v2562_v38 = vadd.f32 %v2558_v23, %v2328_v62  ;;  %v6028_v39 = vpop.f32.mrb[35].mxu1 }
0x11ef   :  { %v5687_v39 = vld [vmem:[%s7526_s12] ss:$0 sm:$0xff] }
0x11f0   :  { %v2571_v33 = vadd.f32 %v6944_v35, %v2562_v38  ;;  %v2733_v35 = vld [vmem:[%s7525_s11] sm:$0xff] }
0x11f1   :  { %v6275_v62 = vpack.c.bf16 %v2734_v58, %v2733_v35 }
0x11f2   :  { %v7014_v6 = vadd.f32 %v6491_v55, %v2571_v33 }
0x11f3   :  { %6276 = vmatprep.subr.bf16.mxu1 %v6275_v62 }
0x11f4   :  { %v2579_v14 = vsel %vm63_vm0, %v7014_v6, 0.0  ;;  %6278 = vmatpush3.bf16.msra.mxu1 %v6275_v62 }
0x11f5   :  { %2580 = vadd.xlane.f32.xlu1 %v2579_v14  ;;  %6280 = vmatprep.subr.bf16.mxu1 %v6279_v5 }
0x11f8   :  { %6282 = vmatpush3.bf16.msra.mxu1 %v6279_v5 }
0x11f9   :  { %6284 = vmatprep.subr.bf16.mxu1 %v6283_v8 }
0x11fc   :  { %6286 = vmatpush3.bf16.msra.mxu1 %v6283_v8  ;;  %v6307_v8 = vpack.c.bf16 %v2893_v54, %v2881_v47  ;;  %v2899_v47 = vld [vmem:[#allocation2 + $0x218] sm:$0xff] }
0x11fd   :  { %6288 = vmatprep.subr.bf16.mxu1 %v6287_v45 }
0x11fe   :  { %6308 = vmatprep.subr.bf16.mxu0 %v6307_v8 }
0x1200   :  { %6290 = vmatpush3.bf16.msra.mxu1 %v6287_v45  ;;  %v2883_v45 = vld [vmem:[#allocation2 + $0x198] sm:$0xff] }
0x1282   :  { %v2581_v0 = vpop.xlane.xlu1 %2580 }
0x1283   :  { %v2583_v46 = vmul.f32 0.03125, %v2581_v0 }
0x1285   :  { %v2585_v50 = vsub.f32 %v7014_v6, %v2583_v46 }
0x1287   :  { %v2587_v40 = vmul.f32 %v2585_v50, %v2585_v50 }
0x1289   :  { %v2591_v57 = vsel %vm63_vm0, %v2587_v40, 0.0 }
0x128a   :  { %2592 = vadd.xlane.f32.xlu1 %v2591_v57 }
0x1317   :  { %v2593_v11 = vpop.xlane.xlu1 %2592 }
0x1318   :  { %v2595_v13 = vmul.f32 0.03125, %v2593_v11  ;;  %v2880_v11 = vld [vmem:[#allocation2 + $0x180] sm:$0xff] }
0x131a   :  { %v2597_v15 = vadd.f32 1e-05, %v2595_v13  ;;  %v2892_v13 = vld [vmem:[#allocation2 + $0x1e0] sm:$0xff] }
0x131c   :  { %6443 = vrsqrt.f32 %v2597_v15  ;;  %v6309_v15 = vpack.c.bf16 %v2892_v13, %v2880_v11  ;;  %v2886_v11 = vld [vmem:[#allocation2 + $0x1b0] sm:$0xff] }
0x131d   :  { %v2898_v13 = vld [vmem:[#allocation2 + $0x210] sm:$0xff] }
0x131e   :  { %6310 = vmatpush1.bf16.msra.mxu0 %v6309_v15  ;;  %v2911_v15 = vld [vmem:[#allocation2 + $0x278] sm:$0xff] }
0x1326   :  { %v6444_v17 = vpop.eup %6443 }
0x1327   :  { %v2601_v18 = vmul.f32 %v6444_v17, %v2585_v50  ;;  %v2905_v17 = vld [vmem:[#allocation2 + $0x248] sm:$0xff] }
0x1329   :  { %v2609_v10 = vmul.f32 %v6988_v56, %v2601_v18  ;;  %v6291_v56 = vpack.c.bf16 %v2742_v51, %v2741_v32  ;;  %v2917_v18 = vld [vmem:[#allocation2 + $0x2a8] sm:$0xff]  ;;  %v2895_v32 = vld [vmem:[#allocation2 + $0x1f8] sm:$0xff] }
0x132a   :  { %v6315_v51 = vpack.c.bf16 %v2895_v32, %v2883_v45  ;;  %v2901_v45 = vld [vmem:[#allocation2 + $0x228] sm:$0xff] }
0x132b   :  { %v2617_v19 = vadd.f32 %v5684_v22, %v2609_v10  ;;  %6292 = vmatprep.subr.bf16.mxu1 %v6291_v56  ;;  %v6295_v22 = vpack.c.bf16 %v2744_v16, %v2743_v21  ;;  %v6311_v10 = vpack.c.bf16 %v2917_v18, %v2905_v17  ;;  %v2923_v17 = vld [vmem:[#allocation2 + $0x2d8] sm:$0xff]  ;;  %v6333_v18 = vpack.c.bf16 %v2898_v13, %v2886_v11 }
0x132c   :  { %6294 = vmatpush3.bf16.msra.mxu1 %v6291_v56 }
0x132d   :  { %5686 = vmatmul.mubr.msk.f32.gmra.mrb[38].mxu0 %vm63_vm0, %v2617_v19  ;;  %6296 = vmatprep.subr.bf16.mxu1 %v6295_v22  ;;  %v2904_v19 = vld [vmem:[#allocation2 + $0x240] sm:$0xff] }
0x132e   :  { %3063 = vmatprep.mubr.f32.mxu0 %v6543_v43  ;;  %v6313_v12 = vpack.c.bf16 %v2916_v53, %v2904_v19  ;;  %6312 = vmatprep.subr.bf16.mxu0 %v6311_v10  ;;  %v6335_v10 = vpack.c.bf16 %v2923_v17, %v2911_v15  ;;  %v2910_v19 = vld [vmem:[#allocation2 + $0x270] sm:$0xff] }
0x132f   :  { %v2922_v53 = vld [vmem:[#allocation2 + $0x2d0] sm:$0xff] }
0x1330   :  { %6298 = vmatpush3.bf16.msra.mxu1 %v6295_v22  ;;  %6314 = vmatpush1.bf16.msra.mxu0 %v6313_v12  ;;  %v2889_v12 = vld [vmem:[#allocation2 + $0x1c8] sm:$0xff]  ;;  %v6337_v32 = vpack.c.bf16 %v2922_v53, %v2910_v19 }
0x1331   :  { %6300 = vmatprep.subr.bf16.mxu1 %v6299_v28  ;;  %6316 = vmatprep.subr.bf16.mxu0 %v6315_v51  ;;  %v6339_v51 = vpack.c.bf16 %v2901_v45, %v2889_v12 }
0x1334   :  { %6302 = vmatpush3.bf16.msra.mxu1 %v6299_v28 }
0x1335   :  { %6304 = vmatprep.subr.bf16.mxu1 %v6303_v30 }
0x1338   :  { %6306 = vmatpush3.bf16.msra.mxu1 %v6303_v30 }
0x1339   :  { %6064 = vmatprep.subr.mxu1 %v6543_v43 }
0x1400   :  { %v2716_v31 = vpop.f32.mrb[38].mxu0 }
0x1401   :  { %v2718_v34 = vpop.f32.mrb[39].mxu0  ;;  %v2717_v2 = vadd.f32 %v2716_v31, %v7007_v36 }
0x1402   :  { %v2719_v26 = vadd.f32 %v2718_v34, %v7003_v9  ;;  %v2882_v34 = vld [vmem:[#allocation2 + $0x190] sm:$0xff] }
0x1404   :  { %v2724_v20 = vmul.f32 0.70710677, %v2719_v26  ;;  %v2722_v59 = vmul.f32 0.5, %v2719_v26  ;;  %v2894_v26 = vld [vmem:[#allocation2 + $0x1f0] sm:$0xff] }
0x1406   :  { %6445 = verf.f32 %v2724_v20  ;;  %v5691_v20 = vld [vmem:[%s7516_s2 + $0x1] ss:$0 sm:$0xff] }
0x1410   :  { %v6446_v3 = vpop.eup %6445 }
0x1411   :  { %v2728_v25 = vadd.f32 1.0, %v6446_v3  ;;  %v2907_v3 = vld [vmem:[#allocation2 + $0x258] sm:$0xff] }
0x1413   :  { %v2730_v23 = vmul.f32 %v2728_v25, %v2722_v59  ;;  %v2919_v59 = vld [vmem:[#allocation2 + $0x2b8] sm:$0xff] }
0x1415   :  { %v2732_v38 = vmul.f32 %v2730_v23, %v2717_v2  ;;  %v6317_v2 = vpack.c.bf16 %v2894_v26, %v2882_v34  ;;  %v2890_v26 = vld [vmem:[#allocation2 + $0x1d0] sm:$0xff] }
0x1417   :  { %6062 = vmatmul.mubr.f32.vlgmr.msra.gmra.mrb[36].mxu1 %v2732_v38 }
0x1418   :  { %6066 = vmatprep.mubr.msk.f32.mxu1 %vm6544_vm1, %v6543_v43 }
0x14ea   :  { %v6063_v33 = vpop.f32.mrb[36].mxu1 }
0x14eb   :  { %v2828_v55 = vadd.f32 %v6063_v33, %v5687_v39  ;;  %v2822_v9 = vpop.f32.mrb[37].mxu1  ;;  %v2906_v33 = vld [vmem:[#allocation2 + $0x250] sm:$0xff] }
0x14ec   :  { %v2823_v14 = vadd.f32 %v5687_v39, %v2822_v9  ;;  %v6319_v39 = vpack.c.bf16 %v2919_v59, %v2907_v3  ;;  %v2885_v9 = vld [vmem:[#allocation2 + $0x1a8] sm:$0xff]  ;;  %v2915_v3 = vld [vmem:[#allocation2 + $0x298] sm:$0xff] }
0x14ed   :  { %v7080_v0 = vadd.f32 %v2828_v55, %v7014_v6  ;;  %v2918_v55 = vld [vmem:[#allocation2 + $0x2b0] sm:$0xff]  ;;  %v2927_v59 = vld [vmem:[#allocation2 + $0x2f8] sm:$0xff] }
0x14ee   :  { %v7083_v46 = vadd.f32 %v2823_v14, %v6953_v37  ;;  %v2897_v14 = vld [vmem:[#allocation2 + $0x208] sm:$0xff] }
0x14ef   :  { %v2840_v36 = vsel %vm63_vm0, %v7080_v0, 0.0 }
0x14f0   :  { %2841 = vadd.xlane.f32.xlu1 %v2840_v36  ;;  %v2837_v50 = vsel %vm63_vm0, %v7083_v46, 0.0  ;;  %v6321_v36 = vpack.c.bf16 %v2918_v55, %v2906_v33  ;;  %v5692_v55 = vld [vmem:[%s7518_s4 + $0xc] sm:$0xff] }
0x14f1   :  { %2838 = vadd.xlane.f32.xlu0 %v2837_v50 }
0x157d   :  { %v2842_v40 = vpop.xlane.xlu1 %2841 }
0x157e   :  { %v2844_v57 = vmul.f32 0.03125, %v2842_v40  ;;  %v2839_v35 = vpop.xlane.xlu0 %2838  ;;  %v6323_v40 = vpack.c.bf16 %v2897_v14, %v2885_v9 }
0x157f   :  { %v2843_v58 = vmul.f32 0.03125, %v2839_v35  ;;  %v2896_v35 = vld [vmem:[#allocation2 + $0x200] sm:$0xff] }
0x1580   :  { %v2846_v61 = vsub.f32 %v7080_v0, %v2844_v57  ;;  %v2884_v57 = vld [vmem:[#allocation2 + $0x1a0] sm:$0xff] }
0x1581   :  { %v2845_v6 = vsub.f32 %v7083_v46, %v2843_v58  ;;  %v2909_v58 = vld [vmem:[#allocation2 + $0x268] sm:$0xff] }
0x1582   :  { %v2848_v62 = vmul.f32 %v2846_v61, %v2846_v61 }
0x1583   :  { %v2847_v63 = vmul.f32 %v2845_v6, %v2845_v6 }
0x1584   :  { %v2852_v37 = vsel %vm63_vm0, %v2848_v62, 0.0 }
0x1585   :  { %2853 = vadd.xlane.f32.xlu1 %v2852_v37  ;;  %v2849_v5 = vsel %vm63_vm0, %v2847_v63, 0.0  ;;  %v2908_v63 = vld [vmem:[#allocation2 + $0x260] sm:$0xff] }
0x1586   :  { %2850 = vadd.xlane.f32.xlu0 %v2849_v5  ;;  %v2920_v37 = vld [vmem:[#allocation2 + $0x2c0] sm:$0xff]  ;;  %v2887_v5 = vld [vmem:[#allocation2 + $0x1b8] sm:$0xff] }
0x1587   :  { %v6329_v54 = vpack.c.bf16 %v2920_v37, %v2908_v63  ;;  %v6331_v8 = vpack.c.bf16 %v2899_v47, %v2887_v5  ;;  %v2952_v47 = vrot.slane %v5692_v55, %v177_v52 }
0x1612   :  { %v2854_v56 = vpop.xlane.xlu1 %2853 }
0x1613   :  { %v2856_v21 = vmul.f32 0.03125, %v2854_v56  ;;  %v2851_v16 = vpop.xlane.xlu0 %2850  ;;  %v2888_v56 = vld [vmem:[#allocation2 + $0x1c0] sm:$0xff] }
0x1614   :  { %v2855_v22 = vmul.f32 0.03125, %v2851_v16  ;;  %v2913_v16 = vld [vmem:[#allocation2 + $0x288] sm:$0xff] }
0x1615   :  { %v2858_v24 = vadd.f32 1e-05, %v2856_v21  ;;  %v2900_v21 = vld [vmem:[#allocation2 + $0x220] sm:$0xff] }
0x1616   :  { %v2857_v27 = vadd.f32 1e-05, %v2855_v22  ;;  %v2925_v22 = vld [vmem:[#allocation2 + $0x2e8] sm:$0xff] }
0x1617   :  { %6447 = vrsqrt.f32 %v2858_v24  ;;  %v6341_v24 = vpack.c.bf16 %v2900_v21, %v2888_v56  ;;  %v7197_v56 = vrot.slane %v5692_v55, %v189_v7 }
0x1618   :  { %6449 = vrsqrt.f32 %v2857_v27  ;;  %v6343_v27 = vpack.c.bf16 %v2925_v22, %v2913_v16 }
0x1621   :  { %v6448_v28 = vpop.eup %6447 }
0x1622   :  { %v6450_v60 = vpop.eup %6449  ;;  %v2862_v30 = vmul.f32 %v6448_v28, %v2846_v61  ;;  %v2921_v61 = vld [vmem:[#allocation2 + $0x2c8] sm:$0xff]  ;;  %v2912_v28 = vld [vmem:[#allocation2 + $0x280] sm:$0xff] }
0x1623   :  { %v2861_v31 = vmul.f32 %v6450_v60, %v2845_v6  ;;  %v6325_v6 = vpack.c.bf16 %v2896_v35, %v2884_v57  ;;  %v6327_v62 = vpack.c.bf16 %v2921_v61, %v2909_v58  ;;  %v2924_v60 = vld [vmem:[#allocation2 + $0x2e0] sm:$0xff] }
0x1624   :  { %v2870_v23 = vmul.f32 %v5690_v29, %v2862_v30  ;;  %v2903_v30 = vld [vmem:[#allocation2 + $0x238] sm:$0xff] }
0x1625   :  { %v2869_v25 = vmul.f32 %v5690_v29, %v2861_v31  ;;  %v2891_v29 = vld [vmem:[#allocation2 + $0x1d8] sm:$0xff]  ;;  %v6345_v31 = vpack.c.bf16 %v2924_v60, %v2912_v28 }
0x1626   :  { %v7104_v50 = vadd.f32 %v5691_v20, %v2870_v23  ;;  %v6347_v34 = vpack.c.bf16 %v2903_v30, %v2891_v29  ;;  %v2914_v23 = vld [vmem:[#allocation2 + $0x290] sm:$0xff] }
0x1627   :  { %v7099_v38 = vadd.f32 %v5691_v20, %v2869_v25  ;;  %v2902_v20 = vld [vmem:[#allocation2 + $0x230] sm:$0xff] }
0x1628   :  { %v6349_v25 = vpack.c.bf16 %v2902_v20, %v2890_v26 }
0x1629   :  { %5694 = vmatmul.mubr.msk.f32.vlgmr.msra.gmra.mrb[40].mxu0 %vm63_vm0, %v7099_v38 }
0x162a   :  { %6318 = vmatpush1.bf16.msra.mxu0 %v6317_v2  ;;  %3069 = vmatprep.mubr.f32.mxu0 %v6543_v43  ;;  %v6351_v2 = vpack.c.bf16 %v2927_v59, %v2915_v3 }
0x162b   :  { %6320 = vmatprep.subr.bf16.mxu0 %v6319_v39  ;;  %v2926_v39 = vld [vmem:[#allocation2 + $0x2f0] sm:$0xff] }
0x162c   :  { %v6353_v33 = vpack.c.bf16 %v2926_v39, %v2914_v23 }
0x162d   :  { %5695 = vmatmul.mubr.msk.f32.gmra.mrb[42].mxu0 %vm63_vm0, %v7104_v50 }
0x162e   :  { %6322 = vmatpush1.bf16.msra.mxu0 %v6321_v36  ;;  %3140 = vmatprep.mubr.f32.mxu0 %v6543_v43  ;;  %v2936_v36 = vrot.slane %v5692_v55, %v6701_v42 }
0x162f   :  { %6324 = vmatprep.subr.bf16.mxu0 %v6323_v40  ;;  %v2940_v40 = vrot.slane %v5692_v55, %v6712_v48 }
0x1631   :  { %5696 = vmatmul.mubr.msk.f32.vlgmr.msra.gmra.mrb[44].mxu0 %vm63_vm0, %v7099_v38 }
0x1632   :  { %6326 = vmatpush1.bf16.msra.mxu0 %v6325_v6  ;;  %3146 = vmatprep.mubr.f32.mxu0 %v6543_v43  ;;  %v7155_v6 = vrot.slane %v5692_v55, %v6704_v44 }
0x1633   :  { %6328 = vmatprep.subr.bf16.mxu0 %v6327_v62  ;;  %v7158_v62 = vrot.slane %v5692_v55, %v6715_v49 }
0x1635   :  { %5697 = vmatmul.mubr.msk.f32.gmra.mrb[46].mxu0 %vm63_vm0, %v7104_v50 }
0x1636   :  { %6330 = vmatpush1.bf16.msra.mxu0 %v6329_v54  ;;  %3217 = vmatprep.mubr.f32.mxu0 %v6543_v43 }
0x1637   :  { %6332 = vmatprep.subr.bf16.mxu0 %v6331_v8  ;;  %v2956_v8 = vrot.slane %v5692_v55, %v181_v1 }
0x1639   :  { %5698 = vmatmul.mubr.msk.f32.vlgmr.msra.gmra.mrb[48].mxu0 %vm63_vm0, %v7099_v38 }
0x163a   :  { %6334 = vmatpush1.bf16.msra.mxu0 %v6333_v18  ;;  %3223 = vmatprep.mubr.f32.mxu0 %v6543_v43 }
0x163b   :  { %6336 = vmatprep.subr.bf16.mxu0 %v6335_v10 }
0x163d   :  { %5699 = vmatmul.mubr.msk.f32.gmra.mrb[50].mxu0 %vm63_vm0, %v7104_v50 }
0x163e   :  { %6338 = vmatpush1.bf16.msra.mxu0 %v6337_v32  ;;  %3294 = vmatprep.mubr.f32.mxu0 %v6543_v43  ;;  %v5693_v32 = vld [vmem:[%s7518_s4 + $0x14] sm:$0xf] }
0x163f   :  { %6340 = vmatprep.subr.bf16.mxu0 %v6339_v51  ;;  %v7193_v51 = vrot.slane %v5692_v55, %v185_v4  ;;  %v2972_v28 = vrot.slane %v5693_v32, %v6712_v48  ;;  %v2980_v20 = vrot.slane %v5693_v32, %v6715_v49 }
0x1641   :  { %5700 = vmatmul.mubr.msk.f32.vlgmr.msra.gmra.mrb[52].mxu0 %vm63_vm0, %v7099_v38 }
0x1642   :  { %6342 = vmatpush1.bf16.msra.mxu0 %v6341_v24  ;;  %3300 = vmatprep.mubr.f32.mxu0 %v6543_v43  ;;  %v2968_v24 = vrot.slane %v5693_v32, %v6701_v42 }
0x1643   :  { %6344 = vmatprep.subr.bf16.mxu0 %v6343_v27 }
0x1645   :  { %5701 = vmatmul.mubr.msk.f32.gmra.mrb[54].mxu0 %vm63_vm0, %v7104_v50 }
0x1646   :  { %6346 = vmatpush1.bf16.msra.mxu0 %v6345_v31  ;;  %3371 = vmatprep.mubr.f32.mxu0 %v6543_v43 }
0x1647   :  { %6348 = vmatprep.subr.bf16.mxu0 %v6347_v34  ;;  %v2976_v34 = vrot.slane %v5693_v32, %v6704_v44 }
0x1649   :  { %5702 = vmatmul.mubr.msk.f32.vlgmr.msra.gmra.mrb[56].mxu0 %vm63_vm0, %v7099_v38 }
0x164a   :  { %6350 = vmatpush1.bf16.msra.mxu0 %v6349_v25  ;;  %3377 = vmatprep.mubr.f32.mxu0 %v6543_v43 }
0x164b   :  { %6352 = vmatprep.subr.bf16.mxu0 %v6351_v2 }
0x164d   :  { %5703 = vmatmul.mubr.msk.f32.gmra.mrb[58].mxu0 %vm63_vm0, %v7104_v50 }
0x164e   :  { %6354 = vmatpush1.bf16.msra.mxu0 %v6353_v33  ;;  %3448 = vmatprep.mubr.f32.mxu0 %v6543_v43 }
0x164f   :  { %6074 = vmatprep.subr.mxu0 %v6543_v43 }
0x1651   :  { %5704 = vmatmul.mubr.msk.f32.vlgmr.msra.gmra.mrb[60].mxu0 %vm63_vm0, %v7099_v38 }
0x1652   :  { %3454 = vmatprep.mubr.f32.mxu0 %v6543_v43 }
0x1655   :  { %5705 = vmatmul.mubr.msk.f32.gmra.mrb[62].mxu0 %vm63_vm0, %v7104_v50 }
0x1656   :  { %6076 = vmatprep.mubr.msk.f32.mxu0 %vm6544_vm1, %v6543_v43 }
0x16fc   :  { %v3065_v9 = vpop.f32.mrb[40].mxu0 }
0x16fd   :  { %v3067_v14 = vpop.f32.mrb[41].mxu0  ;;  %v3066_v18 = vadd.f32 %v3065_v9, %v2936_v36 }
0x16fe   :  { %v3068_v19 = vadd.f32 %v3067_v14, %v2940_v40 }
0x1700   :  { %v3071_v57 = vpop.f32.mrb[42].mxu0 }
0x1701   :  { %v7146_v38 = vadd.f32 %v3071_v57, %v2936_v36  ;;  %v3073_v35 = vpop.f32.mrb[43].mxu0 }
0x1702   :  { %v7148_v58 = vadd.f32 %v3073_v35, %v2940_v40 }
0x1704   :  { %v7150_v50 = vpop.f32.mrb[44].mxu0 }
0x1705   :  { %v7152_v61 = vpop.f32.mrb[45].mxu0 }
0x1708   :  { %v3148_v63 = vpop.f32.mrb[46].mxu0 }
0x1709   :  { %v7161_v37 = vadd.f32 %v3148_v63, %v7155_v6  ;;  %v3150_v5 = vpop.f32.mrb[47].mxu0 }
0x170a   :  { %v7166_v54 = vadd.f32 %v3150_v5, %v7158_v62 }
0x170c   :  { %v3219_v11 = vpop.f32.mrb[48].mxu0 }
0x170d   :  { %v3220_v13 = vadd.f32 %v3219_v11, %v2952_v47  ;;  %v3221_v15 = vpop.f32.mrb[49].mxu0 }
0x170e   :  { %v3222_v17 = vadd.f32 %v3221_v15, %v2956_v8 }
0x170f   :  { %6065 = vmatpush3.xpose.msk.msra.mxu1 %vm687_vm2, %v3220_v13 }
0x1710   :  { %v3225_v10 = vpop.f32.mrb[50].mxu0  ;;  %6075 = vmatpush3.xpose.msk.msra.mxu0 %vm687_vm2, %v3222_v17  ;;  %6069 = vmatprep.subr.mxu1 %v6543_v43 }
0x1711   :  { %v7173_v52 = vadd.f32 %v3225_v10, %v2952_v47  ;;  %v3227_v53 = vpop.f32.mrb[51].mxu0  ;;  %6084 = vmatprep.subr.mxu0 %v6543_v43 }
0x1712   :  { %v7176_v12 = vadd.f32 %v3227_v53, %v2956_v8  ;;  %6067 = vmatmul.mubr.msk.f32.vlgmr.msra.gmra.mrb[38].mxu1 %vm687_vm2, %v3066_v18  ;;  %v7227_v18 = vld [vmem:[%s7519_s5 + $0x28] sm:$0xff] }
0x1713   :  { %6077 = vmatmul.mubr.msk.f32.vlgmr.msra.gmra.mrb[64].mxu0 %vm687_vm2, %v3068_v19  ;;  %6071 = vmatprep.mubr.msk.f32.mxu1 %vm6544_vm1, %v6543_v43 }
0x1714   :  { %v7182_v1 = vpop.f32.mrb[52].mxu0  ;;  %6086 = vmatprep.mubr.msk.f32.mxu0 %vm6544_vm1, %v6543_v43  ;;  %6085 = vmatpush3.msra.mxu0 %v7227_v18 }
0x1715   :  { %v7186_v45 = vpop.f32.mrb[53].mxu0  ;;  %6094 = vmatprep.subr.mxu0 %v6543_v43 }
0x1718   :  { %v3302_v21 = vpop.f32.mrb[54].mxu0 }
0x1719   :  { %v7200_v16 = vadd.f32 %v3302_v21, %v7193_v51  ;;  %v3304_v22 = vpop.f32.mrb[55].mxu0 }
0x171a   :  { %v7204_v27 = vadd.f32 %v3304_v22, %v7197_v56 }
0x171c   :  { %v3373_v60 = vpop.f32.mrb[56].mxu0 }
0x171d   :  { %v3374_v29 = vadd.f32 %v3373_v60, %v2968_v24  ;;  %v3375_v4 = vpop.f32.mrb[57].mxu0 }
0x171e   :  { %v3376_v30 = vadd.f32 %v3375_v4, %v2972_v28 }
0x171f   :  { %6070 = vmatpush3.msra.mxu1 %v3374_v29  ;;  %v3297_v29 = vadd.f32 %v7182_v1, %v7193_v51 }
0x1720   :  { %v3379_v41 = vpop.f32.mrb[58].mxu0  ;;  %6079 = vmatprep.subr.mxu1 %v6543_v43 }
0x1721   :  { %v7208_v7 = vadd.f32 %v3379_v41, %v2968_v24  ;;  %v3381_v31 = vpop.f32.mrb[59].mxu0  ;;  %v7238_v24 = vld [vmem:[%s7519_s5 + $0x20] sm:$0xff]  ;;  %v3143_v41 = vadd.f32 %v7150_v50, %v7155_v6 }
0x1722   :  { %v7211_v26 = vadd.f32 %v3381_v31, %v2972_v28 }
0x1724   :  { %v3450_v3 = vpop.f32.mrb[60].mxu0 }
0x1725   :  { %v3451_v59 = vadd.f32 %v3450_v3, %v2976_v34  ;;  %v3452_v25 = vpop.f32.mrb[61].mxu0 }
0x1726   :  { %v7214_v2 = vadd.f32 %v3452_v25, %v2980_v20 }
0x1728   :  { %v3456_v23 = vpop.f32.mrb[62].mxu0 }
0x1729   :  { %v7216_v39 = vadd.f32 %v3456_v23, %v2976_v34  ;;  %v3458_v33 = vpop.f32.mrb[63].mxu0 }
0x172a   :  { %v7218_v55 = vadd.f32 %v3458_v33, %v2980_v20 }
0x17e5   :  { %v3533_v9 = vpop.f32.mrb[38].mxu1 }
0x17e6   :  { %v6068_v14 = vpop.f32.mrb[39].mxu1  ;;  %v3695_v36 = vpop.f32.mrb[64].mxu0  ;;  %v3537_v44 = vsel %vm687_vm2, %v3533_v9, -inf }
0x17e7   :  { %v6078_v40 = vpop.f32.mrb[65].mxu0  ;;  %3538 = vmax.xlane.f32.xlu0 %v3537_v44  ;;  %v3699_v49 = vsel %vm687_vm2, %v3695_v36, -inf  ;;  %v7266_v14 = vld [vmem:[%s7519_s5 + $0x30] sm:$0xff] }
0x17e8   :  { %3700 = vmax.xlane.f32.xlu1 %v3699_v49  ;;  %v3299_v49 = vadd.f32 %v7186_v45, %v7197_v56 }
0x1874   :  { %v3539_v57 = vpop.xlane.xlu0 %3538 }
0x1875   :  { %v3540_v35 = vsub.f32 %v3533_v9, %v3539_v57  ;;  %v3701_v63 = vpop.xlane.xlu1 %3700  ;;  %v3145_v57 = vadd.f32 %v7152_v61, %v7158_v62 }
0x1876   :  { %v3702_v5 = vsub.f32 %v3695_v36, %v3701_v63 }
0x1877   :  { %v3541_v47 = vmul.f32 1.442695, %v3540_v35 }
0x1878   :  { %v3703_v8 = vmul.f32 1.442695, %v3702_v5 }
0x1879   :  { %6451 = vpow2.f32 %v3541_v47 }
0x187a   :  { %6453 = vpow2.f32 %v3703_v8 }
0x1883   :  { %v6452_v11 = vpop.eup %6451 }
0x1884   :  { %v6454_v13 = vpop.eup %6453  ;;  %v3543_v15 = vsel %vm687_vm2, %v6452_v11, 0.0 }
0x1885   :  { %3544 = vadd.xlane.f32.xlu0 %v3543_v15  ;;  %v3705_v17 = vsel %vm687_vm2, %v6454_v13, 0.0 }
0x1886   :  { %3706 = vadd.xlane.f32.xlu1 %v3705_v17 }
0x1912   :  { %v3545_v10 = vpop.xlane.xlu0 %3544 }
0x1913   :  { %6455 = vrcp.f32 %v3545_v10  ;;  %v3707_v19 = vpop.xlane.xlu1 %3706 }
0x1914   :  { %6457 = vrcp.f32 %v3707_v19 }
0x191d   :  { %v6456_v53 = vpop.eup %6455 }
0x191e   :  { %v3547_v32 = vmul.f32 %v6456_v53, %v6452_v11  ;;  %v6458_v21 = vpop.eup %6457 }
0x191f   :  { %v3709_v22 = vmul.f32 %v6458_v21, %v6454_v13 }
0x1920   :  { %6072 = vmatmul.mubr.msk.f32.vlgmr.msra.gmra.mrb[40].mxu1 %vm687_vm2, %v3547_v32 }
0x1921   :  { %6080 = vmatpush3.msra.mxu1 %v3376_v30  ;;  %6081 = vmatprep.mubr.msk.f32.mxu1 %vm6544_vm1, %v6543_v43 }
0x1922   :  { %6089 = vmatprep.subr.mxu1 %v6543_v43 }
0x1924   :  { %6082 = vmatmul.mubr.msk.f32.vlgmr.msra.gmra.mrb[42].mxu1 %vm687_vm2, %v3709_v22 }
0x1925   :  { %6090 = vmatpush3.msra.mxu1 %v7238_v24  ;;  %6091 = vmatprep.mubr.msk.f32.mxu1 %vm6544_vm1, %v6543_v43 }
0x1926   :  { %6099 = vmatprep.subr.mxu1 %v6543_v43 }
0x19f3   :  { %v3617_v28 = vpop.f32.mrb[40].mxu1 }
0x19f4   :  { %v6073_v60 = vpop.f32.mrb[41].mxu1  ;;  %6092 = vmatmul.mubr.msk.f32.vlgmr.msra.gmra.mrb[44].mxu1 %vm687_vm2, %v3617_v28 }
0x19f5   :  { %6100 = vmatpush3.msra.mxu1 %v3451_v59  ;;  %6101 = vmatprep.mubr.msk.f32.mxu1 %vm6544_vm1, %v6543_v43 }
0x19f6   :  { %6109 = vmatprep.subr.mxu1 %v6543_v43 }
0x19f7   :  { %v3779_v4 = vpop.f32.mrb[42].mxu1 }
0x19f8   :  { %v6083_v30 = vpop.f32.mrb[43].mxu1  ;;  %6087 = vmatmul.mubr.msk.f32.vlgmr.msra.gmra.mrb[66].mxu0 %vm687_vm2, %v3779_v4 }
0x19f9   :  { %6095 = vmatpush3.xpose.msk.msra.mxu0 %vm687_vm2, %v3297_v29  ;;  %6096 = vmatprep.mubr.msk.f32.mxu0 %vm6544_vm1, %v6543_v43 }
0x19fa   :  { %6104 = vmatprep.subr.mxu0 %v6543_v43 }
0x19fc   :  { %6097 = vmatmul.mubr.msk.f32.vlgmr.msra.gmra.mrb[68].mxu0 %vm687_vm2, %v3143_v41 }
0x19fd   :  { %6106 = vmatprep.mubr.msk.f32.mxu0 %vm6544_vm1, %v6543_v43  ;;  %6105 = vmatpush3.msra.mxu0 %v7266_v14 }
0x19fe   :  { %6114 = vmatprep.subr.mxu0 %v6543_v43 }
0x1ac7   :  { %v3927_v1 = vpop.f32.mrb[44].mxu1 }
0x1ac8   :  { %v6093_v51 = vpop.f32.mrb[45].mxu1 }
0x1acb   :  { %v3854_v31 = vpop.f32.mrb[66].mxu0 }
0x1acc   :  { %v3928_v34 = vadd.f32 %v3927_v1, %v3854_v31  ;;  %v6088_v20 = vpop.f32.mrb[67].mxu0 }
0x1acf   :  { %v4003_v3 = vpop.f32.mrb[68].mxu0 }
0x1ad0   :  { %v6098_v59 = vpop.f32.mrb[69].mxu0  ;;  %v4007_v25 = vsel %vm687_vm2, %v4003_v3, -inf }
0x1ad1   :  { %4008 = vmax.xlane.f32.xlu0 %v4007_v25 }
0x1b5e   :  { %v4009_v23 = vpop.xlane.xlu0 %4008 }
0x1b5f   :  { %v4010_v33 = vsub.f32 %v4003_v3, %v4009_v23 }
0x1b61   :  { %v4011_v50 = vmul.f32 1.442695, %v4010_v33 }
0x1b63   :  { %6459 = vpow2.f32 %v4011_v50 }
0x1b6d   :  { %v6460_v6 = vpop.eup %6459 }
0x1b6e   :  { %v4013_v9 = vsel %vm687_vm2, %v6460_v6, 0.0 }
0x1b6f   :  { %4014 = vadd.xlane.f32.xlu1 %v4013_v9 }
0x1bfc   :  { %v4015_v36 = vpop.xlane.xlu1 %4014 }
0x1bfd   :  { %6461 = vrcp.f32 %v4015_v36 }
0x1c07   :  { %v6462_v44 = vpop.eup %6461 }
0x1c08   :  { %v4017_v40 = vmul.f32 %v6462_v44, %v6460_v6 }
0x1c0a   :  { %6102 = vmatmul.mubr.msk.f32.vlgmr.msra.gmra.mrb[46].mxu1 %vm687_vm2, %v4017_v40 }
0x1c0b   :  { %6110 = vmatpush3.xpose.msk.msra.mxu1 %vm687_vm2, %v3299_v49  ;;  %6111 = vmatprep.mubr.msk.f32.mxu1 %vm6544_vm1, %v6543_v43 }
0x1c0c   :  { %6119 = vmatprep.subr.mxu1 %v6543_v43 }
0x1c0e   :  { %6112 = vmatmul.mubr.msk.f32.vlgmr.msra.gmra.mrb[48].mxu1 %vm687_vm2, %v3145_v57 }
0x1c0f   :  { %6121 = vmatprep.mubr.msk.f32.mxu1 %vm6544_vm1, %v6543_v43 }
0x1cdd   :  { %v4087_v35 = vpop.f32.mrb[46].mxu1 }
0x1cde   :  { %v6103_v63 = vpop.f32.mrb[47].mxu1  ;;  %6107 = vmatmul.mubr.msk.f32.vlgmr.msra.gmra.mrb[70].mxu0 %vm687_vm2, %v4087_v35 }
0x1cdf   :  { %6115 = vmatpush3.msra.mxu0 %v7214_v2  ;;  %6116 = vmatprep.mubr.msk.f32.mxu0 %vm6544_vm1, %v6543_v43  ;;  %v7292_v2 = vld [vmem:[%s7519_s5 + $0x38] sm:$0xff] }
0x1ce0   :  { %6124 = vmatprep.subr.mxu0 %v6543_v43  ;;  %6120 = vmatpush3.msra.mxu1 %v7292_v2 }
0x1ce1   :  { %v4239_v45 = vpop.f32.mrb[48].mxu1  ;;  %6129 = vmatprep.subr.mxu1 %v6543_v43 }
0x1ce2   :  { %v6113_v61 = vpop.f32.mrb[49].mxu1  ;;  %v4243_v62 = vsel %vm687_vm2, %v4239_v45, -inf }
0x1ce3   :  { %4244 = vmax.xlane.f32.xlu0 %v4243_v62 }
0x1d70   :  { %v4245_v56 = vpop.xlane.xlu0 %4244 }
0x1d71   :  { %v4246_v5 = vsub.f32 %v4239_v45, %v4245_v56 }
0x1d73   :  { %v4247_v47 = vmul.f32 1.442695, %v4246_v5 }
0x1d75   :  { %6463 = vpow2.f32 %v4247_v47 }
0x1d7f   :  { %v6464_v8 = vpop.eup %6463 }
0x1d80   :  { %v4249_v11 = vsel %vm687_vm2, %v6464_v8, 0.0 }
0x1d81   :  { %4250 = vadd.xlane.f32.xlu1 %v4249_v11 }
0x1db1   :  { %v4162_v13 = vpop.f32.mrb[70].mxu0 }
0x1db2   :  { %v4166_v15 = vadd.f32 %v4162_v13, %v3928_v34  ;;  %v6108_v17 = vpop.f32.mrb[71].mxu0 }
0x1e0e   :  { %v4251_v10 = vpop.xlane.xlu1 %4250 }
0x1e0f   :  { %6465 = vrcp.f32 %v4251_v10 }
0x1e19   :  { %v6466_v19 = vpop.eup %6465 }
0x1e1a   :  { %v4253_v53 = vmul.f32 %v6466_v19, %v6464_v8  ;;  %v7369_v8 = vld [vmem:[%s7520_s6 + $0x1] ss:$0 sm:$0xff] }
0x1e1c   :  { %6117 = vmatmul.mubr.msk.f32.vlgmr.msra.gmra.mrb[72].mxu0 %vm687_vm2, %v4253_v53 }
0x1e1d   :  { %6125 = vmatpush3.xpose.msk.msra.mxu0 %vm687_vm2, %v7173_v52  ;;  %6126 = vmatprep.mubr.msk.f32.mxu0 %vm6544_vm1, %v6543_v43 }
0x1e1e   :  { %6134 = vmatprep.subr.mxu0 %v6543_v43 }
0x1e20   :  { %6127 = vmatmul.mubr.msk.f32.vlgmr.msra.gmra.mrb[74].mxu0 %vm687_vm2, %v7146_v38 }
0x1e21   :  { %6135 = vmatpush3.xpose.msk.msra.mxu0 %vm687_vm2, %v7176_v12  ;;  %6136 = vmatprep.mubr.msk.f32.mxu0 %vm6544_vm1, %v6543_v43 }
0x1e22   :  { %6144 = vmatprep.subr.mxu0 %v6543_v43 }
0x1e24   :  { %6137 = vmatmul.mubr.msk.f32.vlgmr.msra.gmra.mrb[76].mxu0 %vm687_vm2, %v7148_v58 }
0x1e25   :  { %6145 = vmatpush3.msra.mxu0 %v7227_v18  ;;  %6146 = vmatprep.mubr.msk.f32.mxu0 %vm6544_vm1, %v6543_v43 }
0x1e26   :  { %6154 = vmatprep.subr.mxu0 %v6543_v43 }
0x1eef   :  { %v4323_v52 = vpop.f32.mrb[72].mxu0 }
0x1ef0   :  { %v6118_v38 = vpop.f32.mrb[73].mxu0  ;;  %6122 = vmatmul.mubr.msk.f32.vlgmr.msra.gmra.mrb[50].mxu1 %vm687_vm2, %v4323_v52 }
0x1ef1   :  { %6130 = vmatpush3.msra.mxu1 %v7208_v7  ;;  %6131 = vmatprep.mubr.msk.f32.mxu1 %vm6544_vm1, %v6543_v43 }
0x1ef2   :  { %6139 = vmatprep.subr.mxu1 %v6543_v43 }
0x1ef3   :  { %v4475_v12 = vpop.f32.mrb[74].mxu0 }
0x1ef4   :  { %v6128_v58 = vpop.f32.mrb[75].mxu0  ;;  %v4479_v18 = vsel %vm687_vm2, %v4475_v12, -inf }
0x1ef5   :  { %4480 = vmax.xlane.f32.xlu0 %v4479_v18 }
0x1ef7   :  { %v4635_v32 = vpop.f32.mrb[76].mxu0 }
0x1ef8   :  { %v6138_v21 = vpop.f32.mrb[77].mxu0  ;;  %v4639_v22 = vsel %vm687_vm2, %v4635_v32, -inf }
0x1ef9   :  { %4640 = vmax.xlane.f32.xlu1 %v4639_v22  ;;  %v5749_v21 = vld [vmem:[%s7523_s9 + $0x48] sm:$0xff]  ;;  %v5751_v22 = vld [vmem:[%s7523_s9 + $0x58] sm:$0xff] }
0x1f82   :  { %v4481_v28 = vpop.xlane.xlu0 %4480 }
0x1f83   :  { %v4482_v60 = vsub.f32 %v4475_v12, %v4481_v28  ;;  %v6355_v28 = vpack.c.bf16 %v5751_v22, %v5749_v21 }
0x1f85   :  { %v4483_v29 = vmul.f32 1.442695, %v4482_v60 }
0x1f86   :  { %v4641_v4 = vpop.xlane.xlu1 %4640 }
0x1f87   :  { %6467 = vpow2.f32 %v4483_v29  ;;  %v4642_v7 = vsub.f32 %v4635_v32, %v4641_v4 }
0x1f89   :  { %v4643_v30 = vmul.f32 1.442695, %v4642_v7 }
0x1f8b   :  { %6469 = vpow2.f32 %v4643_v30 }
0x1f91   :  { %v6468_v41 = vpop.eup %6467 }
0x1f92   :  { %v4485_v1 = vsel %vm687_vm2, %v6468_v41, 0.0 }
0x1f93   :  { %4486 = vadd.xlane.f32.xlu0 %v4485_v1 }
0x1f95   :  { %v6470_v51 = vpop.eup %6469 }
0x1f96   :  { %v4645_v31 = vsel %vm687_vm2, %v6470_v51, 0.0 }
0x1f97   :  { %4646 = vadd.xlane.f32.xlu1 %v4645_v31  ;;  %v5750_v31 = vld [vmem:[%s7523_s9 + $0x50] sm:$0xff] }
0x1fc3   :  { %v4398_v34 = vpop.f32.mrb[50].mxu1 }
0x1fc4   :  { %v7324_v20 = vadd.f32 %v4398_v34, %v4166_v15  ;;  %v6123_v3 = vpop.f32.mrb[51].mxu1  ;;  %v5753_v34 = vld [vmem:[%s7523_s9 + $0x68] sm:$0xff] }
0x2020   :  { %v4487_v59 = vpop.xlane.xlu0 %4486 }
0x2021   :  { %6471 = vrcp.f32 %v4487_v59 }
0x2024   :  { %v4647_v25 = vpop.xlane.xlu1 %4646 }
0x2025   :  { %6473 = vrcp.f32 %v4647_v25 }
0x202b   :  { %v6472_v23 = vpop.eup %6471 }
0x202c   :  { %v4489_v33 = vmul.f32 %v6472_v23, %v6468_v41 }
0x202e   :  { %6132 = vmatmul.mubr.msk.f32.vlgmr.msra.gmra.mrb[52].mxu1 %vm687_vm2, %v4489_v33 }
0x202f   :  { %v6474_v50 = vpop.eup %6473  ;;  %6140 = vmatpush3.msra.mxu1 %v7211_v26  ;;  %6141 = vmatprep.mubr.msk.f32.mxu1 %vm6544_vm1, %v6543_v43 }
0x2030   :  { %v4649_v6 = vmul.f32 %v6474_v50, %v6470_v51  ;;  %6149 = vmatprep.subr.mxu1 %v6543_v43  ;;  %v5748_v51 = vld [vmem:[%s7523_s9 + $0x40] sm:$0xff] }
0x2031   :  { %v6357_v25 = vpack.c.bf16 %v5750_v31, %v5748_v51  ;;  %v5768_v51 = vld [vmem:[%s7525_s11 + $0xc8] sm:$0xff] }
0x2032   :  { %6142 = vmatmul.mubr.msk.f32.vlgmr.msra.gmra.mrb[54].mxu1 %vm687_vm2, %v4649_v6  ;;  %v5752_v6 = vld [vmem:[%s7523_s9 + $0x60] sm:$0xff] }
0x2033   :  { %6150 = vmatpush3.msra.mxu1 %v7238_v24  ;;  %6151 = vmatprep.mubr.msk.f32.mxu1 %vm6544_vm1, %v6543_v43 }
0x2034   :  { %6159 = vmatprep.subr.mxu1 %v6543_v43 }
0x2101   :  { %v4559_v9 = vpop.f32.mrb[52].mxu1 }
0x2102   :  { %v6133_v36 = vpop.f32.mrb[53].mxu1  ;;  %6152 = vmatmul.mubr.msk.f32.vlgmr.msra.gmra.mrb[56].mxu1 %vm687_vm2, %v4559_v9  ;;  %v5754_v9 = vld [vmem:[%s7523_s9 + $0x70] sm:$0xff] }
0x2103   :  { %6160 = vmatpush3.msra.mxu1 %v7216_v39  ;;  %6161 = vmatprep.mubr.msk.f32.mxu1 %vm6544_vm1, %v6543_v43  ;;  %v7413_v36 = vld [vmem:[%s7521_s7 + $0x1] ss:$0 sm:$0xff] }
0x2104   :  { %6169 = vmatprep.subr.mxu1 %v6543_v43 }
0x2105   :  { %v4719_v26 = vpop.f32.mrb[54].mxu1 }
0x2106   :  { %v6143_v44 = vpop.f32.mrb[55].mxu1  ;;  %6147 = vmatmul.mubr.msk.f32.vlgmr.msra.gmra.mrb[78].mxu0 %vm687_vm2, %v4719_v26  ;;  %v6361_v26 = vpack.c.bf16 %v5754_v9, %v5752_v6 }
0x2107   :  { %6155 = vmatpush3.xpose.msk.msra.mxu0 %vm687_vm2, %v7200_v16  ;;  %6156 = vmatprep.mubr.msk.f32.mxu0 %vm6544_vm1, %v6543_v43 }
0x2108   :  { %6164 = vmatprep.subr.mxu0 %v6543_v43 }
0x210a   :  { %6157 = vmatmul.mubr.msk.f32.vlgmr.msra.gmra.mrb[80].mxu0 %vm687_vm2, %v7161_v37 }
0x210b   :  { %6165 = vmatpush3.msra.mxu0 %v7266_v14  ;;  %6166 = vmatprep.mubr.msk.f32.mxu0 %vm6544_vm1, %v6543_v43 }
0x210c   :  { %6174 = vmatprep.subr.mxu0 %v6543_v43 }
0x21d5   :  { %v4865_v39 = vpop.f32.mrb[56].mxu1 }
0x21d6   :  { %v6153_v24 = vpop.f32.mrb[57].mxu1 }
0x21d9   :  { %v4792_v40 = vpop.f32.mrb[78].mxu0 }
0x21da   :  { %v4866_v49 = vadd.f32 %v4865_v39, %v4792_v40  ;;  %v6148_v16 = vpop.f32.mrb[79].mxu0  ;;  %v5747_v39 = vld [vmem:[%s7522_s8 + $0x1] ss:$0 sm:$0xff] }
0x21db   :  { %v5756_v16 = vld [vmem:[%s7524_s10 + $0x2] sm:$0x3] }
0x21dd   :  { %v4941_v57 = vpop.f32.mrb[80].mxu0 }
0x21de   :  { %v6158_v35 = vpop.f32.mrb[81].mxu0  ;;  %v4945_v63 = vsel %vm687_vm2, %v4941_v57, -inf }
0x21df   :  { %4946 = vmax.xlane.f32.xlu0 %v4945_v63 }
0x226c   :  { %v4947_v45 = vpop.xlane.xlu0 %4946 }
0x226d   :  { %v4948_v61 = vsub.f32 %v4941_v57, %v4947_v45  ;;  %v7428_v57 = vrot.slane %v5756_v16, %v6712_v48 }
0x226f   :  { %v4949_v37 = vmul.f32 1.442695, %v4948_v61 }
0x2271   :  { %6475 = vpow2.f32 %v4949_v37  ;;  %v7432_v37 = vrot.slane %v5756_v16, %v6701_v42 }
0x227b   :  { %v6476_v14 = vpop.eup %6475 }
0x227c   :  { %v4951_v62 = vsel %vm687_vm2, %v6476_v14, 0.0 }
0x227d   :  { %4952 = vadd.xlane.f32.xlu1 %v4951_v62 }
0x230a   :  { %v4953_v56 = vpop.xlane.xlu1 %4952 }
0x230b   :  { %6477 = vrcp.f32 %v4953_v56 }
0x2315   :  { %v6478_v5 = vpop.eup %6477 }
0x2316   :  { %v4955_v47 = vmul.f32 %v6478_v5, %v6476_v14 }
0x2318   :  { %6162 = vmatmul.mubr.msk.f32.vlgmr.msra.gmra.mrb[58].mxu1 %vm687_vm2, %v4955_v47 }
0x2319   :  { %6170 = vmatpush3.xpose.msk.msra.mxu1 %vm687_vm2, %v7204_v27  ;;  %6171 = vmatprep.mubr.msk.f32.mxu1 %vm6544_vm1, %v6543_v43  ;;  %v5345_v27 = vadd.f32 %v7369_v8, %v7324_v20  ;;  %v5755_v20 = vld [vmem:[%s7523_s9 + $0x78] sm:$0xff] }
0x231a   :  { %6179 = vmatprep.subr.mxu1 %v6543_v43  ;;  %v6359_v50 = vpack.c.bf16 %v5755_v20, %v5753_v34  ;;  %v5769_v34 = vld [vmem:[%s7525_s11 + $0xd0] sm:$0xff]  ;;  %v5770_v20 = vld [vmem:[%s7525_s11 + $0xd8] sm:$0xff] }
0x231c   :  { %6172 = vmatmul.mubr.msk.f32.vlgmr.msra.gmra.mrb[60].mxu1 %vm687_vm2, %v7166_v54 }
0x231d   :  { %6180 = vmatpush3.msra.mxu1 %v7292_v2  ;;  %6181 = vmatprep.mubr.msk.f32.mxu1 %vm6544_vm1, %v6543_v43  ;;  %v7378_v2 = vadd.f32 %v5345_v27, %v7083_v46 }
0x231f   :  { %v5353_v10 = vsel %vm63_vm0, %v7378_v2, 0.0 }
0x23eb   :  { %v5025_v11 = vpop.f32.mrb[58].mxu1 }
0x23ec   :  { %v6163_v13 = vpop.f32.mrb[59].mxu1  ;;  %6167 = vmatmul.mubr.msk.f32.vlgmr.msra.gmra.mrb[82].mxu0 %vm687_vm2, %v5025_v11 }
0x23ed   :  { %6175 = vmatpush3.msra.mxu0 %v7218_v55  ;;  %6176 = vmatprep.mubr.msk.f32.mxu0 %vm6544_vm1, %v6543_v43 }
0x23ee   :  { %6356 = vmatprep.subr.bf16.mxu0 %v6355_v28 }
0x23ef   :  { %v5175_v54 = vpop.f32.mrb[60].mxu1 }
0x23f0   :  { %v6173_v15 = vpop.f32.mrb[61].mxu1  ;;  %v5179_v17 = vsel %vm687_vm2, %v5175_v54, -inf }
0x23f1   :  { %5180 = vmax.xlane.f32.xlu0 %v5179_v17 }
0x23f5   :  { %5354 = vadd.xlane.f32.xlu0 %v5353_v10 }
0x247e   :  { %v5181_v19 = vpop.xlane.xlu0 %5180 }
0x247f   :  { %v5182_v53 = vsub.f32 %v5175_v54, %v5181_v19 }
0x2481   :  { %v5183_v52 = vmul.f32 1.442695, %v5182_v53 }
0x2482   :  { %v5355_v38 = vpop.xlane.xlu0 %5354 }
0x2483   :  { %6479 = vpow2.f32 %v5183_v52  ;;  %v5359_v55 = vmul.f32 0.03125, %v5355_v38  ;;  %v5759_v52 = vld [vmem:[%s7525_s11 + $0x80] sm:$0xff] }
0x2485   :  { %v5361_v12 = vsub.f32 %v7378_v2, %v5359_v55  ;;  %v5762_v55 = vld [vmem:[%s7525_s11 + $0x98] sm:$0xff] }
0x2487   :  { %v5363_v58 = vmul.f32 %v5361_v12, %v5361_v12 }
0x2489   :  { %v5365_v46 = vsel %vm63_vm0, %v5363_v58, 0.0  ;;  %v5763_v58 = vld [vmem:[%s7525_s11 + $0xa0] sm:$0xff] }
0x248a   :  { %5366 = vadd.xlane.f32.xlu0 %v5365_v46  ;;  %v5764_v46 = vld [vmem:[%s7525_s11 + $0xa8] sm:$0xff] }
0x248d   :  { %v6480_v18 = vpop.eup %6479 }
0x248e   :  { %v5185_v32 = vsel %vm687_vm2, %v6480_v18, 0.0 }
0x248f   :  { %5186 = vadd.xlane.f32.xlu1 %v5185_v32 }
0x24bf   :  { %v5098_v60 = vpop.f32.mrb[82].mxu0 }
0x24c0   :  { %v5102_v29 = vadd.f32 %v5098_v60, %v4866_v49  ;;  %v6168_v4 = vpop.f32.mrb[83].mxu0 }
0x2517   :  { %v5367_v7 = vpop.xlane.xlu0 %5366 }
0x2518   :  { %v5371_v30 = vmul.f32 0.03125, %v5367_v7  ;;  %v5765_v7 = vld [vmem:[%s7525_s11 + $0xb0] sm:$0xff] }
0x251a   :  { %v5373_v41 = vadd.f32 1e-05, %v5371_v30  ;;  %v5766_v30 = vld [vmem:[%s7525_s11 + $0xb8] sm:$0xff] }
0x251c   :  { %6481 = vrsqrt.f32 %v5373_v41  ;;  %v5187_v1 = vpop.xlane.xlu1 %5186  ;;  %v6375_v41 = vpack.c.bf16 %v5766_v30, %v5765_v7 }
0x251d   :  { %6483 = vrcp.f32 %v5187_v1  ;;  %v5767_v1 = vld [vmem:[%s7525_s11 + $0xc0] sm:$0xff] }
0x251e   :  { %v6379_v31 = vpack.c.bf16 %v5768_v51, %v5767_v1 }
0x2526   :  { %v6482_v3 = vpop.eup %6481 }
0x2527   :  { %v6484_v59 = vpop.eup %6483  ;;  %v5377_v23 = vmul.f32 %v6482_v3, %v5361_v12  ;;  %v6383_v3 = vpack.c.bf16 %v5770_v20, %v5769_v34 }
0x2528   :  { %v5189_v33 = vmul.f32 %v6484_v59, %v6480_v18  ;;  %v6371_v18 = vpack.c.bf16 %v5764_v46, %v5763_v58  ;;  %v5771_v59 = vld [vmem:[%s7525_s11 + $0xe0] sm:$0xff] }
0x2529   :  { %v5385_v44 = vmul.f32 %v7413_v36, %v5377_v23 }
0x252a   :  { %6177 = vmatmul.mubr.msk.f32.vlgmr.msra.gmra.mrb[84].mxu0 %vm687_vm2, %v5189_v33  ;;  %v5773_v33 = vld [vmem:[%s7525_s11 + $0xf0] sm:$0xff] }
0x252b   :  { %6358 = vmatpush1.bf16.msra.mxu0 %v6357_v25  ;;  %5487 = vmatprep.mubr.f32.mxu0 %v6543_v43  ;;  %v5393_v24 = vadd.f32 %v5747_v39, %v5385_v44  ;;  %v5772_v25 = vld [vmem:[%s7525_s11 + $0xe8] sm:$0xff] }
0x252c   :  { %6360 = vmatprep.subr.bf16.mxu0 %v6359_v50  ;;  %v6387_v23 = vpack.c.bf16 %v5772_v25, %v5771_v59  ;;  %v5774_v50 = vld [vmem:[%s7525_s11 + $0xf8] sm:$0xff] }
0x252d   :  { %v6391_v6 = vpack.c.bf16 %v5774_v50, %v5773_v33 }
0x252f   :  { %6362 = vmatpush1.bf16.msra.mxu0 %v6361_v26 }
0x2532   :  { %5757 = vmatmul.mubr.msk.f32.vlgmr.msra.gmra.mrb[86].mxu0 %vm63_vm0, %v5393_v24 }
0x2533   :  { %5493 = vmatprep.mubr.f32.mxu0 %v6543_v43 }
0x25fd   :  { %v5259_v40 = vpop.f32.mrb[84].mxu0 }
0x25fe   :  { %v6178_v49 = vpop.f32.mrb[85].mxu0  ;;  %6182 = vmatmul.mubr.msk.f32.vlgmr.msra.gmra.mrb[62].mxu1 %vm687_vm2, %v5259_v40 }
0x2605   :  { %v5489_v35 = vpop.f32.mrb[86].mxu0 }
0x2606   :  { %v5491_v63 = vpop.f32.mrb[87].mxu0  ;;  %v5490_v56 = vadd.f32 %v5489_v35, %v7432_v37 }
0x2607   :  { %v5492_v45 = vadd.f32 %v5491_v63, %v7428_v57  ;;  %v5776_v63 = vld [vmem:[%s7526_s12 + $0x1] ss:$0 sm:$0xff] }
0x2609   :  { %v5502_v61 = vmul.f32 0.70710677, %v5492_v45  ;;  %v5500_v14 = vmul.f32 0.5, %v5492_v45 }
0x260b   :  { %6485 = verf.f32 %v5502_v61 }
0x2615   :  { %v6486_v43 = vpop.eup %6485 }
0x2616   :  { %v5506_v62 = vadd.f32 1.0, %v6486_v43 }
0x2618   :  { %v5508_v5 = vmul.f32 %v5506_v62, %v5500_v14 }
0x261a   :  { %v5510_v47 = vmul.f32 %v5508_v5, %v5490_v56 }
0x261c   :  { %6216 = vmatprep.mubr.f32.mxu1 %v5510_v47 }
0x26d1   :  { %v5332_v11 = vpop.f32.mrb[62].mxu1 }
0x26d2   :  { %v5336_v48 = vadd.f32 %v5332_v11, %v5102_v29  ;;  %v6183_v27 = vpop.f32.mrb[63].mxu1 }
0x26d4   :  { %v5346_v13 = vadd.f32 %v7369_v8, %v5336_v48  ;;  %v5761_v8 = vld [vmem:[%s7525_s11 + $0x90] sm:$0xff] }
0x26d5   :  { %v6367_v12 = vpack.c.bf16 %v5762_v55, %v5761_v8 }
0x26d6   :  { %v7437_v54 = vadd.f32 %v5346_v13, %v7080_v0  ;;  %v5760_v0 = vld [vmem:[%s7525_s11 + $0x88] sm:$0xff]  ;;  %s6545_s11 = smov [#allocation5]  }
0x26d7   :  { %v6363_v38 = vpack.c.bf16 %v5760_v0, %v5759_v52  ;;  %s5621_s6 = sshll.u32 %s6545_s11, 4  ;;  %s5622_s6 = int_to_ptr.vmem [resolvable:$true] %s5621_s6 }
0x26d8   :  { %v5356_v42 = vsel %vm63_vm0, %v7437_v54, 0.0  ;;  %s6514_s23 = scalar_lea.vmem %s5622_s6, 256  ;;  %p6519_p9 = scmp.lt.s32.totalorder %s5622_s6, %s5622_s6 }
0x26d9   :  { %5357 = vadd.xlane.f32.xlu1 %v5356_v42  ;;  %6364 = vmatprep.subr.bf16.mxu1 %v6363_v38  ;;  %p6515_p8 = scmp.ne.s32.totalorder %s5622_s6, %s6514_s23  ;;  %p6520_p10 = scmp.lt.s32.totalorder %s6514_s23, %s6514_s23 }
0x26da   :  { %6366 = vmatpush3.bf16.msra.mxu1 %v6363_v38 }
0x26db   :  { %6368 = vmatprep.subr.bf16.mxu1 %v6367_v12  ;;  %p6521_p11 = por %p6520_p10, %p6519_p9 }
0x26dd   :  { %p6522_p12 = pnand %p6521_p11, %p6515_p8 }
0x26de   :  { %6370 = vmatpush3.bf16.msra.mxu1 %v6367_v12 }
0x26df   :  { %6372 = vmatprep.subr.bf16.mxu1 %v6371_v18 }
0x26e2   :  { %6374 = vmatpush3.bf16.msra.mxu1 %v6371_v18 }
0x26e3   :  { %6376 = vmatprep.subr.bf16.mxu1 %v6375_v41 }
0x26e6   :  { %6378 = vmatpush3.bf16.msra.mxu1 %v6375_v41 }
0x26e7   :  { %6380 = vmatprep.subr.bf16.mxu1 %v6379_v31 }
0x26ea   :  { %6382 = vmatpush3.bf16.msra.mxu1 %v6379_v31 }
0x26eb   :  { %6384 = vmatprep.subr.bf16.mxu1 %v6383_v3 }
0x26ee   :  { %6386 = vmatpush3.bf16.msra.mxu1 %v6383_v3 }
0x26ef   :  { %6388 = vmatprep.subr.bf16.mxu1 %v6387_v23 }
0x26f2   :  { %6390 = vmatpush3.bf16.msra.mxu1 %v6387_v23 }
0x26f3   :  { %6392 = vmatprep.subr.bf16.mxu1 %v6391_v6 }
0x26f6   :  { %6394 = vmatpush3.bf16.msra.mxu1 %v6391_v6 }
0x2766   :  { %v5358_v15 = vpop.xlane.xlu1 %5357 }
0x2767   :  { %v5360_v17 = vmul.f32 0.03125, %v5358_v15 }
0x2769   :  { %v5362_v10 = vsub.f32 %v7437_v54, %v5360_v17 }
0x276b   :  { %v5364_v19 = vmul.f32 %v5362_v10, %v5362_v10 }
0x276d   :  { %v5368_v53 = vsel %vm63_vm0, %v5364_v19, 0.0 }
0x276e   :  { %5369 = vadd.xlane.f32.xlu1 %v5368_v53 }
0x27fb   :  { %v5370_v32 = vpop.xlane.xlu1 %5369 }
0x27fc   :  { %v5372_v21 = vmul.f32 0.03125, %v5370_v32 }
0x27fe   :  { %v5374_v22 = vadd.f32 1e-05, %v5372_v21 }
0x2800   :  { %6487 = vrsqrt.f32 %v5374_v22 }
0x280a   :  { %v6488_v28 = vpop.eup %6487 }
0x280b   :  { %v5378_v60 = vmul.f32 %v6488_v28, %v5362_v10 }
0x280d   :  { %v5386_v29 = vmul.f32 %v7413_v36, %v5378_v60 }
0x280f   :  { %v5394_v4 = vadd.f32 %v5747_v39, %v5386_v29 }
0x2811   :  { %5758 = vmatmul.mubr.msk.f32.gmra.mrb[88].mxu0 %vm63_vm0, %v5394_v4 }
0x28e4   :  { %v5495_v9 = vpop.f32.mrb[88].mxu0 }
0x28e5   :  { %v5497_v36 = vpop.f32.mrb[89].mxu0  ;;  %v5496_v49 = vadd.f32 %v5495_v9, %v7432_v37 }
0x28e6   :  { %v5498_v26 = vadd.f32 %v5497_v36, %v7428_v57 }
0x28e8   :  { %v5503_v44 = vmul.f32 0.70710677, %v5498_v26  ;;  %v5501_v24 = vmul.f32 0.5, %v5498_v26 }
0x28ea   :  { %6489 = verf.f32 %v5503_v44 }
0x28f4   :  { %v6490_v39 = vpop.eup %6489 }
0x28f5   :  { %v5507_v40 = vadd.f32 1.0, %v6490_v39 }
0x28f7   :  { %v5509_v16 = vmul.f32 %v5507_v40, %v5501_v24 }
0x28f9   :  { %v5511_v35 = vmul.f32 %v5509_v16, %v5496_v49 }
0x28fb   :  { %6217 = vmatmul.mubr.f32.vlgmr.msra.gmra.mrb[64].mxu1 %v5511_v35 }
0x29ce   :  { %v6218_v45 = vpop.f32.mrb[64].mxu1 }
0x29cf   :  { %v5609_v61 = vadd.f32 %v6218_v45, %v5776_v63  ;;  %v5603_v43 = vpop.f32.mrb[65].mxu1 }
0x29d0   :  { %v5604_v57 = vadd.f32 %v5776_v63, %v5603_v43 }
0x29d1   :  { %v5613_v14 = vadd.f32 %v5609_v61, %v7437_v54 }
0x29d2   :  { %v5612_v62 = vadd.f32 %v5604_v57, %v7378_v2 }
0x29d3   :  { %5615 = vst.msk [vmem:[#allocation5 + $0x8] sm:$0xff] %vm63_vm0, %v5613_v14 }
0x29d4   :  { %5614 = vst.msk [vmem:[#allocation5] sm:$0xff] %vm63_vm0, %v5612_v62 }
0x29d5   :  { %6525 = shalt.err (!%p6522_p12)
}
0x29d6   :  { %s6526_s25 = scalar_lea.hbm %s7527_s13, 256 }
0x29d7   :  { %p6527_p13 = scmp.ne.s32.totalorder %s7527_s13, %s6526_s25  ;;  %p6530_p0 = scmp.lt.u32.totalorder %s6526_s25, %s7527_s13 }
0x29d9   :  { %p6532_p1 = pnand %p6530_p0, %p6527_p13 }
0x29db   :  { %6535 = shalt.err (!%p6532_p1)
}
0x29dc   :  { %s6546_s29 = smov 128   ;;  %s6547_s30 = smov 8  }
0x29dd   :  { %5627 = dma.vmem_to_hbm [thread:$0]  %s5622_s6, 256, %s7527_s13, [#allocation4], %s6546_s29, %s6546_s29, %s6547_s30  }
0x29de   :  { %6538 = dma.done.wait [#allocation4], 256  }
0x29df   :  { %6539 = vsyncadd [#allocation4], 4294967040 }
0x29e0   :  { %5631 = vsyncpa [#allocation3], 1 }
0x29e1   :  { %5632 = vsyncpa [#allocation4], 1 }

</bundles_post_ra>
